<compile_context>
chip_gen: v5e
topology: v5e:2x2
jax: 0.10.0
libtpu: 0.0.40
codegen_flags: <defaults>
</compile_context>

<pallas_src>
from functools import partial

import jax
import jax.numpy as jnp
from jax.experimental import pallas as pl
from jax.experimental.pallas import tpu as pltpu

LRELU_SLOPE = 0.1


# ----------------------------------------------------------------------------
# Pallas kernel: (M, N, K)-tiled matmul, bf16 operands, f32 accumulation into
# the output block, fused bias add + optional leaky ReLU on the last K step.
# ----------------------------------------------------------------------------
def _matmul_bias_act_kernel(x_ref, w_ref, b_ref, o_ref, *, slope):
    k = pl.program_id(2)

    @pl.when(k == 0)
    def _init():
        o_ref[...] = jnp.zeros_like(o_ref)

    o_ref[...] += jnp.dot(x_ref[...], w_ref[...],
                          preferred_element_type=jnp.float32)

    @pl.when(k == pl.num_programs(2) - 1)
    def _finish():
        y = o_ref[...] + b_ref[...]
        if slope is not None:
            y = jnp.where(y >= 0.0, y, slope * y)
        o_ref[...] = y


@partial(jax.jit, static_argnames=("tm", "tn", "tk", "slope"))
def _padded_matmul(xp, wp, bp, tm, tn, tk, slope):
    Mp, Kp = xp.shape
    Np = wp.shape[1]
    grid = (Mp // tm, Np // tn, Kp // tk)      # reduction axis last
    return pl.pallas_call(
        partial(_matmul_bias_act_kernel, slope=slope),
        out_shape=jax.ShapeDtypeStruct((Mp, Np), jnp.float32),
        grid_spec=pltpu.PrefetchScalarGridSpec(
            num_scalar_prefetch=0,
            grid=grid,
            in_specs=[
                pl.BlockSpec((tm, tk), lambda i, j, k: (i, k)),
                pl.BlockSpec((tk, tn), lambda i, j, k: (k, j)),
                pl.BlockSpec((1, tn), lambda i, j, k: (0, j)),
            ],
            out_specs=pl.BlockSpec((tm, tn), lambda i, j, k: (i, j)),
        ),
        compiler_params=pltpu.CompilerParams(
            dimension_semantics=("parallel", "parallel", "arbitrary"),
            vmem_limit_bytes=48 * 1024 * 1024,   # safe on v7x (64 MiB physical)
        ),
    )(xp, wp, bp)


# ----------------------------------------------------------------------------
# Tiling / padding policy.
# ----------------------------------------------------------------------------
def _round_up(x, m):
    return ((x + m - 1) // m) * m


def _m_tiling(M):
    # 256-row buckets (matches v6e/v7x MXU), 512-step buckets above 1024 to
    # limit the number of distinct compiled shapes.
    if M <= 256:
        Mp = 256
    elif M <= 1024:
        Mp = _round_up(M, 256)
    else:
        Mp = _round_up(M, 512)
    return Mp, 256


def _n_tiling(N):
    Np = _round_up(N, 128)
    tn = 256 if (Np >= 256 and Np % 256 == 0) else 128
    return Np, tn


def _k_tiling(K):
    Kp = _round_up(K, 128)
    if Kp <= 2048:
        return Kp, Kp            # keep whole K resident: one MXU-friendly step
    Kp = _round_up(K, 512)
    return Kp, 512


def prep_matmul_weights(wmat, bias):
    """Pre-pad + pre-cast a (K, N) weight matrix and (N,) bias once at init."""
    K, N = wmat.shape
    Kp, tk = _k_tiling(K)
    Np, tn = _n_tiling(N)
    wp = jnp.pad(wmat.astype(jnp.bfloat16), ((0, Kp - K), (0, Np - N)))
    bp = jnp.pad(bias.astype(jnp.float32).reshape(1, N), ((0, 0), (0, Np - N)))
    return {"wp": wp, "bp": bp, "K": K, "N": N, "tk": tk, "tn": tn}


def matmul_bias_act(x, wm, slope=None):
    """x:[M,K] @ W:[K,N] + b, optional leaky-relu; bf16 MXU, f32 accumulate."""
    M, K = x.shape
    assert K == wm["K"], (K, wm["K"])
    Kp, Np = wm["wp"].shape
    Mp, tm = _m_tiling(M)
    xp = jnp.pad(x.astype(jnp.bfloat16), ((0, Mp - M), (0, Kp - K)))
    out = _padded_matmul(xp, wm["wp"], wm["bp"], tm, wm["tn"], wm["tk"], slope)
    return out[:M, :wm["N"]]


# ----------------------------------------------------------------------------
# Conv2d (NCHW, PyTorch semantics) = bf16 im2col + Pallas matmul kernel.
# ----------------------------------------------------------------------------
def conv2d(x, layer, slope=None):
    B, C, H, W = x.shape
    kh, kw = layer["kh"], layer["kw"]
    sh, sw = layer["stride"]
    ph, pw = layer["pad"]
    xp = jnp.pad(x, ((0, 0), (0, 0), (ph, ph), (pw, pw))).astype(jnp.bfloat16)
    Hp, Wp = H + 2 * ph, W + 2 * pw
    Hout = (Hp - kh) // sh + 1
    Wout = (Wp - kw) // sw + 1
    cols = []
    for i in range(kh):
        for j in range(kw):
            cols.append(xp[:, :,
                           i:i + (Hout - 1) * sh + 1:sh,
                           j:j + (Wout - 1) * sw + 1:sw])
    patches = jnp.stack(cols, axis=-1)                 # (B,C,Hout,Wout,kh*kw)
    patches = jnp.transpose(patches, (0, 2, 3, 1, 4))  # (B,Hout,Wout,C,kh*kw)
    patches = patches.reshape(B * Hout * Wout, C * kh * kw)
    out = matmul_bias_act(patches, layer["mm"], slope)
    return out.reshape(B, Hout, Wout, layer["cout"]).transpose(0, 3, 1, 2)


# ----------------------------------------------------------------------------
# STFT (torchaudio Spectrogram, power=None) as DFT matmul through Pallas.
# ----------------------------------------------------------------------------
def _hann_periodic(n):
    idx = jnp.arange(n, dtype=jnp.float32)
    return 0.5 - 0.5 * jnp.cos(2.0 * jnp.pi * idx / n)


def _dft_matrix(n_fft):
    F = n_fft // 2 + 1
    n = jnp.arange(n_fft, dtype=jnp.int32)[:, None]
    k = jnp.arange(F, dtype=jnp.int32)[None, :]
    phase = ((n * k) % n_fft).astype(jnp.float32) * (2.0 * jnp.pi / n_fft)
    # X[k] = sum_n x[n] exp(-2*pi*i*k*n/N)  ->  [cos | -sin]
    return jnp.concatenate([jnp.cos(phase), -jnp.sin(phase)], axis=1)  # (n_fft, 2F)


def spectrogram_bands(x, n_fft, hop, bands, window, dft_mm):
    # x: (B, T)  — per-utterance normalization is part of the reference module.
    x = x - jnp.mean(x, axis=-1, keepdims=True)
    x = 0.8 * x / (jnp.max(jnp.abs(x), axis=-1, keepdims=True) + 1e-9)
    pad = n_fft // 2
    assert x.shape[-1] > pad, "reflect pad requires T > n_fft // 2"
    xp = jnp.pad(x, ((0, 0), (pad, pad)), mode="reflect")
    B, T = x.shape
    n_frames = T // hop + 1
    idx = jnp.arange(n_frames)[:, None] * hop + jnp.arange(n_fft)[None, :]
    frames = xp[:, idx] * window[None, None, :]        # (B, n_frames, n_fft)
    F = n_fft // 2 + 1
    out = matmul_bias_act(frames.reshape(B * n_frames, n_fft), dft_mm, slope=None)
    out = out.reshape(B, n_frames, 2 * F)
    # matches torch: spec -> view_as_real -> transpose(1,3): (B, 2, frames, F)
    spec = jnp.stack([out[..., :F], out[..., F:]], axis=1)
    return [spec[..., b0:b1] for (b0, b1) in bands]


# ----------------------------------------------------------------------------
# Parameter init (deterministic, synthetic; weight_norm folded into weights).
# ----------------------------------------------------------------------------
def _make_conv_layer(key, cin, cout, kh, kw, stride, pad):
    wk, bk = jax.random.split(key)
    fan_in = cin * kh * kw
    w = jax.random.normal(wk, (cout, cin, kh, kw), jnp.float32) / jnp.sqrt(fan_in)
    b = 0.01 * jax.random.normal(bk, (cout,), jnp.float32)
    wmat = w.reshape(cout, cin * kh * kw).T          # K ordered (Cin, kh, kw)
    return {"kh": kh, "kw": kw, "stride": stride, "pad": pad, "cout": cout,
            "mm": prep_matmul_weights(wmat, b)}


def init_disc_r(key, window_length, channels=32):
    n_bins = window_length // 2 + 1
    band_fracs = ((0.0, 0.1), (0.1, 0.25), (0.25, 0.5), (0.5, 0.75), (0.75, 1.0))
    bands = [(int(b[0] * n_bins), int(b[1] * n_bins)) for b in band_fracs]
    layer_cfg = [
        (2, channels, 3, 9, (1, 1), (1, 4)),
        (channels, channels, 3, 9, (1, 2), (1, 4)),
        (channels, channels, 3, 9, (1, 2), (1, 4)),
        (channels, channels, 3, 9, (1, 2), (1, 4)),
        (channels, channels, 3, 3, (1, 1), (1, 1)),
    ]
    keys = jax.random.split(key, len(bands) + 1)
    band_convs = []
    for bk in keys[:len(bands)]:
        lkeys = jax.random.split(bk, len(layer_cfg))
        band_convs.append([
            _make_conv_layer(lk, cin, cout, kh, kw, st, pd)
            for lk, (cin, cout, kh, kw, st, pd) in zip(lkeys, layer_cfg)])
    post = _make_conv_layer(keys[-1], channels, 1, 3, 3, (1, 1), (1, 1))
    n_fft = window_length
    F = n_fft // 2 + 1
    return {
        "type": "R",
        "n_fft": n_fft,
        "hop": int(window_length * 0.25),
        "bands": bands,
        "window": _hann_periodic(n_fft),
        "dft_mm": prep_matmul_weights(_dft_matrix(n_fft),
                                      jnp.zeros((2 * F,), jnp.float32)),
        "band_convs": band_convs,
        "post": post,
    }


def init_disc_p(key, period, kernel_size=5, stride=3):
    chans = [(1, 32), (32, 128), (128, 512), (512, 1024), (1024, 1024)]
    pad = (kernel_size - 1) // 2            # get_padding(5, 1) == 2
    keys = jax.random.split(key, 6)
    convs = []
    for i, ((cin, cout), k) in enumerate(zip(chans, keys[:5])):
        s = stride if i < 4 else 1
        convs.append(_make_conv_layer(k, cin, cout, kernel_size, 1, (s, 1), (pad, 0)))
    post = _make_conv_layer(keys[5], 1024, 1, 3, 1, (1, 1), (1, 0))
    return {"type": "P", "period": period, "convs": convs, "post": post}


def init_params(key):
    fft_sizes = (2048, 1024, 512)
    periods = (2, 3, 5, 7, 11)
    keys = jax.random.split(key, len(fft_sizes) + len(periods))
    params = [init_disc_r(k, w) for k, w in zip(keys[:3], fft_sizes)]
    params += [init_disc_p(k, p) for k, p in zip(keys[3:], periods)]
    return params


# ----------------------------------------------------------------------------
# Forward passes (mirror the PyTorch module semantics).
# ----------------------------------------------------------------------------
def disc_r_forward(p, x):
    xs = x[:, 0, :]                                    # squeeze(1)
    x_bands = spectrogram_bands(xs, p["n_fft"], p["hop"], p["bands"],
                                p["window"], p["dft_mm"])
    fmap = []
    outs = []
    for band, stack in zip(x_bands, p["band_convs"]):
        for i, layer in enumerate(stack):
            band = conv2d(band, layer, slope=0.1)
            if i > 0:
                fmap.append(band)
        outs.append(band)
    xcat = jnp.concatenate(outs, axis=-1)
    out = conv2d(xcat, p["post"], slope=None)
    fmap.append(out)
    # cond_embedding_id is None -> h == 0, x += h is a no-op
    return out, fmap


def disc_p_forward(p, x):
    b, c, t = x.shape
    period = p["period"]
    if t % period != 0:
        n_pad = period - (t % period)
        x = jnp.pad(x, ((0, 0), (0, 0), (0, n_pad)), mode="reflect")
        t = t + n_pad
    x = x.reshape(b, c, t // period, period)
    fmap = []
    for layer in p["convs"]:
        x = conv2d(x, layer, slope=LRELU_SLOPE)
        fmap.append(x)
    x = conv2d(x, p["post"], slope=None)
    fmap.append(x)
    return x.reshape(b, -1), fmap                      # torch.flatten(x, 1, -1)


def mpmrd_forward(params, y, y_hat):
    # Run real & generated audio through each discriminator in ONE pass
    # (identical weights), halving launches and weight DMA; split afterwards.
    B = y.shape[0]
    yy = jnp.concatenate([y, y_hat], axis=0)
    y_d_rs, y_d_gs, fmap_rs, fmap_gs = [], [], [], []
    for p in params:
        fwd = disc_r_forward if p["type"] == "R" else disc_p_forward
        out, fmap = fwd(p, yy)
        y_d_rs.append(out[:B])
        y_d_gs.append(out[B:])
        fmap_rs.append([f[:B] for f in fmap])
        fmap_gs.append([f[B:] for f in fmap])
    return y_d_rs, y_d_gs, fmap_rs, fmap_gs


# ----------------------------------------------------------------------------
if __name__ == "__main__":
    key = jax.random.PRNGKey(0)
    k_y, k_yh, k_p = jax.random.split(key, 3)
    # T must exceed n_fft//2 = 1024 for the reflect padding of the 2048-pt STFT.
    B, T = 2, 1536
    y = jax.random.normal(k_y, (B, 1, T), jnp.float32)
    y_hat = jax.random.normal(k_yh, (B, 1, T), jnp.float32)

    params = init_params(k_p)
    out = mpmrd_forward(params, y, y_hat)
    jax.block_until_ready(out)
    print("KERNEL_OK")
</pallas_src>

<mosaic_0001>
module attributes {stable_mosaic.version = 11 : i64} {
  func.func @_matmul_bias_act_kernel(%arg0: i32, %arg1: i32, %arg2: i32, %arg3: memref<256x2048xbf16, #tpu.memory_space<vmem>>, %arg4: memref<2048x128xbf16, #tpu.memory_space<vmem>>, %arg5: memref<1x128xf32, #tpu.memory_space<vmem>>, %arg6: memref<256x128xf32, #tpu.memory_space<vmem>>) attributes {dimension_semantics = [#tpu.dimension_semantics<parallel>, #tpu.dimension_semantics<parallel>, #tpu.dimension_semantics<arbitrary>], iteration_bounds = array<i64: 1, 17, 1>, scalar_prefetch = 0 : i64, scratch_operands = 0 : i64, tpu.core_type = #tpu.core_type<tc>, window_params = [{transform_indices = @transform_0, window_bounds = array<i64: 256, 2048>}, {transform_indices = @transform_1, window_bounds = array<i64: 2048, 128>}, {transform_indices = @transform_2, window_bounds = array<i64: 1, 128>}, {transform_indices = @transform_3, window_bounds = array<i64: 256, 128>}]} {
    %c0_i32 = arith.constant 0 : i32
    %0 = arith.cmpi eq, %arg2, %c0_i32 : i32
    %1 = arith.extui %0 : i1 to i32
    %c0_i32_0 = arith.constant 0 : i32
    %2 = arith.cmpi ne, %1, %c0_i32_0 : i32
    scf.if %2 {
      %cst_10 = arith.constant 0.000000e+00 : f32
      %12 = vector.broadcast %cst_10 : f32 to vector<256x128xf32>
      %c0_11 = arith.constant 0 : index
      %c0_12 = arith.constant 0 : index
      %13 = vector.load %arg6[%c0_11, %c0_12] : memref<256x128xf32, #tpu.memory_space<vmem>>, vector<256x128xf32>
      tpu.vector_store %arg6[%c0_11, %c0_12], %12 {strides = array<i32>} : memref<256x128xf32, #tpu.memory_space<vmem>>, vector<256x128xf32>,
    } else {
    }
    %c0 = arith.constant 0 : index
    %c0_1 = arith.constant 0 : index
    %3 = vector.load %arg6[%c0, %c0_1] : memref<256x128xf32, #tpu.memory_space<vmem>>, vector<256x128xf32>
    %c0_2 = arith.constant 0 : index
    %c0_3 = arith.constant 0 : index
    %4 = vector.load %arg3[%c0_2, %c0_3] : memref<256x2048xbf16, #tpu.memory_space<vmem>>, vector<256x2048xbf16>
    %c0_4 = arith.constant 0 : index
    %c0_5 = arith.constant 0 : index
    %5 = vector.load %arg4[%c0_4, %c0_5] : memref<2048x128xbf16, #tpu.memory_space<vmem>>, vector<2048x128xbf16>
    %cst = arith.constant dense<0.000000e+00> : vector<256x128xf32>
    %6 = tpu.matmul %4, %5, %cst {dimension_numbers = #tpu.dot_dimension_numbers<[1], [0], [0], [1], [0, 0, 1, 1], [], []>} : vector<256x2048xbf16>, vector<2048x128xbf16>, vector<256x128xf32> -> vector<256x128xf32>
    %7 = arith.addf %3, %6 : vector<256x128xf32>
    %c0_6 = arith.constant 0 : index
    %c0_7 = arith.constant 0 : index
    %8 = vector.load %arg6[%c0_6, %c0_7] : memref<256x128xf32, #tpu.memory_space<vmem>>, vector<256x128xf32>
    tpu.vector_store %arg6[%c0_6, %c0_7], %7 {strides = array<i32>} : memref<256x128xf32, #tpu.memory_space<vmem>>, vector<256x128xf32>,
    %c0_i32_8 = arith.constant 0 : i32
    %9 = arith.cmpi eq, %arg2, %c0_i32_8 : i32
    %10 = arith.extui %9 : i1 to i32
    %c0_i32_9 = arith.constant 0 : i32
    %11 = arith.cmpi ne, %10, %c0_i32_9 : i32
    scf.if %11 {
      %c0_10 = arith.constant 0 : index
      %c0_11 = arith.constant 0 : index
      %12 = vector.load %arg6[%c0_10, %c0_11] : memref<256x128xf32, #tpu.memory_space<vmem>>, vector<256x128xf32>
      %c0_12 = arith.constant 0 : index
      %c0_13 = arith.constant 0 : index
      %13 = vector.load %arg5[%c0_12, %c0_13] : memref<1x128xf32, #tpu.memory_space<vmem>>, vector<1x128xf32>
      %14 = vector.broadcast %13 : vector<1x128xf32> to vector<256x128xf32>
      %15 = arith.addf %12, %14 : vector<256x128xf32>
      %c0_14 = arith.constant 0 : index
      %c0_15 = arith.constant 0 : index
      %16 = vector.load %arg6[%c0_14, %c0_15] : memref<256x128xf32, #tpu.memory_space<vmem>>, vector<256x128xf32>
      tpu.vector_store %arg6[%c0_14, %c0_15], %15 {strides = array<i32>} : memref<256x128xf32, #tpu.memory_space<vmem>>, vector<256x128xf32>,
    } else {
    }
    return
  }
  func.func @transform_0(%arg0: i32, %arg1: i32, %arg2: i32) -> (i32, i32) {
    %c0_i32 = arith.constant 0 : i32
    return %arg0, %arg2 : i32, i32
  }
  func.func @transform_1(%arg0: i32, %arg1: i32, %arg2: i32) -> (i32, i32) {
    %c0_i32 = arith.constant 0 : i32
    return %arg2, %arg1 : i32, i32
  }
  func.func @transform_2(%arg0: i32, %arg1: i32, %arg2: i32) -> (i32, i32) {
    %c0_i32 = arith.constant 0 : i32
    %c0_i32_0 = arith.constant 0 : i32
    return %c0_i32, %arg1 : i32, i32
  }
  func.func @transform_3(%arg0: i32, %arg1: i32, %arg2: i32) -> (i32, i32) {
    %c0_i32 = arith.constant 0 : i32
    return %arg0, %arg1 : i32, i32
  }
}

</mosaic_0001>

<bundles_post_ra>
// kernel: _padded_matmul.1
= control target key start
LH: loop header
LB: loop body
LE: loop exit
PB: predicated region body
PF: predicated region fallthrough
CT: control target
= control target key end

     0   :  { %8 = vsyncpa [#allocation3], 0  ;;  %s7531_s0 = inlined_call_operand.hbm [shape: bf16[256,2048], index: 0, kind: input, shape index: {}]   ;;  %s7532_s1 = inlined_call_operand.hbm [shape: bf16[2048,2176], index: 1, kind: input, shape index: {}]   ;;  %s7533_s2 = inlined_call_operand.hbm [shape: f32[1,2176], index: 2, kind: input, shape index: {}]   ;;  %s7534_s3 = inlined_call_operand.hbm [shape: f32[256,2176], index: 3, kind: output, shape index: {}]  }
   0x1   :  { %9 = vsyncpa [#allocation6], 0 }
   0x2   :  { %11 = vsyncpa [#allocation6 + $0x1], 0 }
   0x3   :  { %12 = vsyncpa [#allocation4], 0 }
   0x4   :  { %14 = vsyncpa [#allocation4 + $0x1], 0  ;;  %s6868_s12 = smov 0   ;;  %s6870_s13 = smov 0  }
   0x5   :  { %s6872_s14 = smov 0   ;;  %s6874_s15 = smov 0  }
   0x6   :  { %s6876_s16 = smov 0   ;;  %s6878_s17 = smov 0  }
   0x7 LB: > { %s35_s18 = sadd.s32 1, %s6834_s16  ;;  %s76_s19 = sadd.s32 1, %s6826_s14  ;;  %s6838_s17 = sphi %s6878_s17, %s20_s17   ;;  %s6834_s16 = sphi %s6876_s16, %s7545_s16   ;;  %s6830_s15 = sphi %s6874_s15, %s7544_s15   ;;  %s6826_s14 = sphi %s6872_s14, %s7543_s14   ;;  %s6822_s13 = sphi %s6870_s13, %s7542_s13   ;;  %s6818_s12 = sphi %s6868_s12, %s7541_s12  }
   0x8   : > { %p37_p0 = scmp.ge.s32.totalorder %s35_s18, 17  ;;  %p83_p1 = scmp.ne.s32.totalorder %s6826_s14, %s6822_s13 }
   0x9   : > { %p84_p2 = scmp.eq.s32.totalorder %s6838_s17, 0  ;;  %p6601_p4 = scmp.lt.s32.totalorder %s6838_s17, 17 }
   0xa   : > { %s7547_s18 = smov (%p37_p0, %s35_s18), 0  ;;  %s187_s22 = sand.u32 1, %s6838_s17  }
   0xb   : > { %p6908_p3 = por %p84_p2, %p83_p1  ;;  %s72_s21 = ssub.s32 %s6834_s16, %s7547_s18 }
   0xc   : > { %p74_p5 = scmp.eq.s32.totalorder %s72_s21, 0  ;;  %s189_s23 = sand.u32 1, %s6826_s14  }
   0xd   : > { %s4645_s25 = sshll.u32 %s189_s23, 10  ;;  %s4646_s26 = sshll.u32 %s6834_s16, 2 }
   0xe   : > { %s6918_s24 = scalar_select %p74_p5, %s6826_s14, %s76_s19  }
   0xf   : > { %s198_s29 = scalar_lea.hbm %s7532_s1, %s4646_s26  ;;  %s191_s4 = scalar_lea.vmem [#allocation5], %s4645_s25 }
  0x10   : > { %s199_s30 = sshll.u32 %s198_s29, 4  ;;  %s201_s5 = sshll.u32 %s191_s4, 4  ;;  %s200_s30 = int_to_ptr.hbm [resolvable:$true] %s199_s30  ;;  %s202_s5 = int_to_ptr.vmem [resolvable:$true] %s201_s5 }
  0x11   : > { %p6930_p6 = pnand %p6601_p4, %p6908_p3  ;;  %s6934_s7 = scalar_lea.sflag [#allocation6], %s187_s22 }
  0x12   : > { %s6840_s8 = smov 1088   ;;  %s6841_s9 = smov 64  }
  0x13   : > { %s6842_s10 = smov 4   ;;  %s6941_s11 = sadd.s32 4294967295, %s6838_s17  }
  0x14   : > { %6592 = dma.hbm_to_vmem [thread:$0]  (!%p6930_p6), %s200_s30, 16384, %s202_s5, %s6934_s7, %s6840_s8, %s6841_s9, %s6842_s10  }
  0x15   : > { %s4641_s19 = sadd.s32 4294967294, %s6838_s17   ;;  %p89_p7 = scmp.ne.s32.totalorder %s6822_s13, %s6818_s12 }
  0x16   : > { %p90_p8 = scmp.eq.s32.totalorder %s6941_s11, 0  ;;  %p141_p9 = scmp.eq.s32.totalorder %s6941_s11, 16 }
  0x17   : > { %p147_p10 = scmp.eq.s32.totalorder %s4641_s19, 16  ;;  %p4642_p12 = scmp.ge.s32.totalorder %s6838_s17, 1 }
  0x18   : > { %p6950_p11 = por %p90_p8, %p89_p7  ;;  %p6958_p13 = por %p141_p9, %p83_p1 }
  0x19   : > { %p6962_p0 = por %p147_p10, %p89_p7  ;;  %p154_p2 = scmp.lt.s32.totalorder %s6838_s17, 18 }
  0x1a   : > { %s171_s27 = sshll.u32 %s7531_s0, 4  ;;  %s6843_s29 = smov [#allocation2]   ;;  %s172_s27 = int_to_ptr.hbm [resolvable:$true] %s171_s27 }
  0x1b   : > { %p6970_p3 = pnand %p4642_p12, %p154_p2  ;;  %s173_s30 = sshll.u32 %s6843_s29, 4  ;;  %s174_s30 = int_to_ptr.vmem [resolvable:$true] %s173_s30 }
  0x1c   : > { %s217_s8 = scalar_lea.hbm %s7533_s2, %s6834_s16  ;;  %s214_s19 = scalar_lea.vmem [#allocation7], %s189_s23 }
  0x1d   : > { %p6585_p1 = pneg %p6970_p3  ;;  %s219_s10 = sshll.u32 %s217_s8, 4  ;;  %s220_s10 = int_to_ptr.hbm [resolvable:$true] %s219_s10 }
  0x1e   : > { %s221_s25 = sshll.u32 %s214_s19, 4  ;;  %s6844_s26 = smov 1024   ;;  %s222_s25 = int_to_ptr.vmem [resolvable:$true] %s221_s25 }
  0x1f   : > { %p6586_p4 = pnand %p6585_p1, %p90_p8  ;;  %230 = sbr.rel (%p6970_p3) target bundleno = 1234 (0x4d2), region = 32 }
  0x20   : > { %6595 = dma.hbm_to_vmem [thread:$0]  (!%p6930_p6), %s220_s10, 16, %s222_s25, %s6934_s7  }
  0x21   : > { %6588 = dma.hbm_to_vmem [thread:$0]  (!%p6586_p4), %s172_s27, 32768, %s174_s30, [#allocation3], %s6844_s26, %s6844_s26, %s6841_s9  }
  0x24   : > { %6805 = dma.done.wait (%p90_p8), [#allocation3], 32768  }
  0x25   : > { %6807 = vsyncadd (%p90_p8), [#allocation3], 4294934528  ;;  %s237_s23 = sand.u32 1, %s6941_s11   ;;  %s6996_s29 = sand.u32 1, %s6822_s13  }
  0x26   : > { %s4649_s4 = sshll.u32 %s6996_s29, 10  ;;  %s238_s9 = scalar_lea.sflag [#allocation6], %s237_s23 }
  0x27   : > { %s6999_s6 = scalar_lea.vmem [#allocation5], %s4649_s4 }
  0x28   : > { %6809 = dma.done.wait (%p6950_p11), %s238_s9, 16400  }
  0x29   : > { %6811 = vsyncadd (%p6950_p11), %s238_s9, 4294950896  ;;  %v6454_v0 = vld [vmem:[%s6999_s6 + $0x38] sm:$0xff]  ;;  %v6453_v4 = vld [vmem:[%s6999_s6 + $0x30] sm:$0xff]  ;;  %s250_s7 = scalar_lea.vmem [#allocation7], %s6996_s29  ;;  %s4650_s11 = sshll.u32 %s6996_s29, 8 }
  0x2a   : > { %v6462_v1 = vld [vmem:[%s6999_s6 + $0x78] sm:$0xff]  ;;  %2910 = vmatpush.bf16.msra.mxu0 %v6454_v0  ;;  %v6461_v5 = vld [vmem:[%s6999_s6 + $0x70] sm:$0xff]  ;;  %v6452_v8 = vld [vmem:[%s6999_s6 + $0x28] sm:$0xff]  ;;  %s7398_s20 = scalar_lea.vmem [#allocation8], %s4650_s11  ;;  %s6188_s27 = sshll.u32 %s6830_s15, 3 }
  0x2b   : > { %v6470_v2 = vld [vmem:[%s6999_s6 + $0xb8] sm:$0xff]  ;;  %2999 = vmatpush.bf16.msra.mxu1 %v6462_v1  ;;  %v6469_v6 = vld [vmem:[%s6999_s6 + $0xb0] sm:$0xff]  ;;  %v6460_v9 = vld [vmem:[%s6999_s6 + $0x68] sm:$0xff]  ;;  %s4515_s5 = scalar_lea.hbm %s7534_s3, %s6188_s27  ;;  %s4516_s8 = sshll.u32 %s7398_s20, 4  ;;  %s4517_s8 = int_to_ptr.vmem [resolvable:$true] %s4516_s8 }
  0x2c   : > { %v6478_v3 = vld [vmem:[%s6999_s6 + $0xf8] sm:$0xff]  ;;  %3088 = vmatpush.bf16.msra.mxu2 %v6470_v2  ;;  %v6477_v7 = vld [vmem:[%s6999_s6 + $0xf0] sm:$0xff]  ;;  %v6468_v10 = vld [vmem:[%s6999_s6 + $0xa8] sm:$0xff]  ;;  %s4518_s10 = sshll.u32 %s4515_s5, 4  ;;  %s4502_s15 = scalar_lea.sflag [#allocation4], %s6996_s29  ;;  %s4519_s10 = int_to_ptr.hbm [resolvable:$true] %s4518_s10 }
  0x2d   : > { %3177 = vmatpush.bf16.msra.mxu3 %v6478_v3  ;;  %v6476_v11 = vld [vmem:[%s6999_s6 + $0xe8] sm:$0xff]  ;;  %v6451_v12 = vld [vmem:[%s6999_s6 + $0x20] sm:$0xff]  ;;  %v6450_v16 = vld [vmem:[%s6999_s6 + $0x18] sm:$0xff]  ;;  %s6766_s19 = sshra.s32 %s4519_s10, 4  ;;  %s6772_s4 = scalar_lea.hbm %s7534_s3, 4352  ;;  %s6767_s19 = int_to_ptr.hbm [resolvable:$true] %s6766_s19 }
  0x2e   : > { %2911 = vmatpush.bf16.msra.mxu0 %v6453_v4  ;;  %v6459_v13 = vld [vmem:[%s6999_s6 + $0x60] sm:$0xff]  ;;  %v6458_v17 = vld [vmem:[%s6999_s6 + $0x58] sm:$0xff]  ;;  %v6449_v20 = vld [vmem:[%s6999_s6 + $0x10] sm:$0xff]  ;;  %s6768_s25 = scalar_lea.hbm %s6767_s19, 256  ;;  %p6773_p8 = scmp.lt.s32.totalorder %s6767_s19, %s7534_s3 }
  0x2f   : > { %3000 = vmatpush.bf16.msra.mxu1 %v6461_v5  ;;  %v6467_v14 = vld [vmem:[%s6999_s6 + $0xa0] sm:$0xff]  ;;  %v6466_v18 = vld [vmem:[%s6999_s6 + $0x98] sm:$0xff]  ;;  %v6457_v21 = vld [vmem:[%s6999_s6 + $0x50] sm:$0xff]  ;;  %p6769_p5 = scmp.ne.s32.totalorder %s6767_s19, %s6768_s25  ;;  %p6774_p9 = scmp.lt.s32.totalorder %s6772_s4, %s6768_s25 }
  0x30   : > { %3089 = vmatpush.bf16.msra.mxu2 %v6469_v6  ;;  %v6475_v15 = vld [vmem:[%s6999_s6 + $0xe0] sm:$0xff]  ;;  %v6474_v19 = vld [vmem:[%s6999_s6 + $0xd8] sm:$0xff]  ;;  %v6465_v22 = vld [vmem:[%s6999_s6 + $0x90] sm:$0xff] }
  0x31   : > { %3178 = vmatpush.bf16.msra.mxu3 %v6477_v7  ;;  %v6473_v23 = vld [vmem:[%s6999_s6 + $0xd0] sm:$0xff]  ;;  %v6448_v24 = vld [vmem:[%s6999_s6 + $0x8] sm:$0xff]  ;;  %v6447_v28 = vld [vmem:[%s6999_s6] sm:$0xff]  ;;  %p6770_p6 = pnand %p6769_p5, %p6958_p13  ;;  %p6775_p10 = por %p6774_p9, %p6773_p8 }
  0x32   : > { %2912 = vmatpush.bf16.msra.mxu0 %v6452_v8  ;;  %v6456_v25 = vld [vmem:[%s6999_s6 + $0x48] sm:$0xff]  ;;  %v6455_v29 = vld [vmem:[%s6999_s6 + $0x40] sm:$0xff]  ;;  %v6502_v40 = vld [vmem:[%s6999_s6 + $0x1b8] sm:$0xff] }
  0x33   : > { %3001 = vmatpush.bf16.msra.mxu1 %v6460_v9  ;;  %v6464_v26 = vld [vmem:[%s6999_s6 + $0x88] sm:$0xff]  ;;  %v6463_v30 = vld [vmem:[%s6999_s6 + $0x80] sm:$0xff]  ;;  %v6486_v41 = vld [vmem:[%s6999_s6 + $0x138] sm:$0xff]  ;;  %p6771_p7 = pneg %p6770_p6 }
  0x34   : > { %3090 = vmatpush.bf16.msra.mxu2 %v6468_v10  ;;  %v6472_v27 = vld [vmem:[%s6999_s6 + $0xc8] sm:$0xff]  ;;  %v6471_v31 = vld [vmem:[%s6999_s6 + $0xc0] sm:$0xff]  ;;  %v6510_v46 = vld [vmem:[%s6999_s6 + $0x1f8] sm:$0xff] }
  0x35   : > { %3179 = vmatpush.bf16.msra.mxu3 %v6476_v11  ;;  %v4653_v32 = vld [vmem:[#allocation2] sm:$0xf]  ;;  %v6191_v34 = vld [vmem:[#allocation2 + $0x4] sm:$0xf]  ;;  %v4661_v36 = vld [vmem:[#allocation2 + $0x8] sm:$0xf]  ;;  %p6776_p11 = pnand %p6775_p10, %p6771_p7 }
  0x36   : > { %2913 = vmatpush.bf16.msra.mxu0 %v6451_v12  ;;  %v6199_v33 = vld [vmem:[#allocation2 + $0x3c] sm:$0xf0]  ;;  %v4655_v35 = vld [vmem:[#allocation2 + $0x40] sm:$0xf0]  ;;  %v6200_v37 = vld [vmem:[#allocation2 + $0x44] sm:$0xf0] }
  0x37   : > { %3002 = vmatpush.bf16.msra.mxu1 %v6459_v13  ;;  %v6192_v38 = vld [vmem:[#allocation2 + $0xc] sm:$0xf]  ;;  %v4654_v42 = vor.u32 %v6199_v33, %v4653_v32  ;;  %v4658_v43 = vor.u32 %v6191_v34, %v4655_v35  ;;  %v4662_v44 = vor.u32 %v6200_v37, %v4661_v36  ;;  %v6494_v47 = vld [vmem:[%s6999_s6 + $0x178] sm:$0xff]  ;;  %v6501_v48 = vld [vmem:[%s6999_s6 + $0x1b0] sm:$0xff] }
  0x38   : > { %3091 = vmatpush.bf16.msra.mxu2 %v6467_v14  ;;  %v4663_v39 = vld [vmem:[#allocation2 + $0x48] sm:$0xf0]  ;;  %v6485_v49 = vld [vmem:[%s6999_s6 + $0x130] sm:$0xff]  ;;  %v4717_v52 = vld [vmem:[#allocation2 + $0x80] sm:$0xf] }
  0x39   : > { %3180 = vmatpush.bf16.msra.mxu3 %v6475_v15  ;;  %v4666_v45 = vor.u32 %v6192_v38, %v4663_v39  ;;  %v6509_v50 = vld [vmem:[%s6999_s6 + $0x1f0] sm:$0xff]  ;;  %v6215_v53 = vld [vmem:[#allocation2 + $0xbc] sm:$0xf0]  ;;  %v6207_v54 = vld [vmem:[#allocation2 + $0x84] sm:$0xf] }
  0x3a   : > { %2914 = vmatpush.bf16.msra.mxu0 %v6450_v16  ;;  %v6493_v51 = vld [vmem:[%s6999_s6 + $0x170] sm:$0xff]  ;;  %v4719_v55 = vld [vmem:[#allocation2 + $0xc0] sm:$0xf0]  ;;  %v4725_v56 = vld [vmem:[#allocation2 + $0x88] sm:$0xf]  ;;  %v4718_v60 = vor.u32 %v6215_v53, %v4717_v52 }
  0x3b   : > { %3003 = vmatpush.bf16.msra.mxu1 %v6458_v17  ;;  %v6216_v57 = vld [vmem:[#allocation2 + $0xc4] sm:$0xf0]  ;;  %v6208_v58 = vld [vmem:[#allocation2 + $0x8c] sm:$0xf]  ;;  %v4722_v61 = vor.u32 %v6207_v54, %v4719_v55  ;;  %v4781_v0 = vld [vmem:[#allocation2 + $0x100] sm:$0xf] }
  0x3c   : > { %3092 = vmatpush.bf16.msra.mxu2 %v6466_v18  ;;  %v4727_v59 = vld [vmem:[#allocation2 + $0xc8] sm:$0xf0]  ;;  %v4726_v62 = vor.u32 %v6216_v57, %v4725_v56  ;;  %v6231_v1 = vld [vmem:[#allocation2 + $0x13c] sm:$0xf0]  ;;  %v6223_v2 = vld [vmem:[#allocation2 + $0x104] sm:$0xf] }
  0x3d   : > { %3181 = vmatpush.bf16.msra.mxu3 %v6474_v19  ;;  %v4730_v63 = vor.u32 %v6208_v58, %v4727_v59  ;;  %v4783_v3 = vld [vmem:[#allocation2 + $0x140] sm:$0xf0]  ;;  %v4789_v4 = vld [vmem:[#allocation2 + $0x108] sm:$0xf]  ;;  %v6224_v6 = vld [vmem:[#allocation2 + $0x10c] sm:$0xf]  ;;  %v4782_v8 = vor.u32 %v6231_v1, %v4781_v0 }
  0x3e   : > { %2915 = vmatpush.bf16.msra.mxu0 %v6449_v20  ;;  %v6232_v5 = vld [vmem:[#allocation2 + $0x144] sm:$0xf0]  ;;  %v4791_v7 = vld [vmem:[#allocation2 + $0x148] sm:$0xf0]  ;;  %v4786_v9 = vor.u32 %v6223_v2, %v4783_v3  ;;  %v4845_v16 = vld [vmem:[#allocation2 + $0x180] sm:$0xf] }
  0x3f   : > { %3004 = vmatpush.bf16.msra.mxu1 %v6457_v21  ;;  %v4790_v10 = vor.u32 %v6232_v5, %v4789_v4  ;;  %v4794_v11 = vor.u32 %v6224_v6, %v4791_v7  ;;  %v6500_v12 = vld [vmem:[%s6999_s6 + $0x1a8] sm:$0xff]  ;;  %v6247_v17 = vld [vmem:[#allocation2 + $0x1bc] sm:$0xf0]  ;;  %v6239_v18 = vld [vmem:[#allocation2 + $0x184] sm:$0xf] }
  0x40   : > { %3093 = vmatpush.bf16.msra.mxu2 %v6465_v22  ;;  %v6484_v13 = vld [vmem:[%s6999_s6 + $0x128] sm:$0xff]  ;;  %v4847_v19 = vld [vmem:[#allocation2 + $0x1c0] sm:$0xf0]  ;;  %v5037_v56 = vld [vmem:[#allocation2 + $0x300] sm:$0xf] }
  0x41   : > { %3182 = vmatpush.bf16.msra.mxu3 %v6473_v23  ;;  %v6508_v14 = vld [vmem:[%s6999_s6 + $0x1e8] sm:$0xff]  ;;  %v6295_v57 = vld [vmem:[#allocation2 + $0x33c] sm:$0xf0]  ;;  %v6287_v58 = vld [vmem:[#allocation2 + $0x304] sm:$0xf] }
  0x42   : > { %2916 = vmatpush.bf16.msra.mxu0 %v6448_v24  ;;  %v6492_v15 = vld [vmem:[%s6999_s6 + $0x168] sm:$0xff]  ;;  %v4846_v24 = vor.u32 %v6247_v17, %v4845_v16  ;;  %v5039_v59 = vld [vmem:[#allocation2 + $0x340] sm:$0xf0]  ;;  %v5038_v0 = vor.u32 %v6295_v57, %v5037_v56  ;;  %v6498_v4 = vld [vmem:[%s6999_s6 + $0x198] sm:$0xff] }
  0x43   : > { %3005 = vmatpush.bf16.msra.mxu1 %v6456_v25  ;;  %v4853_v20 = vld [vmem:[#allocation2 + $0x188] sm:$0xf]  ;;  %v6240_v22 = vld [vmem:[#allocation2 + $0x18c] sm:$0xf]  ;;  %v4850_v25 = vor.u32 %v6239_v18, %v4847_v19  ;;  %v5042_v1 = vor.u32 %v6287_v58, %v5039_v59  ;;  %v6482_v5 = vld [vmem:[%s6999_s6 + $0x118] sm:$0xff] }
  0x44   : > { %3094 = vmatpush.bf16.msra.mxu2 %v6464_v26  ;;  %v6248_v21 = vld [vmem:[#allocation2 + $0x1c4] sm:$0xf0]  ;;  %v4855_v23 = vld [vmem:[#allocation2 + $0x1c8] sm:$0xf0]  ;;  %v6506_v6 = vld [vmem:[%s6999_s6 + $0x1d8] sm:$0xff] }
  0x45   : > { %3183 = vmatpush.bf16.msra.mxu3 %v6472_v27  ;;  %v4854_v26 = vor.u32 %v6248_v21, %v4853_v20  ;;  %v4858_v27 = vor.u32 %v6240_v22, %v4855_v23  ;;  %v4917_v32 = vld [vmem:[#allocation2 + $0x208] sm:$0xf]  ;;  %v6256_v34 = vld [vmem:[#allocation2 + $0x20c] sm:$0xf]  ;;  %v6490_v7 = vld [vmem:[%s6999_s6 + $0x158] sm:$0xff] }
  0x46   : > { %2917 = vmatpush.bf16.msra.mxu0 %v6447_v28  ;;  %v4909_v28 = vld [vmem:[#allocation2 + $0x200] sm:$0xf]  ;;  %v6264_v33 = vld [vmem:[#allocation2 + $0x244] sm:$0xf0]  ;;  %v4919_v35 = vld [vmem:[#allocation2 + $0x248] sm:$0xf0] }
  0x47   : > { %3006 = vmatpush.bf16.msra.mxu1 %v6455_v29  ;;  %v6263_v29 = vld [vmem:[#allocation2 + $0x23c] sm:$0xf0]  ;;  %v4918_v38 = vor.u32 %v6264_v33, %v4917_v32  ;;  %v4922_v39 = vor.u32 %v6256_v34, %v4919_v35  ;;  %v6319_v22 = vld [vmem:[#allocation2 + $0x404] sm:$0xf]  ;;  %v6497_v35 = vld [vmem:[%s6999_s6 + $0x190] sm:$0xff] }
  0x48   : > { %3095 = vmatpush.bf16.msra.mxu2 %v6463_v30  ;;  %v6255_v30 = vld [vmem:[#allocation2 + $0x204] sm:$0xf]  ;;  %v4910_v36 = vor.u32 %v6263_v29, %v4909_v28  ;;  %v5165_v20 = vld [vmem:[#allocation2 + $0x400] sm:$0xf] }
  0x49   : > { %3184 = vmatpush.bf16.msra.mxu3 %v6471_v31  ;;  %2918 = vmatmul.bf16.vlgmr.msra.gmra.mxu0 %v4654_v42  ;;  %v4911_v31 = vld [vmem:[#allocation2 + $0x240] sm:$0xf0]  ;;  %v6327_v21 = vld [vmem:[#allocation2 + $0x43c] sm:$0xf0] }
  0x4a   : > { %3266 = vmatpush.bf16.msrb.mxu0 %v6486_v41  ;;  %3007 = vmatmul.bf16.vlgmr.msra.gmra.mxu1 %v4658_v43  ;;  %v4914_v37 = vor.u32 %v6255_v30, %v4911_v31  ;;  %v6483_v41 = vld [vmem:[%s6999_s6 + $0x120] sm:$0xff]  ;;  %v5166_v28 = vor.u32 %v6327_v21, %v5165_v20 }
  0x4b   : > { %3096 = vmatmul.bf16.vlgmr.msra.gmra.mxu2 %v4662_v44  ;;  %3355 = vmatpush.bf16.msrb.mxu1 %v6494_v47  ;;  %v6507_v42 = vld [vmem:[%s6999_s6 + $0x1e0] sm:$0xff] }
  0x4c   : > { %3444 = vmatpush.bf16.msrb.mxu2 %v6502_v40  ;;  %3185 = vmatmul.bf16.vlgmr.msra.gmra.mxu3 %v4666_v45  ;;  %v6499_v40 = vld [vmem:[%s6999_s6 + $0x1a0] sm:$0xff] }
  0x4d   : > { %3533 = vmatpush.bf16.msrb.mxu3 %v6510_v46  ;;  %v6491_v43 = vld [vmem:[%s6999_s6 + $0x160] sm:$0xff] }
  0x4e   : > { %3267 = vmatpush.bf16.msrb.mxu0 %v6485_v49  ;;  %v4973_v44 = vld [vmem:[#allocation2 + $0x280] sm:$0xf]  ;;  %v6271_v46 = vld [vmem:[#allocation2 + $0x284] sm:$0xf]  ;;  %v6280_v49 = vld [vmem:[#allocation2 + $0x2c4] sm:$0xf0] }
  0x4f   : > { %3356 = vmatpush.bf16.msrb.mxu1 %v6493_v51  ;;  %v6279_v45 = vld [vmem:[#allocation2 + $0x2bc] sm:$0xf0]  ;;  %v4975_v47 = vld [vmem:[#allocation2 + $0x2c0] sm:$0xf0]  ;;  %v4983_v51 = vld [vmem:[#allocation2 + $0x2c8] sm:$0xf0] }
  0x50   : > { %3445 = vmatpush.bf16.msrb.mxu2 %v6501_v48  ;;  %v4981_v48 = vld [vmem:[#allocation2 + $0x288] sm:$0xf]  ;;  %v4974_v52 = vor.u32 %v6279_v45, %v4973_v44  ;;  %v4978_v53 = vor.u32 %v6271_v46, %v4975_v47  ;;  %v5167_v23 = vld [vmem:[#allocation2 + $0x440] sm:$0xf0]  ;;  %v6489_v45 = vld [vmem:[%s6999_s6 + $0x150] sm:$0xff] }
  0x51   : > { %3534 = vmatpush.bf16.msrb.mxu3 %v6509_v50  ;;  %v6272_v50 = vld [vmem:[#allocation2 + $0x28c] sm:$0xf]  ;;  %v4982_v54 = vor.u32 %v6280_v49, %v4981_v48  ;;  %v5170_v29 = vor.u32 %v6319_v22, %v5167_v23  ;;  %v5229_v46 = vld [vmem:[#allocation2 + $0x480] sm:$0xf]  ;;  %v6335_v48 = vld [vmem:[#allocation2 + $0x484] sm:$0xf] }
  0x52   : > { %3268 = vmatpush.bf16.msrb.mxu0 %v6484_v13  ;;  %v4986_v55 = vor.u32 %v6272_v50, %v4983_v51  ;;  %v6312_v13 = vld [vmem:[#allocation2 + $0x3c4] sm:$0xf0]  ;;  %v6343_v47 = vld [vmem:[#allocation2 + $0x4bc] sm:$0xf0]  ;;  %v5231_v49 = vld [vmem:[#allocation2 + $0x4c0] sm:$0xf0] }
  0x53   : > { %3357 = vmatpush.bf16.msrb.mxu1 %v6492_v15  ;;  %v5111_v15 = vld [vmem:[#allocation2 + $0x3c8] sm:$0xf0]  ;;  %v5237_v50 = vld [vmem:[#allocation2 + $0x488] sm:$0xf]  ;;  %v5230_v56 = vor.u32 %v6343_v47, %v5229_v46  ;;  %v5234_v57 = vor.u32 %v6335_v48, %v5231_v49 }
  0x54   : > { %3446 = vmatpush.bf16.msrb.mxu2 %v6500_v12  ;;  %v5109_v12 = vld [vmem:[#allocation2 + $0x388] sm:$0xf]  ;;  %v5367_v46 = vld [vmem:[#allocation2 + $0x5c8] sm:$0xf0] }
  0x55   : > { %3535 = vmatpush.bf16.msrb.mxu3 %v6508_v14  ;;  %v6304_v14 = vld [vmem:[#allocation2 + $0x38c] sm:$0xf]  ;;  %v5110_v18 = vor.u32 %v6312_v13, %v5109_v12  ;;  %v6344_v51 = vld [vmem:[#allocation2 + $0x4c4] sm:$0xf0] }
  0x56   : > { %3269 = vmatpush.bf16.msrb.mxu0 %v6483_v41  ;;  %v5114_v19 = vor.u32 %v6304_v14, %v5111_v15  ;;  %v5301_v12 = vld [vmem:[#allocation2 + $0x508] sm:$0xf]  ;;  %v6352_v14 = vld [vmem:[#allocation2 + $0x50c] sm:$0xf] }
  0x57   : > { %3358 = vmatpush.bf16.msrb.mxu1 %v6491_v43  ;;  %v6360_v13 = vld [vmem:[#allocation2 + $0x544] sm:$0xf0]  ;;  %v5303_v15 = vld [vmem:[#allocation2 + $0x548] sm:$0xf0] }
  0x58   : > { %3447 = vmatpush.bf16.msrb.mxu2 %v6499_v40  ;;  %v5302_v23 = vor.u32 %v6360_v13, %v5301_v12 }
  0x59   : > { %2923 = vmatmul.bf16.gmra.mxu0 %v4718_v60  ;;  %3536 = vmatpush.bf16.msrb.mxu3 %v6507_v42  ;;  %v5045_v60 = vld [vmem:[#allocation2 + $0x308] sm:$0xf] }
  0x5a   : > { %3012 = vmatmul.bf16.gmra.mxu1 %v4722_v61  ;;  %v6296_v61 = vld [vmem:[#allocation2 + $0x344] sm:$0xf0]  ;;  %3270 = vmatpush.bf16.msrb.mxu0 %v6482_v5 }
  0x5b   : > { %3101 = vmatmul.bf16.gmra.mxu2 %v4726_v62  ;;  %v6288_v62 = vld [vmem:[#allocation2 + $0x30c] sm:$0xf]  ;;  %v5046_v2 = vor.u32 %v6296_v61, %v5045_v60  ;;  %3359 = vmatpush.bf16.msrb.mxu1 %v6490_v7  ;;  %v5238_v61 = vor.u32 %v6344_v51, %v5237_v50 }
  0x5c   : > { %3190 = vmatmul.bf16.gmra.mxu3 %v4730_v63  ;;  %v5047_v63 = vld [vmem:[#allocation2 + $0x348] sm:$0xf0]  ;;  %3448 = vmatpush.bf16.msrb.mxu2 %v6498_v4 }
  0x5d   : > { %v5050_v3 = vor.u32 %v6288_v62, %v5047_v63  ;;  %3537 = vmatpush.bf16.msrb.mxu3 %v6506_v6 }
  0x5f   : > { %3360 = vmatpush.bf16.msrb.mxu1 %v6489_v45  ;;  %v6368_v45 = vld [vmem:[#allocation2 + $0x58c] sm:$0xf] }
  0x60   : > { %3449 = vmatpush.bf16.msrb.mxu2 %v6497_v35 }
  0x69   : > { %2928 = vmatmul.bf16.gmra.mxu0 %v4782_v8  ;;  %v5101_v8 = vld [vmem:[#allocation2 + $0x380] sm:$0xf] }
  0x6a   : > { %3017 = vmatmul.bf16.gmra.mxu1 %v4786_v9  ;;  %v6311_v9 = vld [vmem:[#allocation2 + $0x3bc] sm:$0xf0] }
  0x6b   : > { %3106 = vmatmul.bf16.gmra.mxu2 %v4790_v10  ;;  %v6303_v10 = vld [vmem:[#allocation2 + $0x384] sm:$0xf]  ;;  %v5102_v16 = vor.u32 %v6311_v9, %v5101_v8  ;;  %v5293_v8 = vld [vmem:[#allocation2 + $0x500] sm:$0xf] }
  0x6c   : > { %3195 = vmatmul.bf16.gmra.mxu3 %v4794_v11  ;;  %v5103_v11 = vld [vmem:[#allocation2 + $0x3c0] sm:$0xf0]  ;;  %v6359_v9 = vld [vmem:[#allocation2 + $0x53c] sm:$0xf0] }
  0x6d   : > { %v5106_v17 = vor.u32 %v6303_v10, %v5103_v11  ;;  %v6351_v10 = vld [vmem:[#allocation2 + $0x504] sm:$0xf] }
  0x6e   : > { %v5295_v11 = vld [vmem:[#allocation2 + $0x540] sm:$0xf0] }
  0x79   : > { %2933 = vmatmul.bf16.gmra.mxu0 %v4846_v24  ;;  %v5173_v24 = vld [vmem:[#allocation2 + $0x408] sm:$0xf] }
  0x7a   : > { %3022 = vmatmul.bf16.gmra.mxu1 %v4850_v25  ;;  %v6328_v25 = vld [vmem:[#allocation2 + $0x444] sm:$0xf0] }
  0x7b   : > { %3111 = vmatmul.bf16.gmra.mxu2 %v4854_v26  ;;  %v6320_v26 = vld [vmem:[#allocation2 + $0x40c] sm:$0xf]  ;;  %v5174_v32 = vor.u32 %v6328_v25, %v5173_v24  ;;  %v5306_v24 = vor.u32 %v6352_v14, %v5303_v15 }
  0x7c   : > { %3200 = vmatmul.bf16.gmra.mxu3 %v4858_v27  ;;  %v5175_v27 = vld [vmem:[#allocation2 + $0x448] sm:$0xf0] }
  0x7d   : > { %v5178_v33 = vor.u32 %v6320_v26, %v5175_v27  ;;  %v6496_v27 = vld [vmem:[%s6999_s6 + $0x188] sm:$0xff] }
  0x7e   : > { %3450 = vmatpush.bf16.msrb.mxu2 %v6496_v27 }
  0x89   : > { %2938 = vmatmul.bf16.gmra.mxu0 %v4910_v36  ;;  %v6481_v36 = vld [vmem:[%s6999_s6 + $0x110] sm:$0xff] }
  0x8a   : > { %3027 = vmatmul.bf16.gmra.mxu1 %v4914_v37  ;;  %v6505_v37 = vld [vmem:[%s6999_s6 + $0x1d0] sm:$0xff]  ;;  %3271 = vmatpush.bf16.msrb.mxu0 %v6481_v36 }
  0x8b   : > { %3116 = vmatmul.bf16.gmra.mxu2 %v4918_v38  ;;  %3538 = vmatpush.bf16.msrb.mxu3 %v6505_v37  ;;  %v6488_v37 = vld [vmem:[%s6999_s6 + $0x148] sm:$0xff] }
  0x8c   : > { %3205 = vmatmul.bf16.gmra.mxu3 %v4922_v39  ;;  %3361 = vmatpush.bf16.msrb.mxu1 %v6488_v37  ;;  %v6399_v37 = vld [vmem:[#allocation2 + $0x684] sm:$0xf] }
  0x99   : > { %2943 = vmatmul.bf16.gmra.mxu0 %v4974_v52  ;;  %v6336_v52 = vld [vmem:[#allocation2 + $0x48c] sm:$0xf] }
  0x9a   : > { %3032 = vmatmul.bf16.gmra.mxu1 %v4978_v53  ;;  %v5239_v53 = vld [vmem:[#allocation2 + $0x4c8] sm:$0xf0] }
  0x9b   : > { %3121 = vmatmul.bf16.gmra.mxu2 %v4982_v54  ;;  %v5242_v62 = vor.u32 %v6336_v52, %v5239_v53 }
  0x9c   : > { %3210 = vmatmul.bf16.gmra.mxu3 %v4986_v55 }
  0xa9   : > { %2948 = vmatmul.bf16.gmra.mxu0 %v5038_v0 }
  0xaa   : > { %3037 = vmatmul.bf16.gmra.mxu1 %v5042_v1 }
  0xab   : > { %3126 = vmatmul.bf16.gmra.mxu2 %v5046_v2 }
  0xac   : > { %3215 = vmatmul.bf16.gmra.mxu3 %v5050_v3 }
  0xb9   : > { %2953 = vmatmul.bf16.gmra.mxu0 %v5102_v16 }
  0xba   : > { %3042 = vmatmul.bf16.gmra.mxu1 %v5106_v17 }
  0xbb   : > { %3131 = vmatmul.bf16.gmra.mxu2 %v5110_v18  ;;  %v5294_v18 = vor.u32 %v6359_v9, %v5293_v8  ;;  %v6392_v8 = vld [vmem:[#allocation2 + $0x644] sm:$0xf0]  ;;  %v6384_v9 = vld [vmem:[#allocation2 + $0x60c] sm:$0xf] }
  0xbc   : > { %3220 = vmatmul.bf16.gmra.mxu3 %v5114_v19  ;;  %v5298_v19 = vor.u32 %v6351_v10, %v5295_v11  ;;  %v5431_v10 = vld [vmem:[#allocation2 + $0x648] sm:$0xf0] }
  0xc6   : > { %v2919_v30 = vpop.f32.mrf.mxu0 }
  0xc7   : > { %v3008_v31 = vpop.f32.mrf.mxu1 }
  0xc8   : > { %v3009_v34 = vadd.f32 %v3008_v31, %v2919_v30 }
  0xc9   : > { %2958 = vmatmul.bf16.gmra.mxu0 %v5166_v28  ;;  %v6480_v28 = vld [vmem:[%s6999_s6 + $0x108] sm:$0xff] }
  0xca   : > { %3047 = vmatmul.bf16.gmra.mxu1 %v5170_v29  ;;  %v6504_v29 = vld [vmem:[%s6999_s6 + $0x1c8] sm:$0xff]  ;;  %3272 = vmatpush.bf16.msrb.mxu0 %v6480_v28 }
  0xcb   : > { %3136 = vmatmul.bf16.gmra.mxu2 %v5174_v32  ;;  %3539 = vmatpush.bf16.msrb.mxu3 %v6504_v29 }
  0xcc   : > { %3225 = vmatmul.bf16.gmra.mxu3 %v5178_v33 }
  0xce   : > { %v3097_v38 = vpop.f32.mrf.mxu2  ;;  %v2921_v41 = vpop.f32.mrf.mxu0 }
  0xcf   : > { %v3186_v39 = vpop.f32.mrf.mxu3  ;;  %v3098_v40 = vadd.f32 %v3097_v38, %v3009_v34  ;;  %v3010_v42 = vpop.f32.mrf.mxu1  ;;  %v5357_v38 = vld [vmem:[#allocation2 + $0x580] sm:$0xf] }
  0xd0   : > { %v3011_v43 = vadd.f32 %v3010_v42, %v2921_v41  ;;  %v5359_v41 = vld [vmem:[#allocation2 + $0x5c0] sm:$0xf0]  ;;  %v5365_v42 = vld [vmem:[#allocation2 + $0x588] sm:$0xf] }
  0xd1   : > { %v7060_v44 = vadd.f32 %v3186_v39, %v3098_v40  ;;  %v6375_v39 = vld [vmem:[#allocation2 + $0x5bc] sm:$0xf0]  ;;  %v6367_v40 = vld [vmem:[#allocation2 + $0x584] sm:$0xf] }
  0xd2   : > { %v5358_v49 = vor.u32 %v6375_v39, %v5357_v38  ;;  %v5362_v50 = vor.u32 %v6367_v40, %v5359_v41  ;;  %v5487_v38 = vld [vmem:[#allocation2 + $0x6c0] sm:$0xf0]  ;;  %v5493_v39 = vld [vmem:[#allocation2 + $0x688] sm:$0xf]  ;;  %v6400_v41 = vld [vmem:[#allocation2 + $0x68c] sm:$0xf] }
  0xd3   : > { %v6408_v40 = vld [vmem:[#allocation2 + $0x6c4] sm:$0xf0] }
  0xd6   : > { %v3099_v54 = vpop.f32.mrf.mxu2  ;;  %v2924_v59 = vpop.f32.mrf.mxu0 }
  0xd7   : > { %v3188_v55 = vpop.f32.mrf.mxu3  ;;  %v3100_v58 = vadd.f32 %v3099_v54, %v3011_v43  ;;  %v3013_v60 = vpop.f32.mrf.mxu1  ;;  %v6376_v43 = vld [vmem:[#allocation2 + $0x5c4] sm:$0xf0] }
  0xd8   : > { %v3014_v63 = vadd.f32 %v3013_v60, %v2924_v59  ;;  %v5366_v54 = vor.u32 %v6376_v43, %v5365_v42  ;;  %v5495_v42 = vld [vmem:[#allocation2 + $0x6c8] sm:$0xf0] }
  0xd9   : > { %v7063_v0 = vadd.f32 %v3188_v55, %v3100_v58  ;;  %2963 = vmatmul.bf16.gmra.mxu0 %v5230_v56  ;;  %v5370_v55 = vor.u32 %v6368_v45, %v5367_v46 }
  0xda   : > { %3052 = vmatmul.bf16.gmra.mxu1 %v5234_v57 }
  0xdb   : > { %3141 = vmatmul.bf16.gmra.mxu2 %v5238_v61 }
  0xdc   : > { %3230 = vmatmul.bf16.gmra.mxu3 %v5242_v62 }
  0xde   : > { %v3102_v1 = vpop.f32.mrf.mxu2  ;;  %v2926_v4 = vpop.f32.mrf.mxu0 }
  0xdf   : > { %v3191_v2 = vpop.f32.mrf.mxu3  ;;  %v3103_v3 = vadd.f32 %v3102_v1, %v3014_v63  ;;  %v3015_v5 = vpop.f32.mrf.mxu1 }
  0xe0   : > { %v3016_v6 = vadd.f32 %v3015_v5, %v2926_v4  ;;  %v6383_v4 = vld [vmem:[#allocation2 + $0x604] sm:$0xf] }
  0xe1   : > { %v7065_v7 = vadd.f32 %v3191_v2, %v3103_v3  ;;  %v5421_v2 = vld [vmem:[#allocation2 + $0x600] sm:$0xf]  ;;  %v5423_v5 = vld [vmem:[#allocation2 + $0x640] sm:$0xf0] }
  0xe2   : > { %v6391_v3 = vld [vmem:[#allocation2 + $0x63c] sm:$0xf0]  ;;  %v5426_v14 = vor.u32 %v6383_v4, %v5423_v5  ;;  %v5551_v4 = vld [vmem:[#allocation2 + $0x740] sm:$0xf0]  ;;  %v5557_v5 = vld [vmem:[#allocation2 + $0x708] sm:$0xf] }
  0xe3   : > { %v5422_v13 = vor.u32 %v6391_v3, %v5421_v2  ;;  %v6423_v2 = vld [vmem:[#allocation2 + $0x73c] sm:$0xf0]  ;;  %v6415_v3 = vld [vmem:[#allocation2 + $0x704] sm:$0xf] }
  0xe6   : > { %v3104_v16 = vpop.f32.mrf.mxu2  ;;  %v2929_v21 = vpop.f32.mrf.mxu0 }
  0xe7   : > { %v3193_v17 = vpop.f32.mrf.mxu3  ;;  %v3105_v20 = vadd.f32 %v3104_v16, %v3016_v6  ;;  %v3018_v22 = vpop.f32.mrf.mxu1  ;;  %v5429_v6 = vld [vmem:[#allocation2 + $0x608] sm:$0xf] }
  0xe8   : > { %v3019_v25 = vadd.f32 %v3018_v22, %v2929_v21  ;;  %v6495_v22 = vld [vmem:[%s6999_s6 + $0x180] sm:$0xff] }
  0xe9   : > { %v7067_v26 = vadd.f32 %v3193_v17, %v3105_v20  ;;  %2968 = vmatmul.bf16.gmra.mxu0 %v5294_v18  ;;  %v5430_v18 = vor.u32 %v6392_v8, %v5429_v6  ;;  %3451 = vmatpush.bf16.msrb.mxu2 %v6495_v22  ;;  %v6424_v6 = vld [vmem:[#allocation2 + $0x744] sm:$0xf0]  ;;  %v6416_v8 = vld [vmem:[#allocation2 + $0x70c] sm:$0xf]  ;;  %v6534_v22 = vld [vmem:[%s6999_s6 + $0x2b8] sm:$0xff] }
  0xea   : > { %3057 = vmatmul.bf16.gmra.mxu1 %v5298_v19  ;;  %v5434_v19 = vor.u32 %v6384_v9, %v5431_v10  ;;  %v5559_v9 = vld [vmem:[#allocation2 + $0x748] sm:$0xf0] }
  0xeb   : > { %3146 = vmatmul.bf16.gmra.mxu2 %v5302_v23  ;;  %v6479_v23 = vld [vmem:[%s6999_s6 + $0x100] sm:$0xff] }
  0xec   : > { %3235 = vmatmul.bf16.gmra.mxu3 %v5306_v24  ;;  %v6503_v24 = vld [vmem:[%s6999_s6 + $0x1c0] sm:$0xff]  ;;  %3273 = vmatpush.bf16.msrb.mxu0 %v6479_v23  ;;  %v6518_v23 = vld [vmem:[%s6999_s6 + $0x238] sm:$0xff] }
  0xed   : > { %3540 = vmatpush.bf16.msrb.mxu3 %v6503_v24  ;;  %v6542_v24 = vld [vmem:[%s6999_s6 + $0x2f8] sm:$0xff]  ;;  %3800 = vmatpush.bf16.msra.mxu2 %v6534_v22 }
  0xee   : > { %v3107_v30 = vpop.f32.mrf.mxu2  ;;  %v2931_v33 = vpop.f32.mrf.mxu0 }
  0xef   : > { %v3196_v31 = vpop.f32.mrf.mxu3  ;;  %v3108_v32 = vadd.f32 %v3107_v30, %v3019_v25  ;;  %v3020_v34 = vpop.f32.mrf.mxu1 }
  0xf0   : > { %v3021_v35 = vadd.f32 %v3020_v34, %v2931_v33  ;;  %v6487_v33 = vld [vmem:[%s6999_s6 + $0x140] sm:$0xff]  ;;  %3622 = vmatpush.bf16.msra.mxu0 %v6518_v23 }
  0xf1   : > { %v7072_v36 = vadd.f32 %v3196_v31, %v3108_v32  ;;  %v5485_v34 = vld [vmem:[#allocation2 + $0x680] sm:$0xf]  ;;  %3362 = vmatpush.bf16.msrb.mxu1 %v6487_v33  ;;  %3889 = vmatpush.bf16.msra.mxu3 %v6542_v24 }
  0xf6   : > { %v3109_v47 = vpop.f32.mrf.mxu2  ;;  %v2934_v52 = vpop.f32.mrf.mxu0 }
  0xf7   : > { %v3198_v48 = vpop.f32.mrf.mxu3  ;;  %v3110_v51 = vadd.f32 %v3109_v47, %v3021_v35  ;;  %v3023_v53 = vpop.f32.mrf.mxu1  ;;  %v6407_v35 = vld [vmem:[#allocation2 + $0x6bc] sm:$0xf0]  ;;  %v5490_v47 = vor.u32 %v6399_v37, %v5487_v38  ;;  %v6431_v38 = vld [vmem:[#allocation2 + $0x784] sm:$0xf] }
  0xf8   : > { %v3024_v56 = vadd.f32 %v3023_v53, %v2934_v52  ;;  %v5486_v46 = vor.u32 %v6407_v35, %v5485_v34  ;;  %v5498_v52 = vor.u32 %v6400_v41, %v5495_v42  ;;  %v6526_v34 = vld [vmem:[%s6999_s6 + $0x278] sm:$0xff]  ;;  %v5613_v35 = vld [vmem:[#allocation2 + $0x780] sm:$0xf]  ;;  %v6440_v41 = vld [vmem:[#allocation2 + $0x7c4] sm:$0xf0] }
  0xf9   : > { %v7075_v57 = vadd.f32 %v3198_v48, %v3110_v51  ;;  %2973 = vmatmul.bf16.gmra.mxu0 %v5358_v49  ;;  %v5494_v51 = vor.u32 %v6408_v40, %v5493_v39  ;;  %v6439_v37 = vld [vmem:[#allocation2 + $0x7bc] sm:$0xf0]  ;;  %v5615_v39 = vld [vmem:[#allocation2 + $0x7c0] sm:$0xf0]  ;;  %v5621_v40 = vld [vmem:[#allocation2 + $0x788] sm:$0xf]  ;;  %3711 = vmatpush.bf16.msra.mxu1 %v6526_v34 }
  0xfa   : > { %3062 = vmatmul.bf16.gmra.mxu1 %v5362_v50  ;;  %v6432_v42 = vld [vmem:[#allocation2 + $0x78c] sm:$0xf] }
  0xfb   : > { %3151 = vmatmul.bf16.gmra.mxu2 %v5366_v54 }
  0xfc   : > { %3240 = vmatmul.bf16.gmra.mxu3 %v5370_v55 }
  0xfe   : > { %v3112_v58 = vpop.f32.mrf.mxu2  ;;  %v2936_v61 = vpop.f32.mrf.mxu0 }
  0xff   : > { %v3201_v59 = vpop.f32.mrf.mxu3  ;;  %v3113_v60 = vadd.f32 %v3112_v58, %v3024_v56  ;;  %v3025_v62 = vpop.f32.mrf.mxu1 }
 0x100   : > { %v3026_v63 = vadd.f32 %v3025_v62, %v2936_v61 }
 0x101   : > { %v7077_v1 = vadd.f32 %v3201_v59, %v3113_v60 }
 0x106   : > { %v3114_v11 = vpop.f32.mrf.mxu2  ;;  %v2939_v16 = vpop.f32.mrf.mxu0 }
 0x107   : > { %v3203_v12 = vpop.f32.mrf.mxu3  ;;  %v3115_v15 = vadd.f32 %v3114_v11, %v3026_v63  ;;  %v3028_v17 = vpop.f32.mrf.mxu1  ;;  %v5549_v63 = vld [vmem:[#allocation2 + $0x700] sm:$0xf] }
 0x108   : > { %v3029_v20 = vadd.f32 %v3028_v17, %v2939_v16  ;;  %v5558_v17 = vor.u32 %v6424_v6, %v5557_v5  ;;  %v6201_v5 = vld [vmem:[#allocation2 + $0x4c] sm:$0xf0]  ;;  %v6193_v6 = vld [vmem:[#allocation2 + $0x14] sm:$0xf] }
 0x109   : > { %v7079_v21 = vadd.f32 %v3203_v12, %v3115_v15  ;;  %2978 = vmatmul.bf16.gmra.mxu0 %v5422_v13  ;;  %v5550_v12 = vor.u32 %v6423_v2, %v5549_v63  ;;  %v5554_v13 = vor.u32 %v6415_v3, %v5551_v4  ;;  %v4669_v4 = vld [vmem:[#allocation2 + $0x10] sm:$0xf] }
 0x10a   : > { %3067 = vmatmul.bf16.gmra.mxu1 %v5426_v14 }
 0x10b   : > { %3156 = vmatmul.bf16.gmra.mxu2 %v5430_v18  ;;  %v5562_v18 = vor.u32 %v6416_v8, %v5559_v9  ;;  %v4671_v8 = vld [vmem:[#allocation2 + $0x50] sm:$0xf0]  ;;  %v4677_v9 = vld [vmem:[#allocation2 + $0x18] sm:$0xf] }
 0x10c   : > { %3245 = vmatmul.bf16.gmra.mxu3 %v5434_v19 }
 0x10e   : > { %v3117_v25 = vpop.f32.mrf.mxu2  ;;  %v2941_v29 = vpop.f32.mrf.mxu0 }
 0x10f   : > { %v3206_v27 = vpop.f32.mrf.mxu3  ;;  %v3118_v28 = vadd.f32 %v3117_v25, %v3029_v20  ;;  %v3030_v30 = vpop.f32.mrf.mxu1 }
 0x110   : > { %v3031_v31 = vadd.f32 %v3030_v30, %v2941_v29 }
 0x111   : > { %v7084_v32 = vadd.f32 %v3206_v27, %v3118_v28 }
 0x116   : > { %v3119_v43 = vpop.f32.mrf.mxu2  ;;  %v2944_v49 = vpop.f32.mrf.mxu0 }
 0x117   : > { %v3208_v45 = vpop.f32.mrf.mxu3  ;;  %v3120_v48 = vadd.f32 %v3119_v43, %v3031_v31  ;;  %v3033_v50 = vpop.f32.mrf.mxu1  ;;  %v5623_v43 = vld [vmem:[#allocation2 + $0x7c8] sm:$0xf0] }
 0x118   : > { %v3034_v53 = vadd.f32 %v3033_v50, %v2944_v49 }
 0x119   : > { %v7087_v54 = vadd.f32 %v3208_v45, %v3120_v48  ;;  %2983 = vmatmul.bf16.gmra.mxu0 %v5486_v46  ;;  %v5618_v48 = vor.u32 %v6431_v38, %v5615_v39 }
 0x11a   : > { %3072 = vmatmul.bf16.gmra.mxu1 %v5490_v47  ;;  %v5614_v47 = vor.u32 %v6439_v37, %v5613_v35 }
 0x11b   : > { %3161 = vmatmul.bf16.gmra.mxu2 %v5494_v51 }
 0x11c   : > { %3250 = vmatmul.bf16.gmra.mxu3 %v5498_v52  ;;  %v5622_v52 = vor.u32 %v6440_v41, %v5621_v40  ;;  %v6525_v40 = vld [vmem:[%s6999_s6 + $0x270] sm:$0xff] }
 0x11d   : > { %v4733_v41 = vld [vmem:[#allocation2 + $0x90] sm:$0xf]  ;;  %3712 = vmatpush.bf16.msra.mxu1 %v6525_v40  ;;  %v6516_v40 = vld [vmem:[%s6999_s6 + $0x228] sm:$0xff] }
 0x11e   : > { %v3122_v55 = vpop.f32.mrf.mxu2  ;;  %v2946_v59 = vpop.f32.mrf.mxu0 }
 0x11f   : > { %v3211_v56 = vpop.f32.mrf.mxu3  ;;  %v3123_v58 = vadd.f32 %v3122_v55, %v3034_v53  ;;  %v3035_v60 = vpop.f32.mrf.mxu1  ;;  %v5626_v53 = vor.u32 %v6432_v42, %v5623_v43  ;;  %v6217_v42 = vld [vmem:[#allocation2 + $0xcc] sm:$0xf0]  ;;  %v6209_v43 = vld [vmem:[#allocation2 + $0x94] sm:$0xf] }
 0x120   : > { %v3036_v61 = vadd.f32 %v3035_v60, %v2946_v59 }
 0x121   : > { %v7089_v62 = vadd.f32 %v3211_v56, %v3123_v58 }
 0x126   : > { %v3124_v10 = vpop.f32.mrf.mxu2  ;;  %v2949_v15 = vpop.f32.mrf.mxu0 }
 0x127   : > { %v3213_v11 = vpop.f32.mrf.mxu3  ;;  %v3125_v14 = vadd.f32 %v3124_v10, %v3036_v61  ;;  %v3038_v16 = vpop.f32.mrf.mxu1  ;;  %v6202_v10 = vld [vmem:[#allocation2 + $0x54] sm:$0xf0] }
 0x128   : > { %v3039_v19 = vadd.f32 %v3038_v16, %v2949_v15  ;;  %v4670_v15 = vor.u32 %v6201_v5, %v4669_v4  ;;  %v4674_v16 = vor.u32 %v6193_v6, %v4671_v8  ;;  %v4678_v22 = vor.u32 %v6202_v10, %v4677_v9 }
 0x129   : > { %v7091_v20 = vadd.f32 %v3213_v11, %v3125_v14  ;;  %2988 = vmatmul.bf16.gmra.mxu0 %v5550_v12  ;;  %v6194_v11 = vld [vmem:[#allocation2 + $0x1c] sm:$0xf] }
 0x12a   : > { %3077 = vmatmul.bf16.gmra.mxu1 %v5554_v13  ;;  %v4679_v12 = vld [vmem:[#allocation2 + $0x58] sm:$0xf0] }
 0x12b   : > { %3166 = vmatmul.bf16.gmra.mxu2 %v5558_v17  ;;  %v4682_v23 = vor.u32 %v6194_v11, %v4679_v12  ;;  %v4797_v12 = vld [vmem:[#allocation2 + $0x110] sm:$0xf] }
 0x12c   : > { %3255 = vmatmul.bf16.gmra.mxu3 %v5562_v18 }
 0x12e   : > { %v3127_v25 = vpop.f32.mrf.mxu2  ;;  %v2951_v29 = vpop.f32.mrf.mxu0 }
 0x12f   : > { %v3216_v27 = vpop.f32.mrf.mxu3  ;;  %v3128_v28 = vadd.f32 %v3127_v25, %v3039_v19  ;;  %v3040_v30 = vpop.f32.mrf.mxu1 }
 0x130   : > { %v3041_v31 = vadd.f32 %v3040_v30, %v2951_v29  ;;  %v6541_v29 = vld [vmem:[%s6999_s6 + $0x2f0] sm:$0xff] }
 0x131   : > { %v7096_v33 = vadd.f32 %v3216_v27, %v3128_v28  ;;  %v6533_v27 = vld [vmem:[%s6999_s6 + $0x2b0] sm:$0xff]  ;;  %3890 = vmatpush.bf16.msra.mxu3 %v6541_v29 }
 0x132   : > { %v6517_v28 = vld [vmem:[%s6999_s6 + $0x230] sm:$0xff]  ;;  %3801 = vmatpush.bf16.msra.mxu2 %v6533_v27 }
 0x133   : > { %3623 = vmatpush.bf16.msra.mxu0 %v6517_v28 }
 0x136   : > { %v3129_v45 = vpop.f32.mrf.mxu2  ;;  %v2954_v50 = vpop.f32.mrf.mxu0 }
 0x137   : > { %v3218_v46 = vpop.f32.mrf.mxu3  ;;  %v3130_v49 = vadd.f32 %v3129_v45, %v3041_v31  ;;  %v3043_v51 = vpop.f32.mrf.mxu1  ;;  %v4735_v45 = vld [vmem:[#allocation2 + $0xd0] sm:$0xf0]  ;;  %3624 = vmatpush.bf16.msra.mxu0 %v6516_v40 }
 0x138   : > { %v3044_v55 = vadd.f32 %v3043_v51, %v2954_v50 }
 0x139   : > { %v7099_v56 = vadd.f32 %v3218_v46, %v3130_v49  ;;  %2993 = vmatmul.bf16.gmra.mxu0 %v5614_v47  ;;  %v4741_v46 = vld [vmem:[#allocation2 + $0x98] sm:$0xf]  ;;  %v4743_v49 = vld [vmem:[#allocation2 + $0xd8] sm:$0xf0] }
 0x13a   : > { %3082 = vmatmul.bf16.gmra.mxu1 %v5618_v48  ;;  %v6218_v47 = vld [vmem:[#allocation2 + $0xd4] sm:$0xf0]  ;;  %v6210_v48 = vld [vmem:[#allocation2 + $0x9c] sm:$0xf] }
 0x13b   : > { %3171 = vmatmul.bf16.gmra.mxu2 %v5622_v52  ;;  %v4734_v52 = vor.u32 %v6217_v42, %v4733_v41  ;;  %v6540_v41 = vld [vmem:[%s6999_s6 + $0x2e8] sm:$0xff] }
 0x13c   : > { %3260 = vmatmul.bf16.gmra.mxu3 %v5626_v53  ;;  %v4738_v53 = vor.u32 %v6209_v43, %v4735_v45 }
 0x13d   : > { %3891 = vmatpush.bf16.msra.mxu3 %v6540_v41 }
 0x13e   : > { %v3132_v58 = vpop.f32.mrf.mxu2  ;;  %v2956_v61 = vpop.f32.mrf.mxu0 }
 0x13f   : > { %v3221_v59 = vpop.f32.mrf.mxu3  ;;  %v3133_v60 = vadd.f32 %v3132_v58, %v3044_v55  ;;  %v3045_v63 = vpop.f32.mrf.mxu1 }
 0x140   : > { %v3046_v2 = vadd.f32 %v3045_v63, %v2956_v61  ;;  %v4746_v61 = vor.u32 %v6210_v48, %v4743_v49 }
 0x141   : > { %v7101_v3 = vadd.f32 %v3221_v59, %v3133_v60  ;;  %v4742_v60 = vor.u32 %v6218_v47, %v4741_v46 }
 0x146   : > { %v3134_v13 = vpop.f32.mrf.mxu2  ;;  %v2959_v18 = vpop.f32.mrf.mxu0 }
 0x147   : > { %v3223_v14 = vpop.f32.mrf.mxu3  ;;  %v3135_v17 = vadd.f32 %v3134_v13, %v3046_v2  ;;  %v3048_v19 = vpop.f32.mrf.mxu1  ;;  %v6233_v13 = vld [vmem:[#allocation2 + $0x14c] sm:$0xf0] }
 0x148   : > { %v3049_v24 = vadd.f32 %v3048_v19, %v2959_v18  ;;  %v6226_v18 = vld [vmem:[#allocation2 + $0x11c] sm:$0xf] }
 0x149   : > { %v7103_v25 = vadd.f32 %v3223_v14, %v3135_v17  ;;  %3274 = vmatmul.bf16.vlgmr.msrb.gmra.mxu0 %v4670_v15  ;;  %v6225_v14 = vld [vmem:[#allocation2 + $0x114] sm:$0xf]  ;;  %v6234_v17 = vld [vmem:[#allocation2 + $0x154] sm:$0xf0]  ;;  %v4807_v19 = vld [vmem:[#allocation2 + $0x158] sm:$0xf0] }
 0x14a   : > { %3363 = vmatmul.bf16.vlgmr.msrb.gmra.mxu1 %v4674_v16  ;;  %v4799_v15 = vld [vmem:[#allocation2 + $0x150] sm:$0xf0]  ;;  %v4805_v16 = vld [vmem:[#allocation2 + $0x118] sm:$0xf] }
 0x14b   : > { %3452 = vmatmul.bf16.vlgmr.msrb.gmra.mxu2 %v4678_v22  ;;  %v4802_v27 = vor.u32 %v6225_v14, %v4799_v15 }
 0x14c   : > { %3541 = vmatmul.bf16.vlgmr.msrb.gmra.mxu3 %v4682_v23 }
 0x14e   : > { %v3137_v30 = vpop.f32.mrf.mxu2  ;;  %v2961_v35 = vpop.f32.mrf.mxu0 }
 0x14f   : > { %v3226_v31 = vpop.f32.mrf.mxu3  ;;  %v3138_v34 = vadd.f32 %v3137_v30, %v3049_v24  ;;  %v3050_v37 = vpop.f32.mrf.mxu1  ;;  %v4798_v24 = vor.u32 %v6233_v13, %v4797_v12 }
 0x150   : > { %v3051_v38 = vadd.f32 %v3050_v37, %v2961_v35 }
 0x151   : > { %v7108_v39 = vadd.f32 %v3226_v31, %v3138_v34  ;;  %v4806_v31 = vor.u32 %v6234_v17, %v4805_v16  ;;  %v4810_v34 = vor.u32 %v6226_v18, %v4807_v19 }
 0x156   : > { %v3139_v50 = vpop.f32.mrf.mxu2  ;;  %v2964_v58 = vpop.f32.mrf.mxu0 }
 0x157   : > { %v3228_v51 = vpop.f32.mrf.mxu3  ;;  %v3140_v55 = vadd.f32 %v3139_v50, %v3051_v38  ;;  %v3053_v59 = vpop.f32.mrf.mxu1  ;;  %v6532_v38 = vld [vmem:[%s6999_s6 + $0x2a8] sm:$0xff] }
 0x158   : > { %v3054_v63 = vadd.f32 %v3053_v59, %v2964_v58  ;;  %3802 = vmatpush.bf16.msra.mxu2 %v6532_v38  ;;  %v6524_v50 = vld [vmem:[%s6999_s6 + $0x268] sm:$0xff]  ;;  %v4869_v58 = vld [vmem:[#allocation2 + $0x198] sm:$0xf]  ;;  %v4935_v38 = vld [vmem:[#allocation2 + $0x258] sm:$0xf0] }
 0x159   : > { %v7111_v2 = vadd.f32 %v3228_v51, %v3140_v55  ;;  %3279 = vmatmul.bf16.gmra.mxu0 %v4734_v52  ;;  %v4861_v51 = vld [vmem:[#allocation2 + $0x190] sm:$0xf]  ;;  %v4863_v55 = vld [vmem:[#allocation2 + $0x1d0] sm:$0xf0]  ;;  %3713 = vmatpush.bf16.msra.mxu1 %v6524_v50  ;;  %v6250_v59 = vld [vmem:[#allocation2 + $0x1d4] sm:$0xf0] }
 0x15a   : > { %3368 = vmatmul.bf16.gmra.mxu1 %v4738_v53  ;;  %v6249_v52 = vld [vmem:[#allocation2 + $0x1cc] sm:$0xf0]  ;;  %v6241_v53 = vld [vmem:[#allocation2 + $0x194] sm:$0xf]  ;;  %v4870_v12 = vor.u32 %v6250_v59, %v4869_v58  ;;  %v6539_v58 = vld [vmem:[%s6999_s6 + $0x2e0] sm:$0xff] }
 0x15b   : > { %3457 = vmatmul.bf16.gmra.mxu2 %v4742_v60  ;;  %v6242_v60 = vld [vmem:[#allocation2 + $0x19c] sm:$0xf]  ;;  %3892 = vmatpush.bf16.msra.mxu3 %v6539_v58  ;;  %v6298_v58 = vld [vmem:[#allocation2 + $0x354] sm:$0xf0] }
 0x15c   : > { %3546 = vmatmul.bf16.gmra.mxu3 %v4746_v61  ;;  %v4871_v61 = vld [vmem:[#allocation2 + $0x1d8] sm:$0xf0] }
 0x15d   : > { %v4874_v13 = vor.u32 %v6242_v60, %v4871_v61 }
 0x15e   : > { %v3142_v4 = vpop.f32.mrf.mxu2  ;;  %v2966_v8 = vpop.f32.mrf.mxu0 }
 0x15f   : > { %v3231_v5 = vpop.f32.mrf.mxu3  ;;  %v3143_v6 = vadd.f32 %v3142_v4, %v3054_v63  ;;  %v3055_v9 = vpop.f32.mrf.mxu1 }
 0x160   : > { %v3056_v10 = vadd.f32 %v3055_v9, %v2966_v8 }
 0x161   : > { %v7113_v11 = vadd.f32 %v3231_v5, %v3143_v6  ;;  %v4862_v5 = vor.u32 %v6249_v52, %v4861_v51  ;;  %v4866_v6 = vor.u32 %v6241_v53, %v4863_v55  ;;  %v6531_v53 = vld [vmem:[%s6999_s6 + $0x2a0] sm:$0xff] }
 0x162   : > { %v6515_v55 = vld [vmem:[%s6999_s6 + $0x220] sm:$0xff]  ;;  %3803 = vmatpush.bf16.msra.mxu2 %v6531_v53  ;;  %v5055_v53 = vld [vmem:[#allocation2 + $0x350] sm:$0xf0] }
 0x163   : > { %3625 = vmatpush.bf16.msra.mxu0 %v6515_v55  ;;  %v5061_v55 = vld [vmem:[#allocation2 + $0x318] sm:$0xf] }
 0x166   : > { %v3144_v22 = vpop.f32.mrf.mxu2  ;;  %v2969_v29 = vpop.f32.mrf.mxu0 }
 0x167   : > { %v3233_v23 = vpop.f32.mrf.mxu3  ;;  %v3145_v28 = vadd.f32 %v3144_v22, %v3056_v10  ;;  %v3058_v30 = vpop.f32.mrf.mxu1 }
 0x168   : > { %v3059_v35 = vadd.f32 %v3058_v30, %v2969_v29  ;;  %v6257_v29 = vld [vmem:[#allocation2 + $0x214] sm:$0xf] }
 0x169   : > { %v7115_v37 = vadd.f32 %v3233_v23, %v3145_v28  ;;  %3284 = vmatmul.bf16.gmra.mxu0 %v4798_v24  ;;  %v6265_v28 = vld [vmem:[#allocation2 + $0x24c] sm:$0xf0]  ;;  %v4927_v30 = vld [vmem:[#allocation2 + $0x250] sm:$0xf0] }
 0x16a   : > { %3373 = vmatmul.bf16.gmra.mxu1 %v4802_v27  ;;  %v4925_v27 = vld [vmem:[#allocation2 + $0x210] sm:$0xf] }
 0x16b   : > { %3462 = vmatmul.bf16.gmra.mxu2 %v4806_v31  ;;  %v4933_v31 = vld [vmem:[#allocation2 + $0x218] sm:$0xf] }
 0x16c   : > { %3551 = vmatmul.bf16.gmra.mxu3 %v4810_v34  ;;  %v6266_v34 = vld [vmem:[#allocation2 + $0x254] sm:$0xf0] }
 0x16e   : > { %v3147_v42 = vpop.f32.mrf.mxu2  ;;  %v2971_v46 = vpop.f32.mrf.mxu0 }
 0x16f   : > { %v3236_v43 = vpop.f32.mrf.mxu3  ;;  %v3148_v45 = vadd.f32 %v3147_v42, %v3059_v35  ;;  %v3060_v47 = vpop.f32.mrf.mxu1  ;;  %v6258_v35 = vld [vmem:[#allocation2 + $0x21c] sm:$0xf]  ;;  %v4926_v42 = vor.u32 %v6265_v28, %v4925_v27 }
 0x170   : > { %v3061_v48 = vadd.f32 %v3060_v47, %v2971_v46  ;;  %v4938_v50 = vor.u32 %v6258_v35, %v4935_v38 }
 0x171   : > { %v7120_v49 = vadd.f32 %v3236_v43, %v3148_v45  ;;  %v4930_v43 = vor.u32 %v6257_v29, %v4927_v30 }
 0x176   : > { %v3149_v63 = vpop.f32.mrf.mxu2  ;;  %v2974_v9 = vpop.f32.mrf.mxu0 }
 0x177   : > { %v3238_v4 = vpop.f32.mrf.mxu3  ;;  %v3150_v8 = vadd.f32 %v3149_v63, %v3061_v48  ;;  %v3063_v10 = vpop.f32.mrf.mxu1  ;;  %v4934_v48 = vor.u32 %v6266_v34, %v4933_v31 }
 0x178   : > { %v3064_v14 = vadd.f32 %v3063_v10, %v2974_v9  ;;  %v4989_v9 = vld [vmem:[#allocation2 + $0x290] sm:$0xf] }
 0x179   : > { %v7123_v15 = vadd.f32 %v3238_v4, %v3150_v8  ;;  %3289 = vmatmul.bf16.gmra.mxu0 %v4862_v5  ;;  %v6523_v8 = vld [vmem:[%s6999_s6 + $0x260] sm:$0xff]  ;;  %v6281_v10 = vld [vmem:[#allocation2 + $0x2cc] sm:$0xf0] }
 0x17a   : > { %3378 = vmatmul.bf16.gmra.mxu1 %v4866_v6 }
 0x17b   : > { %3467 = vmatmul.bf16.gmra.mxu2 %v4870_v12  ;;  %v6273_v12 = vld [vmem:[#allocation2 + $0x294] sm:$0xf]  ;;  %3714 = vmatpush.bf16.msra.mxu1 %v6523_v8 }
 0x17c   : > { %3556 = vmatmul.bf16.gmra.mxu3 %v4874_v13  ;;  %v4991_v13 = vld [vmem:[#allocation2 + $0x2d0] sm:$0xf0] }
 0x17d   : > { %v4994_v27 = vor.u32 %v6273_v12, %v4991_v13  ;;  %v5062_v12 = vor.u32 %v6298_v58, %v5061_v55 }
 0x17e   : > { %v3152_v16 = vpop.f32.mrf.mxu2  ;;  %v2976_v19 = vpop.f32.mrf.mxu0 }
 0x17f   : > { %v3241_v17 = vpop.f32.mrf.mxu3  ;;  %v3153_v18 = vadd.f32 %v3152_v16, %v3064_v14  ;;  %v3065_v22 = vpop.f32.mrf.mxu1  ;;  %v4997_v14 = vld [vmem:[#allocation2 + $0x298] sm:$0xf] }
 0x180   : > { %v3066_v23 = vadd.f32 %v3065_v22, %v2976_v19  ;;  %v6282_v16 = vld [vmem:[#allocation2 + $0x2d4] sm:$0xf0] }
 0x181   : > { %v7125_v24 = vadd.f32 %v3241_v17, %v3153_v18  ;;  %v6274_v17 = vld [vmem:[#allocation2 + $0x29c] sm:$0xf]  ;;  %v4998_v31 = vor.u32 %v6282_v16, %v4997_v14 }
 0x182   : > { %v4999_v18 = vld [vmem:[#allocation2 + $0x2d8] sm:$0xf0] }
 0x183   : > { %v5002_v34 = vor.u32 %v6274_v17, %v4999_v18  ;;  %v6530_v17 = vld [vmem:[%s6999_s6 + $0x298] sm:$0xff] }
 0x184   : > { %v6514_v18 = vld [vmem:[%s6999_s6 + $0x218] sm:$0xff]  ;;  %3804 = vmatpush.bf16.msra.mxu2 %v6530_v17 }
 0x185   : > { %3626 = vmatpush.bf16.msra.mxu0 %v6514_v18  ;;  %v5181_v18 = vld [vmem:[#allocation2 + $0x410] sm:$0xf] }
 0x186   : > { %v3154_v40 = vpop.f32.mrf.mxu2  ;;  %v2979_v46 = vpop.f32.mrf.mxu0 }
 0x187   : > { %v3243_v41 = vpop.f32.mrf.mxu3  ;;  %v3155_v45 = vadd.f32 %v3154_v40, %v3066_v23  ;;  %v3068_v47 = vpop.f32.mrf.mxu1  ;;  %v4990_v23 = vor.u32 %v6281_v10, %v4989_v9 }
 0x188   : > { %v3069_v51 = vadd.f32 %v3068_v47, %v2979_v46 }
 0x189   : > { %v7127_v52 = vadd.f32 %v3243_v41, %v3155_v45  ;;  %3294 = vmatmul.bf16.gmra.mxu0 %v4926_v42 }
 0x18a   : > { %3383 = vmatmul.bf16.gmra.mxu1 %v4930_v43 }
 0x18b   : > { %3472 = vmatmul.bf16.gmra.mxu2 %v4934_v48  ;;  %v5053_v48 = vld [vmem:[#allocation2 + $0x310] sm:$0xf] }
 0x18c   : > { %3561 = vmatmul.bf16.gmra.mxu3 %v4938_v50  ;;  %v6297_v50 = vld [vmem:[#allocation2 + $0x34c] sm:$0xf0] }
 0x18e   : > { %v3157_v59 = vpop.f32.mrf.mxu2  ;;  %v2981_v63 = vpop.f32.mrf.mxu0 }
 0x18f   : > { %v3246_v60 = vpop.f32.mrf.mxu3  ;;  %v3158_v61 = vadd.f32 %v3157_v59, %v3069_v51  ;;  %v3070_v4 = vpop.f32.mrf.mxu1  ;;  %v6289_v51 = vld [vmem:[#allocation2 + $0x314] sm:$0xf]  ;;  %v6290_v59 = vld [vmem:[#allocation2 + $0x31c] sm:$0xf] }
 0x190   : > { %v3071_v5 = vadd.f32 %v3070_v4, %v2981_v63  ;;  %v5054_v4 = vor.u32 %v6297_v50, %v5053_v48  ;;  %v5127_v48 = vld [vmem:[#allocation2 + $0x3d8] sm:$0xf0] }
 0x191   : > { %v7132_v6 = vadd.f32 %v3246_v60, %v3158_v61  ;;  %v5063_v60 = vld [vmem:[#allocation2 + $0x358] sm:$0xf0] }
 0x192   : > { %v5066_v13 = vor.u32 %v6290_v59, %v5063_v60 }
 0x196   : > { %v3159_v19 = vpop.f32.mrf.mxu2  ;;  %v2984_v29 = vpop.f32.mrf.mxu0 }
 0x197   : > { %v3248_v22 = vpop.f32.mrf.mxu3  ;;  %v3160_v28 = vadd.f32 %v3159_v19, %v3071_v5  ;;  %v3073_v30 = vpop.f32.mrf.mxu1  ;;  %v5058_v5 = vor.u32 %v6289_v51, %v5055_v53  ;;  %v6538_v19 = vld [vmem:[%s6999_s6 + $0x2d8] sm:$0xff] }
 0x198   : > { %v3074_v35 = vadd.f32 %v3073_v30, %v2984_v29  ;;  %3893 = vmatpush.bf16.msra.mxu3 %v6538_v19  ;;  %v6329_v19 = vld [vmem:[#allocation2 + $0x44c] sm:$0xf0] }
 0x199   : > { %v7135_v38 = vadd.f32 %v3248_v22, %v3160_v28  ;;  %3299 = vmatmul.bf16.gmra.mxu0 %v4990_v23 }
 0x19a   : > { %3388 = vmatmul.bf16.gmra.mxu1 %v4994_v27 }
 0x19b   : > { %3477 = vmatmul.bf16.gmra.mxu2 %v4998_v31 }
 0x19c   : > { %3566 = vmatmul.bf16.gmra.mxu3 %v5002_v34  ;;  %v6522_v34 = vld [vmem:[%s6999_s6 + $0x258] sm:$0xff] }
 0x19d   : > { %3715 = vmatpush.bf16.msra.mxu1 %v6522_v34 }
 0x19e   : > { %v3162_v40 = vpop.f32.mrf.mxu2  ;;  %v2986_v43 = vpop.f32.mrf.mxu0 }
 0x19f   : > { %v3251_v41 = vpop.f32.mrf.mxu3  ;;  %v3163_v42 = vadd.f32 %v3162_v40, %v3074_v35  ;;  %v3075_v45 = vpop.f32.mrf.mxu1  ;;  %v5117_v35 = vld [vmem:[#allocation2 + $0x390] sm:$0xf] }
 0x1a0   : > { %v3076_v46 = vadd.f32 %v3075_v45, %v2986_v43  ;;  %v6313_v40 = vld [vmem:[#allocation2 + $0x3cc] sm:$0xf0]  ;;  %v5125_v43 = vld [vmem:[#allocation2 + $0x398] sm:$0xf] }
 0x1a1   : > { %v7137_v47 = vadd.f32 %v3251_v41, %v3163_v42  ;;  %v6305_v41 = vld [vmem:[#allocation2 + $0x394] sm:$0xf]  ;;  %v6314_v45 = vld [vmem:[#allocation2 + $0x3d4] sm:$0xf0]  ;;  %v5118_v53 = vor.u32 %v6313_v40, %v5117_v35  ;;  %v5182_v40 = vor.u32 %v6329_v19, %v5181_v18 }
 0x1a2   : > { %v5119_v42 = vld [vmem:[#allocation2 + $0x3d0] sm:$0xf0] }
 0x1a3   : > { %v5122_v55 = vor.u32 %v6305_v41, %v5119_v42  ;;  %v6337_v18 = vld [vmem:[#allocation2 + $0x494] sm:$0xf] }
 0x1a4   : > { %v5247_v19 = vld [vmem:[#allocation2 + $0x4d0] sm:$0xf0] }
 0x1a6   : > { %v3164_v61 = vpop.f32.mrf.mxu2  ;;  %v2989_v9 = vpop.f32.mrf.mxu0 }
 0x1a7   : > { %v3253_v63 = vpop.f32.mrf.mxu3  ;;  %v3165_v8 = vadd.f32 %v3164_v61, %v3076_v46  ;;  %v3078_v10 = vpop.f32.mrf.mxu1  ;;  %v6306_v46 = vld [vmem:[#allocation2 + $0x39c] sm:$0xf]  ;;  %v5126_v61 = vor.u32 %v6314_v45, %v5125_v43 }
 0x1a8   : > { %v3079_v14 = vadd.f32 %v3078_v10, %v2989_v9 }
 0x1a9   : > { %v7139_v16 = vadd.f32 %v3253_v63, %v3165_v8  ;;  %3304 = vmatmul.bf16.gmra.mxu0 %v5054_v4  ;;  %v5130_v63 = vor.u32 %v6306_v46, %v5127_v48 }
 0x1aa   : > { %3393 = vmatmul.bf16.gmra.mxu1 %v5058_v5 }
 0x1ab   : > { %3482 = vmatmul.bf16.gmra.mxu2 %v5062_v12 }
 0x1ac   : > { %3571 = vmatmul.bf16.gmra.mxu3 %v5066_v13 }
 0x1ae   : > { %v3167_v22 = vpop.f32.mrf.mxu2  ;;  %v2991_v28 = vpop.f32.mrf.mxu0 }
 0x1af   : > { %v3256_v23 = vpop.f32.mrf.mxu3  ;;  %v3168_v27 = vadd.f32 %v3167_v22, %v3079_v14  ;;  %v3080_v29 = vpop.f32.mrf.mxu1  ;;  %v6321_v22 = vld [vmem:[#allocation2 + $0x414] sm:$0xf] }
 0x1b0   : > { %v3081_v30 = vadd.f32 %v3080_v29, %v2991_v28  ;;  %v6330_v28 = vld [vmem:[#allocation2 + $0x454] sm:$0xf0]  ;;  %v6322_v29 = vld [vmem:[#allocation2 + $0x41c] sm:$0xf] }
 0x1b1   : > { %v7144_v31 = vadd.f32 %v3256_v23, %v3168_v27  ;;  %v5183_v23 = vld [vmem:[#allocation2 + $0x450] sm:$0xf0]  ;;  %v5189_v27 = vld [vmem:[#allocation2 + $0x418] sm:$0xf] }
 0x1b2   : > { %v5186_v41 = vor.u32 %v6321_v22, %v5183_v23  ;;  %v5190_v46 = vor.u32 %v6330_v28, %v5189_v27  ;;  %v5253_v22 = vld [vmem:[#allocation2 + $0x498] sm:$0xf]  ;;  %v6338_v27 = vld [vmem:[#allocation2 + $0x49c] sm:$0xf] }
 0x1b3   : > { %v6346_v23 = vld [vmem:[#allocation2 + $0x4d4] sm:$0xf0]  ;;  %v5255_v28 = vld [vmem:[#allocation2 + $0x4d8] sm:$0xf0] }
 0x1b6   : > { %v3169_v50 = vpop.f32.mrf.mxu2  ;;  %v2994_v59 = vpop.f32.mrf.mxu0 }
 0x1b7   : > { %v3258_v51 = vpop.f32.mrf.mxu3  ;;  %v3170_v58 = vadd.f32 %v3169_v50, %v3081_v30  ;;  %v3083_v60 = vpop.f32.mrf.mxu1  ;;  %v5191_v30 = vld [vmem:[#allocation2 + $0x458] sm:$0xf0] }
 0x1b8   : > { %v3084_v4 = vadd.f32 %v3083_v60, %v2994_v59  ;;  %v5194_v48 = vor.u32 %v6322_v29, %v5191_v30  ;;  %v6537_v59 = vld [vmem:[%s6999_s6 + $0x2d0] sm:$0xff] }
 0x1b9   : > { %v7147_v5 = vadd.f32 %v3258_v51, %v3170_v58  ;;  %3309 = vmatmul.bf16.gmra.mxu0 %v5118_v53  ;;  %v6513_v58 = vld [vmem:[%s6999_s6 + $0x210] sm:$0xff]  ;;  %3894 = vmatpush.bf16.msra.mxu3 %v6537_v59 }
 0x1ba   : > { %3398 = vmatmul.bf16.gmra.mxu1 %v5122_v55  ;;  %v6529_v55 = vld [vmem:[%s6999_s6 + $0x290] sm:$0xff]  ;;  %3627 = vmatpush.bf16.msra.mxu0 %v6513_v58 }
 0x1bb   : > { %3487 = vmatmul.bf16.gmra.mxu2 %v5126_v61 }
 0x1bc   : > { %3576 = vmatmul.bf16.gmra.mxu3 %v5130_v63  ;;  %3805 = vmatpush.bf16.msra.mxu2 %v6529_v55 }
 0x1be   : > { %v3172_v8 = vpop.f32.mrf.mxu2  ;;  %v2996_v12 = vpop.f32.mrf.mxu0 }
 0x1bf   : > { %v3261_v9 = vpop.f32.mrf.mxu3  ;;  %v3173_v10 = vadd.f32 %v3172_v8, %v3084_v4  ;;  %v3085_v13 = vpop.f32.mrf.mxu1 }
 0x1c0   : > { %v3086_v14 = vadd.f32 %v3085_v13, %v2996_v12  ;;  %v5245_v13 = vld [vmem:[#allocation2 + $0x490] sm:$0xf] }
 0x1c1   : > { %v7149_v17 = vadd.f32 %v3261_v9, %v3173_v10  ;;  %v6521_v10 = vld [vmem:[%s6999_s6 + $0x250] sm:$0xff] }
 0x1c2   : > { %3716 = vmatpush.bf16.msra.mxu1 %v6521_v10  ;;  %v5317_v10 = vld [vmem:[#allocation2 + $0x518] sm:$0xf] }
 0x1c6   : > { %v3174_v34 = vpop.f32.mrf.mxu2  ;;  %v3275_v43 = vpop.f32.mrf.mxu0 }
 0x1c7   : > { %v3263_v35 = vpop.f32.mrf.mxu3  ;;  %v3175_v42 = vadd.f32 %v3174_v34, %v3086_v14  ;;  %v3364_v45 = vpop.f32.mrf.mxu1  ;;  %v3276_v50 = vadd.f32 %v3275_v43, %v7060_v44  ;;  %v6345_v14 = vld [vmem:[#allocation2 + $0x4cc] sm:$0xf0]  ;;  %v5258_v43 = vor.u32 %v6338_v27, %v5255_v28 }
 0x1c8   : > { %v5246_v34 = vor.u32 %v6345_v14, %v5245_v13  ;;  %v6354_v13 = vld [vmem:[#allocation2 + $0x51c] sm:$0xf] }
 0x1c9   : > { %v7152_v51 = vadd.f32 %v3263_v35, %v3175_v42  ;;  %v3365_v53 = vadd.f32 %v3364_v45, %v3276_v50  ;;  %3314 = vmatmul.bf16.gmra.mxu0 %v5182_v40  ;;  %v5250_v35 = vor.u32 %v6337_v18, %v5247_v19  ;;  %v5254_v42 = vor.u32 %v6346_v23, %v5253_v22  ;;  %v5319_v14 = vld [vmem:[#allocation2 + $0x558] sm:$0xf0] }
 0x1ca   : > { %3403 = vmatmul.bf16.gmra.mxu1 %v5186_v41 }
 0x1cb   : > { %3492 = vmatmul.bf16.gmra.mxu2 %v5190_v46 }
 0x1cc   : > { %3581 = vmatmul.bf16.gmra.mxu3 %v5194_v48 }
 0x1ce   : > { %v3453_v60 = vpop.f32.mrf.mxu2  ;;  %v3277_v4 = vpop.f32.mrf.mxu0 }
 0x1cf   : > { %v3542_v61 = vpop.f32.mrf.mxu3  ;;  %v3454_v63 = vadd.f32 %v3453_v60, %v3365_v53  ;;  %v3366_v8 = vpop.f32.mrf.mxu1  ;;  %v3278_v44 = vadd.f32 %v3277_v4, %v7063_v0  ;;  %v5309_v4 = vld [vmem:[#allocation2 + $0x510] sm:$0xf] }
 0x1d1   : > { %v7158_v9 = vadd.f32 %v3542_v61, %v3454_v63  ;;  %v3367_v12 = vadd.f32 %v3366_v8, %v3278_v44  ;;  %v6361_v8 = vld [vmem:[#allocation2 + $0x54c] sm:$0xf0]  ;;  %v5311_v44 = vld [vmem:[#allocation2 + $0x550] sm:$0xf0] }
 0x1d2   : > { %v5310_v22 = vor.u32 %v6361_v8, %v5309_v4  ;;  %v6369_v4 = vld [vmem:[#allocation2 + $0x594] sm:$0xf] }
 0x1d3   : > { %v5375_v8 = vld [vmem:[#allocation2 + $0x5d0] sm:$0xf0] }
 0x1d6   : > { %v3455_v29 = vpop.f32.mrf.mxu2  ;;  %v3280_v41 = vpop.f32.mrf.mxu0 }
 0x1d7   : > { %v3544_v30 = vpop.f32.mrf.mxu3  ;;  %v3456_v40 = vadd.f32 %v3455_v29, %v3367_v12  ;;  %v3369_v0 = vpop.f32.mrf.mxu1  ;;  %v3281_v45 = vadd.f32 %v3280_v41, %v7065_v7  ;;  %v6353_v7 = vld [vmem:[#allocation2 + $0x514] sm:$0xf]  ;;  %v6362_v12 = vld [vmem:[#allocation2 + $0x554] sm:$0xf0]  ;;  %v6528_v41 = vld [vmem:[%s6999_s6 + $0x288] sm:$0xff] }
 0x1d8   : > { %v5314_v23 = vor.u32 %v6353_v7, %v5311_v44  ;;  %v5318_v29 = vor.u32 %v6362_v12, %v5317_v10  ;;  %3806 = vmatpush.bf16.msra.mxu2 %v6528_v41  ;;  %v5381_v7 = vld [vmem:[#allocation2 + $0x598] sm:$0xf]  ;;  %v6370_v10 = vld [vmem:[#allocation2 + $0x59c] sm:$0xf] }
 0x1d9   : > { %v7162_v46 = vadd.f32 %v3544_v30, %v3456_v40  ;;  %v3370_v48 = vadd.f32 %v3369_v0, %v3281_v45  ;;  %3319 = vmatmul.bf16.gmra.mxu0 %v5246_v34  ;;  %v5322_v30 = vor.u32 %v6354_v13, %v5319_v14  ;;  %v6512_v0 = vld [vmem:[%s6999_s6 + $0x208] sm:$0xff]  ;;  %v6378_v44 = vld [vmem:[#allocation2 + $0x5d4] sm:$0xf0]  ;;  %v5383_v12 = vld [vmem:[#allocation2 + $0x5d8] sm:$0xf0] }
 0x1da   : > { %3408 = vmatmul.bf16.gmra.mxu1 %v5250_v35  ;;  %3628 = vmatpush.bf16.msra.mxu0 %v6512_v0 }
 0x1db   : > { %3497 = vmatmul.bf16.gmra.mxu2 %v5254_v42  ;;  %v6536_v42 = vld [vmem:[%s6999_s6 + $0x2c8] sm:$0xff] }
 0x1dc   : > { %3586 = vmatmul.bf16.gmra.mxu3 %v5258_v43 }
 0x1dd   : > { %3895 = vmatpush.bf16.msra.mxu3 %v6536_v42 }
 0x1de   : > { %v3458_v50 = vpop.f32.mrf.mxu2  ;;  %v3282_v58 = vpop.f32.mrf.mxu0 }
 0x1df   : > { %v3547_v53 = vpop.f32.mrf.mxu3  ;;  %v3459_v55 = vadd.f32 %v3458_v50, %v3370_v48  ;;  %v3371_v59 = vpop.f32.mrf.mxu1  ;;  %v3283_v60 = vadd.f32 %v3282_v58, %v7067_v26  ;;  %v6520_v58 = vld [vmem:[%s6999_s6 + $0x248] sm:$0xff] }
 0x1e0   : > { %3717 = vmatpush.bf16.msra.mxu1 %v6520_v58  ;;  %v5445_v58 = vld [vmem:[#allocation2 + $0x618] sm:$0xf] }
 0x1e1   : > { %v7165_v61 = vadd.f32 %v3547_v53, %v3459_v55  ;;  %v3372_v63 = vadd.f32 %v3371_v59, %v3283_v60  ;;  %v5373_v60 = vld [vmem:[#allocation2 + $0x590] sm:$0xf] }
 0x1e6   : > { %v3460_v18 = vpop.f32.mrf.mxu2  ;;  %v3285_v26 = vpop.f32.mrf.mxu0 }
 0x1e7   : > { %v3549_v19 = vpop.f32.mrf.mxu3  ;;  %v3461_v27 = vadd.f32 %v3460_v18, %v3372_v63  ;;  %v3374_v28 = vpop.f32.mrf.mxu1  ;;  %v3286_v34 = vadd.f32 %v3285_v26, %v7072_v36  ;;  %v6377_v63 = vld [vmem:[#allocation2 + $0x5cc] sm:$0xf0]  ;;  %v5386_v26 = vor.u32 %v6370_v10, %v5383_v12 }
 0x1e8   : > { %v5374_v18 = vor.u32 %v6377_v63, %v5373_v60  ;;  %v6386_v60 = vld [vmem:[#allocation2 + $0x61c] sm:$0xf] }
 0x1e9   : > { %v7168_v35 = vadd.f32 %v3549_v19, %v3461_v27  ;;  %v3375_v40 = vadd.f32 %v3374_v28, %v3286_v34  ;;  %3324 = vmatmul.bf16.gmra.mxu0 %v5310_v22  ;;  %v5378_v19 = vor.u32 %v6369_v4, %v5375_v8  ;;  %v5382_v27 = vor.u32 %v6378_v44, %v5381_v7  ;;  %v5447_v63 = vld [vmem:[#allocation2 + $0x658] sm:$0xf0] }
 0x1ea   : > { %3413 = vmatmul.bf16.gmra.mxu1 %v5314_v23 }
 0x1eb   : > { %3502 = vmatmul.bf16.gmra.mxu2 %v5318_v29 }
 0x1ec   : > { %3591 = vmatmul.bf16.gmra.mxu3 %v5322_v30 }
 0x1ee   : > { %v3463_v43 = vpop.f32.mrf.mxu2  ;;  %v3287_v50 = vpop.f32.mrf.mxu0 }
 0x1ef   : > { %v3552_v45 = vpop.f32.mrf.mxu3  ;;  %v3464_v48 = vadd.f32 %v3463_v43, %v3375_v40  ;;  %v3376_v53 = vpop.f32.mrf.mxu1  ;;  %v3288_v36 = vadd.f32 %v3287_v50, %v7075_v57  ;;  %v5437_v50 = vld [vmem:[#allocation2 + $0x610] sm:$0xf] }
 0x1f1   : > { %v7174_v55 = vadd.f32 %v3552_v45, %v3464_v48  ;;  %v3377_v59 = vadd.f32 %v3376_v53, %v3288_v36  ;;  %v6393_v53 = vld [vmem:[#allocation2 + $0x64c] sm:$0xf0]  ;;  %v5439_v36 = vld [vmem:[#allocation2 + $0x650] sm:$0xf0] }
 0x1f2   : > { %v5438_v7 = vor.u32 %v6393_v53, %v5437_v50  ;;  %v6401_v50 = vld [vmem:[#allocation2 + $0x694] sm:$0xf] }
 0x1f3   : > { %v5503_v53 = vld [vmem:[#allocation2 + $0x6d0] sm:$0xf0] }
 0x1f6   : > { %v3465_v13 = vpop.f32.mrf.mxu2  ;;  %v3290_v23 = vpop.f32.mrf.mxu0 }
 0x1f7   : > { %v3554_v14 = vpop.f32.mrf.mxu3  ;;  %v3466_v22 = vadd.f32 %v3465_v13, %v3377_v59  ;;  %v3379_v57 = vpop.f32.mrf.mxu1  ;;  %v3291_v28 = vadd.f32 %v3290_v23, %v7077_v1  ;;  %v6385_v1 = vld [vmem:[#allocation2 + $0x614] sm:$0xf]  ;;  %v6394_v59 = vld [vmem:[#allocation2 + $0x654] sm:$0xf0]  ;;  %v6527_v23 = vld [vmem:[%s6999_s6 + $0x280] sm:$0xff] }
 0x1f8   : > { %v5442_v44 = vor.u32 %v6385_v1, %v5439_v36  ;;  %v5446_v13 = vor.u32 %v6394_v59, %v5445_v58  ;;  %3807 = vmatpush.bf16.msra.mxu2 %v6527_v23  ;;  %v5509_v1 = vld [vmem:[#allocation2 + $0x698] sm:$0xf]  ;;  %v6402_v58 = vld [vmem:[#allocation2 + $0x69c] sm:$0xf] }
 0x1f9   : > { %v7178_v29 = vadd.f32 %v3554_v14, %v3466_v22  ;;  %v3380_v30 = vadd.f32 %v3379_v57, %v3291_v28  ;;  %3329 = vmatmul.bf16.gmra.mxu0 %v5374_v18  ;;  %v5450_v14 = vor.u32 %v6386_v60, %v5447_v63  ;;  %v6511_v57 = vld [vmem:[%s6999_s6 + $0x200] sm:$0xff]  ;;  %v6410_v36 = vld [vmem:[#allocation2 + $0x6d4] sm:$0xf0]  ;;  %v5511_v59 = vld [vmem:[#allocation2 + $0x6d8] sm:$0xf0] }
 0x1fa   : > { %3418 = vmatmul.bf16.gmra.mxu1 %v5378_v19  ;;  %3629 = vmatpush.bf16.msra.mxu0 %v6511_v57 }
 0x1fb   : > { %3507 = vmatmul.bf16.gmra.mxu2 %v5382_v27  ;;  %v6535_v27 = vld [vmem:[%s6999_s6 + $0x2c0] sm:$0xff] }
 0x1fc   : > { %3596 = vmatmul.bf16.gmra.mxu3 %v5386_v26 }
 0x1fd   : > { %3896 = vmatpush.bf16.msra.mxu3 %v6535_v27 }
 0x1fe   : > { %v3468_v34 = vpop.f32.mrf.mxu2  ;;  %v3292_v0 = vpop.f32.mrf.mxu0 }
 0x1ff   : > { %v3557_v40 = vpop.f32.mrf.mxu3  ;;  %v3469_v41 = vadd.f32 %v3468_v34, %v3380_v30  ;;  %v3381_v42 = vpop.f32.mrf.mxu1  ;;  %v3293_v43 = vadd.f32 %v3292_v0, %v7079_v21  ;;  %v6519_v0 = vld [vmem:[%s6999_s6 + $0x240] sm:$0xff] }
 0x200   : > { %3718 = vmatpush.bf16.msra.mxu1 %v6519_v0  ;;  %v5573_v0 = vld [vmem:[#allocation2 + $0x718] sm:$0xf] }
 0x201   : > { %v7181_v45 = vadd.f32 %v3557_v40, %v3469_v41  ;;  %v3382_v48 = vadd.f32 %v3381_v42, %v3293_v43  ;;  %v5501_v43 = vld [vmem:[#allocation2 + $0x690] sm:$0xf] }
 0x206   : > { %v3470_v4 = vpop.f32.mrf.mxu2  ;;  %v3295_v21 = vpop.f32.mrf.mxu0 }
 0x207   : > { %v3559_v8 = vpop.f32.mrf.mxu3  ;;  %v3471_v10 = vadd.f32 %v3470_v4, %v3382_v48  ;;  %v3384_v12 = vpop.f32.mrf.mxu1  ;;  %v3296_v18 = vadd.f32 %v3295_v21, %v7084_v32  ;;  %v6409_v48 = vld [vmem:[#allocation2 + $0x6cc] sm:$0xf0]  ;;  %v5514_v21 = vor.u32 %v6402_v58, %v5511_v59 }
 0x208   : > { %v5502_v4 = vor.u32 %v6409_v48, %v5501_v43  ;;  %v6418_v43 = vld [vmem:[#allocation2 + $0x71c] sm:$0xf] }
 0x209   : > { %v7184_v19 = vadd.f32 %v3559_v8, %v3471_v10  ;;  %v3385_v22 = vadd.f32 %v3384_v12, %v3296_v18  ;;  %3334 = vmatmul.bf16.gmra.mxu0 %v5438_v7  ;;  %v5506_v8 = vor.u32 %v6401_v50, %v5503_v53  ;;  %v5510_v10 = vor.u32 %v6410_v36, %v5509_v1  ;;  %v5575_v48 = vld [vmem:[#allocation2 + $0x758] sm:$0xf0] }
 0x20a   : > { %3423 = vmatmul.bf16.gmra.mxu1 %v5442_v44 }
 0x20b   : > { %3512 = vmatmul.bf16.gmra.mxu2 %v5446_v13 }
 0x20c   : > { %3601 = vmatmul.bf16.gmra.mxu3 %v5450_v14 }
 0x20e   : > { %v3473_v26 = vpop.f32.mrf.mxu2  ;;  %v3297_v34 = vpop.f32.mrf.mxu0 }
 0x20f   : > { %v3562_v28 = vpop.f32.mrf.mxu3  ;;  %v3474_v30 = vadd.f32 %v3473_v26, %v3385_v22  ;;  %v3386_v40 = vpop.f32.mrf.mxu1  ;;  %v3298_v32 = vadd.f32 %v3297_v34, %v7087_v54  ;;  %v5565_v34 = vld [vmem:[#allocation2 + $0x710] sm:$0xf] }
 0x211   : > { %v7190_v41 = vadd.f32 %v3562_v28, %v3474_v30  ;;  %v3387_v42 = vadd.f32 %v3386_v40, %v3298_v32  ;;  %v6425_v40 = vld [vmem:[#allocation2 + $0x74c] sm:$0xf0]  ;;  %v5567_v32 = vld [vmem:[#allocation2 + $0x750] sm:$0xf0] }
 0x212   : > { %v5566_v1 = vor.u32 %v6425_v40, %v5565_v34  ;;  %v6433_v34 = vld [vmem:[#allocation2 + $0x794] sm:$0xf] }
 0x213   : > { %v5631_v40 = vld [vmem:[#allocation2 + $0x7d0] sm:$0xf0] }
 0x216   : > { %v3475_v60 = vpop.f32.mrf.mxu2  ;;  %v3300_v44 = vpop.f32.mrf.mxu0 }
 0x217   : > { %v3564_v63 = vpop.f32.mrf.mxu3  ;;  %v3476_v7 = vadd.f32 %v3475_v60, %v3387_v42  ;;  %v3389_v54 = vpop.f32.mrf.mxu1  ;;  %v3301_v12 = vadd.f32 %v3300_v44, %v7089_v62  ;;  %v6417_v62 = vld [vmem:[#allocation2 + $0x714] sm:$0xf]  ;;  %v6426_v42 = vld [vmem:[#allocation2 + $0x754] sm:$0xf0] }
 0x218   : > { %v5570_v36 = vor.u32 %v6417_v62, %v5567_v32  ;;  %v5574_v60 = vor.u32 %v6426_v42, %v5573_v0  ;;  %v6566_v44 = vld [vmem:[%s6999_s6 + $0x3b8] sm:$0xff] }
 0x219   : > { %v7194_v13 = vadd.f32 %v3564_v63, %v3476_v7  ;;  %v3390_v14 = vadd.f32 %v3389_v54, %v3301_v12  ;;  %3339 = vmatmul.bf16.gmra.mxu0 %v5502_v4  ;;  %v5578_v63 = vor.u32 %v6418_v43, %v5575_v48  ;;  %v6550_v54 = vld [vmem:[%s6999_s6 + $0x338] sm:$0xff]  ;;  %4156 = vmatpush.bf16.msrb.mxu2 %v6566_v44 }
 0x21a   : > { %3428 = vmatmul.bf16.gmra.mxu1 %v5506_v8  ;;  %3978 = vmatpush.bf16.msrb.mxu0 %v6550_v54  ;;  %v5637_v62 = vld [vmem:[#allocation2 + $0x798] sm:$0xf]  ;;  %v6434_v0 = vld [vmem:[#allocation2 + $0x79c] sm:$0xf] }
 0x21b   : > { %3517 = vmatmul.bf16.gmra.mxu2 %v5510_v10  ;;  %v6574_v10 = vld [vmem:[%s6999_s6 + $0x3f8] sm:$0xff] }
 0x21c   : > { %3606 = vmatmul.bf16.gmra.mxu3 %v5514_v21  ;;  %v6442_v32 = vld [vmem:[#allocation2 + $0x7d4] sm:$0xf0]  ;;  %v5639_v42 = vld [vmem:[#allocation2 + $0x7d8] sm:$0xf0] }
 0x21d   : > { %4245 = vmatpush.bf16.msrb.mxu3 %v6574_v10 }
 0x21e   : > { %v3478_v18 = vpop.f32.mrf.mxu2  ;;  %v3302_v57 = vpop.f32.mrf.mxu0 }
 0x21f   : > { %v3567_v22 = vpop.f32.mrf.mxu3  ;;  %v3479_v23 = vadd.f32 %v3478_v18, %v3390_v14  ;;  %v3391_v27 = vpop.f32.mrf.mxu1  ;;  %v3303_v26 = vadd.f32 %v3302_v57, %v7091_v20  ;;  %v6558_v57 = vld [vmem:[%s6999_s6 + $0x378] sm:$0xff] }
 0x220   : > { %4067 = vmatpush.bf16.msrb.mxu1 %v6558_v57  ;;  %v4693_v57 = vld [vmem:[#allocation2 + $0x28] sm:$0xf] }
 0x221   : > { %v7197_v28 = vadd.f32 %v3567_v22, %v3479_v23  ;;  %v3392_v30 = vadd.f32 %v3391_v27, %v3303_v26  ;;  %v5629_v26 = vld [vmem:[#allocation2 + $0x790] sm:$0xf] }
 0x226   : > { %v3480_v50 = vpop.f32.mrf.mxu2  ;;  %v3305_v20 = vpop.f32.mrf.mxu0 }
 0x227   : > { %v3569_v53 = vpop.f32.mrf.mxu3  ;;  %v3481_v58 = vadd.f32 %v3480_v50, %v3392_v30  ;;  %v3394_v59 = vpop.f32.mrf.mxu1  ;;  %v3306_v4 = vadd.f32 %v3305_v20, %v7096_v33  ;;  %v6441_v30 = vld [vmem:[#allocation2 + $0x7cc] sm:$0xf0]  ;;  %v5642_v20 = vor.u32 %v6434_v0, %v5639_v42 }
 0x228   : > { %v5630_v50 = vor.u32 %v6441_v30, %v5629_v26  ;;  %v6196_v26 = vld [vmem:[#allocation2 + $0x2c] sm:$0xf] }
 0x229   : > { %v7200_v8 = vadd.f32 %v3569_v53, %v3481_v58  ;;  %v3395_v7 = vadd.f32 %v3394_v59, %v3306_v4  ;;  %3344 = vmatmul.bf16.gmra.mxu0 %v5566_v1  ;;  %v5634_v53 = vor.u32 %v6433_v34, %v5631_v40  ;;  %v5638_v58 = vor.u32 %v6442_v32, %v5637_v62  ;;  %v4695_v30 = vld [vmem:[#allocation2 + $0x68] sm:$0xf0] }
 0x22a   : > { %3433 = vmatmul.bf16.gmra.mxu1 %v5570_v36 }
 0x22b   : > { %3522 = vmatmul.bf16.gmra.mxu2 %v5574_v60 }
 0x22c   : > { %3611 = vmatmul.bf16.gmra.mxu3 %v5578_v63 }
 0x22e   : > { %v3483_v21 = vpop.f32.mrf.mxu2  ;;  %v3307_v18 = vpop.f32.mrf.mxu0 }
 0x22f   : > { %v3572_v12 = vpop.f32.mrf.mxu3  ;;  %v3484_v14 = vadd.f32 %v3483_v21, %v3395_v7  ;;  %v3396_v22 = vpop.f32.mrf.mxu1  ;;  %v3308_v33 = vadd.f32 %v3307_v18, %v7099_v56  ;;  %v4685_v18 = vld [vmem:[#allocation2 + $0x20] sm:$0xf] }
 0x231   : > { %v7206_v23 = vadd.f32 %v3572_v12, %v3484_v14  ;;  %v3397_v27 = vadd.f32 %v3396_v22, %v3308_v33  ;;  %v6203_v22 = vld [vmem:[#allocation2 + $0x5c] sm:$0xf0]  ;;  %v4687_v33 = vld [vmem:[#allocation2 + $0x60] sm:$0xf0] }
 0x232   : > { %v4686_v62 = vor.u32 %v6203_v22, %v4685_v18  ;;  %v6211_v18 = vld [vmem:[#allocation2 + $0xa4] sm:$0xf] }
 0x233   : > { %v4751_v22 = vld [vmem:[#allocation2 + $0xe0] sm:$0xf0] }
 0x236   : > { %v3485_v43 = vpop.f32.mrf.mxu2  ;;  %v3310_v36 = vpop.f32.mrf.mxu0 }
 0x237   : > { %v3574_v48 = vpop.f32.mrf.mxu3  ;;  %v3486_v1 = vadd.f32 %v3485_v43, %v3397_v27  ;;  %v3399_v56 = vpop.f32.mrf.mxu1  ;;  %v3311_v59 = vadd.f32 %v3310_v36, %v7101_v3  ;;  %v6195_v3 = vld [vmem:[#allocation2 + $0x24] sm:$0xf]  ;;  %v6204_v27 = vld [vmem:[#allocation2 + $0x64] sm:$0xf0]  ;;  %v6565_v36 = vld [vmem:[%s6999_s6 + $0x3b0] sm:$0xff] }
 0x238   : > { %v4690_v32 = vor.u32 %v6195_v3, %v4687_v33  ;;  %v4694_v43 = vor.u32 %v6204_v27, %v4693_v57  ;;  %4157 = vmatpush.bf16.msrb.mxu2 %v6565_v36  ;;  %v4757_v3 = vld [vmem:[#allocation2 + $0xa8] sm:$0xf]  ;;  %v6212_v57 = vld [vmem:[#allocation2 + $0xac] sm:$0xf] }
 0x239   : > { %v7210_v60 = vadd.f32 %v3574_v48, %v3486_v1  ;;  %v3400_v63 = vadd.f32 %v3399_v56, %v3311_v59  ;;  %3349 = vmatmul.bf16.gmra.mxu0 %v5630_v50  ;;  %v4698_v48 = vor.u32 %v6196_v26, %v4695_v30  ;;  %v6549_v56 = vld [vmem:[%s6999_s6 + $0x330] sm:$0xff]  ;;  %v6220_v33 = vld [vmem:[#allocation2 + $0xe4] sm:$0xf0]  ;;  %v4759_v27 = vld [vmem:[#allocation2 + $0xe8] sm:$0xf0] }
 0x23a   : > { %3438 = vmatmul.bf16.gmra.mxu1 %v5634_v53  ;;  %3979 = vmatpush.bf16.msrb.mxu0 %v6549_v56 }
 0x23b   : > { %3527 = vmatmul.bf16.gmra.mxu2 %v5638_v58  ;;  %v6573_v58 = vld [vmem:[%s6999_s6 + $0x3f0] sm:$0xff] }
 0x23c   : > { %3616 = vmatmul.bf16.gmra.mxu3 %v5642_v20 }
 0x23d   : > { %4246 = vmatpush.bf16.msrb.mxu3 %v6573_v58 }
 0x23e   : > { %v3488_v4 = vpop.f32.mrf.mxu2  ;;  %v3312_v54 = vpop.f32.mrf.mxu0 }
 0x23f   : > { %v3577_v7 = vpop.f32.mrf.mxu3  ;;  %v3489_v44 = vadd.f32 %v3488_v4, %v3400_v63  ;;  %v3401_v10 = vpop.f32.mrf.mxu1  ;;  %v3313_v21 = vadd.f32 %v3312_v54, %v7103_v25  ;;  %v6557_v54 = vld [vmem:[%s6999_s6 + $0x370] sm:$0xff] }
 0x240   : > { %4068 = vmatpush.bf16.msrb.mxu1 %v6557_v54  ;;  %v4821_v54 = vld [vmem:[#allocation2 + $0x128] sm:$0xf] }
 0x241   : > { %v7213_v12 = vadd.f32 %v3577_v7, %v3489_v44  ;;  %v3402_v14 = vadd.f32 %v3401_v10, %v3313_v21  ;;  %v4749_v21 = vld [vmem:[#allocation2 + $0xa0] sm:$0xf] }
 0x246   : > { %v3490_v34 = vpop.f32.mrf.mxu2  ;;  %v3315_v25 = vpop.f32.mrf.mxu0 }
 0x247   : > { %v3579_v40 = vpop.f32.mrf.mxu3  ;;  %v3491_v0 = vadd.f32 %v3490_v34, %v3402_v14  ;;  %v3404_v42 = vpop.f32.mrf.mxu1  ;;  %v3316_v50 = vadd.f32 %v3315_v25, %v7108_v39  ;;  %v6219_v14 = vld [vmem:[#allocation2 + $0xdc] sm:$0xf0]  ;;  %v4762_v25 = vor.u32 %v6212_v57, %v4759_v27 }
 0x248   : > { %v4750_v34 = vor.u32 %v6219_v14, %v4749_v21  ;;  %v6228_v21 = vld [vmem:[#allocation2 + $0x12c] sm:$0xf] }
 0x249   : > { %v7216_v53 = vadd.f32 %v3579_v40, %v3491_v0  ;;  %v3405_v1 = vadd.f32 %v3404_v42, %v3316_v50  ;;  %3630 = vmatmul.bf16.vlgmr.msra.gmra.mxu0 %v4686_v62  ;;  %v4754_v40 = vor.u32 %v6211_v18, %v4751_v22  ;;  %v4758_v0 = vor.u32 %v6220_v33, %v4757_v3  ;;  %v4823_v14 = vld [vmem:[#allocation2 + $0x168] sm:$0xf0] }
 0x24a   : > { %3719 = vmatmul.bf16.vlgmr.msra.gmra.mxu1 %v4690_v32 }
 0x24b   : > { %3808 = vmatmul.bf16.vlgmr.msra.gmra.mxu2 %v4694_v43 }
 0x24c   : > { %3897 = vmatmul.bf16.vlgmr.msra.gmra.mxu3 %v4698_v48 }
 0x24e   : > { %v3493_v20 = vpop.f32.mrf.mxu2  ;;  %v3317_v4 = vpop.f32.mrf.mxu0 }
 0x24f   : > { %v3582_v59 = vpop.f32.mrf.mxu3  ;;  %v3494_v63 = vadd.f32 %v3493_v20, %v3405_v1  ;;  %v3406_v7 = vpop.f32.mrf.mxu1  ;;  %v3318_v39 = vadd.f32 %v3317_v4, %v7111_v2  ;;  %v4813_v4 = vld [vmem:[#allocation2 + $0x120] sm:$0xf] }
 0x251   : > { %v7222_v44 = vadd.f32 %v3582_v59, %v3494_v63  ;;  %v3407_v10 = vadd.f32 %v3406_v7, %v3318_v39  ;;  %v6235_v7 = vld [vmem:[#allocation2 + $0x15c] sm:$0xf0]  ;;  %v4815_v39 = vld [vmem:[#allocation2 + $0x160] sm:$0xf0] }
 0x252   : > { %v4814_v3 = vor.u32 %v6235_v7, %v4813_v4  ;;  %v6243_v4 = vld [vmem:[#allocation2 + $0x1a4] sm:$0xf] }
 0x253   : > { %v4879_v7 = vld [vmem:[#allocation2 + $0x1e0] sm:$0xf0] }
 0x256   : > { %v3495_v26 = vpop.f32.mrf.mxu2  ;;  %v3320_v32 = vpop.f32.mrf.mxu0 }
 0x257   : > { %v3584_v30 = vpop.f32.mrf.mxu3  ;;  %v3496_v62 = vadd.f32 %v3495_v26, %v3407_v10  ;;  %v3409_v2 = vpop.f32.mrf.mxu1  ;;  %v3321_v42 = vadd.f32 %v3320_v32, %v7113_v11  ;;  %v6227_v11 = vld [vmem:[#allocation2 + $0x124] sm:$0xf]  ;;  %v6236_v10 = vld [vmem:[#allocation2 + $0x164] sm:$0xf0] }
 0x258   : > { %v4818_v33 = vor.u32 %v6227_v11, %v4815_v39  ;;  %v4822_v26 = vor.u32 %v6236_v10, %v4821_v54  ;;  %v6564_v32 = vld [vmem:[%s6999_s6 + $0x3a8] sm:$0xff] }
 0x259   : > { %v7226_v43 = vadd.f32 %v3584_v30, %v3496_v62  ;;  %v3410_v48 = vadd.f32 %v3409_v2, %v3321_v42  ;;  %3635 = vmatmul.bf16.gmra.mxu0 %v4750_v34  ;;  %v4826_v30 = vor.u32 %v6228_v21, %v4823_v14  ;;  %v6548_v2 = vld [vmem:[%s6999_s6 + $0x328] sm:$0xff]  ;;  %4158 = vmatpush.bf16.msrb.mxu2 %v6564_v32 }
 0x25a   : > { %3724 = vmatmul.bf16.gmra.mxu1 %v4754_v40  ;;  %3980 = vmatpush.bf16.msrb.mxu0 %v6548_v2  ;;  %v4885_v11 = vld [vmem:[#allocation2 + $0x1a8] sm:$0xf]  ;;  %v6244_v54 = vld [vmem:[#allocation2 + $0x1ac] sm:$0xf] }
 0x25b   : > { %3813 = vmatmul.bf16.gmra.mxu2 %v4758_v0  ;;  %v6572_v0 = vld [vmem:[%s6999_s6 + $0x3e8] sm:$0xff] }
 0x25c   : > { %3902 = vmatmul.bf16.gmra.mxu3 %v4762_v25  ;;  %v6252_v39 = vld [vmem:[#allocation2 + $0x1e4] sm:$0xf0]  ;;  %v4887_v10 = vld [vmem:[#allocation2 + $0x1e8] sm:$0xf0] }
 0x25d   : > { %4247 = vmatpush.bf16.msrb.mxu3 %v6572_v0 }
 0x25e   : > { %v3498_v50 = vpop.f32.mrf.mxu2  ;;  %v3322_v56 = vpop.f32.mrf.mxu0 }
 0x25f   : > { %v3587_v1 = vpop.f32.mrf.mxu3  ;;  %v3499_v36 = vadd.f32 %v3498_v50, %v3410_v48  ;;  %v3411_v58 = vpop.f32.mrf.mxu1  ;;  %v3323_v20 = vadd.f32 %v3322_v56, %v7115_v37  ;;  %v6556_v56 = vld [vmem:[%s6999_s6 + $0x368] sm:$0xff] }
 0x260   : > { %4069 = vmatpush.bf16.msrb.mxu1 %v6556_v56  ;;  %v4949_v56 = vld [vmem:[#allocation2 + $0x228] sm:$0xf] }
 0x261   : > { %v7229_v59 = vadd.f32 %v3587_v1, %v3499_v36  ;;  %v3412_v63 = vadd.f32 %v3411_v58, %v3323_v20  ;;  %v4877_v20 = vld [vmem:[#allocation2 + $0x1a0] sm:$0xf] }
 0x266   : > { %v3500_v18 = vpop.f32.mrf.mxu2  ;;  %v3325_v37 = vpop.f32.mrf.mxu0 }
 0x267   : > { %v3589_v22 = vpop.f32.mrf.mxu3  ;;  %v3501_v57 = vadd.f32 %v3500_v18, %v3412_v63  ;;  %v3414_v27 = vpop.f32.mrf.mxu1  ;;  %v3326_v34 = vadd.f32 %v3325_v37, %v7120_v49  ;;  %v6251_v63 = vld [vmem:[#allocation2 + $0x1dc] sm:$0xf0]  ;;  %v4890_v37 = vor.u32 %v6244_v54, %v4887_v10 }
 0x268   : > { %v4878_v18 = vor.u32 %v6251_v63, %v4877_v20  ;;  %v6260_v20 = vld [vmem:[#allocation2 + $0x22c] sm:$0xf] }
 0x269   : > { %v7232_v40 = vadd.f32 %v3589_v22, %v3501_v57  ;;  %v3415_v62 = vadd.f32 %v3414_v27, %v3326_v34  ;;  %3640 = vmatmul.bf16.gmra.mxu0 %v4814_v3  ;;  %v4882_v22 = vor.u32 %v6243_v4, %v4879_v7  ;;  %v4886_v57 = vor.u32 %v6252_v39, %v4885_v11  ;;  %v4951_v63 = vld [vmem:[#allocation2 + $0x268] sm:$0xf0] }
 0x26a   : > { %3729 = vmatmul.bf16.gmra.mxu1 %v4818_v33 }
 0x26b   : > { %3818 = vmatmul.bf16.gmra.mxu2 %v4822_v26 }
 0x26c   : > { %3907 = vmatmul.bf16.gmra.mxu3 %v4826_v30 }
 0x26e   : > { %v3503_v25 = vpop.f32.mrf.mxu2  ;;  %v3327_v50 = vpop.f32.mrf.mxu0 }
 0x26f   : > { %v3592_v42 = vpop.f32.mrf.mxu3  ;;  %v3504_v48 = vadd.f32 %v3503_v25, %v3415_v62  ;;  %v3416_v1 = vpop.f32.mrf.mxu1  ;;  %v3328_v49 = vadd.f32 %v3327_v50, %v7123_v15  ;;  %v4941_v50 = vld [vmem:[#allocation2 + $0x220] sm:$0xf] }
 0x271   : > { %v7238_v36 = vadd.f32 %v3592_v42, %v3504_v48  ;;  %v3417_v58 = vadd.f32 %v3416_v1, %v3328_v49  ;;  %v6267_v1 = vld [vmem:[#allocation2 + $0x25c] sm:$0xf0]  ;;  %v4943_v49 = vld [vmem:[#allocation2 + $0x260] sm:$0xf0] }
 0x272   : > { %v4942_v11 = vor.u32 %v6267_v1, %v4941_v50  ;;  %v6275_v50 = vld [vmem:[#allocation2 + $0x2a4] sm:$0xf] }
 0x273   : > { %v5007_v1 = vld [vmem:[#allocation2 + $0x2e0] sm:$0xf0] }
 0x276   : > { %v3505_v21 = vpop.f32.mrf.mxu2  ;;  %v3330_v33 = vpop.f32.mrf.mxu0 }
 0x277   : > { %v3594_v14 = vpop.f32.mrf.mxu3  ;;  %v3506_v3 = vadd.f32 %v3505_v21, %v3417_v58  ;;  %v3419_v15 = vpop.f32.mrf.mxu1  ;;  %v3331_v27 = vadd.f32 %v3330_v33, %v7125_v24  ;;  %v6259_v24 = vld [vmem:[#allocation2 + $0x224] sm:$0xf]  ;;  %v6268_v58 = vld [vmem:[#allocation2 + $0x264] sm:$0xf0] }
 0x278   : > { %v4946_v39 = vor.u32 %v6259_v24, %v4943_v49  ;;  %v4950_v21 = vor.u32 %v6268_v58, %v4949_v56  ;;  %v6563_v33 = vld [vmem:[%s6999_s6 + $0x3a0] sm:$0xff]  ;;  %v5013_v24 = vld [vmem:[#allocation2 + $0x2a8] sm:$0xf]  ;;  %v6276_v56 = vld [vmem:[#allocation2 + $0x2ac] sm:$0xf] }
 0x279   : > { %v7242_v26 = vadd.f32 %v3594_v14, %v3506_v3  ;;  %v3420_v30 = vadd.f32 %v3419_v15, %v3331_v27  ;;  %3645 = vmatmul.bf16.gmra.mxu0 %v4878_v18  ;;  %v4954_v14 = vor.u32 %v6260_v20, %v4951_v63  ;;  %v6547_v15 = vld [vmem:[%s6999_s6 + $0x320] sm:$0xff]  ;;  %4159 = vmatpush.bf16.msrb.mxu2 %v6563_v33  ;;  %v6284_v49 = vld [vmem:[#allocation2 + $0x2e4] sm:$0xf0]  ;;  %v5015_v58 = vld [vmem:[#allocation2 + $0x2e8] sm:$0xf0] }
 0x27a   : > { %3734 = vmatmul.bf16.gmra.mxu1 %v4882_v22  ;;  %3981 = vmatpush.bf16.msrb.mxu0 %v6547_v15 }
 0x27b   : > { %3823 = vmatmul.bf16.gmra.mxu2 %v4886_v57  ;;  %v6571_v57 = vld [vmem:[%s6999_s6 + $0x3e0] sm:$0xff] }
 0x27c   : > { %3912 = vmatmul.bf16.gmra.mxu3 %v4890_v37 }
 0x27d   : > { %4248 = vmatpush.bf16.msrb.mxu3 %v6571_v57 }
 0x27e   : > { %v3508_v34 = vpop.f32.mrf.mxu2  ;;  %v3332_v2 = vpop.f32.mrf.mxu0 }
 0x27f   : > { %v3597_v62 = vpop.f32.mrf.mxu3  ;;  %v3509_v32 = vadd.f32 %v3508_v34, %v3420_v30  ;;  %v3421_v0 = vpop.f32.mrf.mxu1  ;;  %v3333_v25 = vadd.f32 %v3332_v2, %v7127_v52  ;;  %v6555_v2 = vld [vmem:[%s6999_s6 + $0x360] sm:$0xff] }
 0x280   : > { %4070 = vmatpush.bf16.msrb.mxu1 %v6555_v2  ;;  %v5077_v2 = vld [vmem:[#allocation2 + $0x328] sm:$0xf] }
 0x281   : > { %v7245_v42 = vadd.f32 %v3597_v62, %v3509_v32  ;;  %v3422_v48 = vadd.f32 %v3421_v0, %v3333_v25  ;;  %v5005_v25 = vld [vmem:[#allocation2 + $0x2a0] sm:$0xf] }
 0x286   : > { %v3510_v4 = vpop.f32.mrf.mxu2  ;;  %v3335_v52 = vpop.f32.mrf.mxu0 }
 0x287   : > { %v3599_v7 = vpop.f32.mrf.mxu3  ;;  %v3511_v54 = vadd.f32 %v3510_v4, %v3422_v48  ;;  %v3424_v10 = vpop.f32.mrf.mxu1  ;;  %v3336_v18 = vadd.f32 %v3335_v52, %v7132_v6  ;;  %v6283_v48 = vld [vmem:[#allocation2 + $0x2dc] sm:$0xf0]  ;;  %v5018_v52 = vor.u32 %v6276_v56, %v5015_v58 }
 0x288   : > { %v5006_v4 = vor.u32 %v6283_v48, %v5005_v25  ;;  %v6292_v25 = vld [vmem:[#allocation2 + $0x32c] sm:$0xf] }
 0x289   : > { %v7248_v22 = vadd.f32 %v3599_v7, %v3511_v54  ;;  %v3425_v3 = vadd.f32 %v3424_v10, %v3336_v18  ;;  %3650 = vmatmul.bf16.gmra.mxu0 %v4942_v11  ;;  %v5010_v7 = vor.u32 %v6275_v50, %v5007_v1  ;;  %v5014_v54 = vor.u32 %v6284_v49, %v5013_v24  ;;  %v5079_v48 = vld [vmem:[#allocation2 + $0x368] sm:$0xf0] }
 0x28a   : > { %3739 = vmatmul.bf16.gmra.mxu1 %v4946_v39 }
 0x28b   : > { %3828 = vmatmul.bf16.gmra.mxu2 %v4950_v21 }
 0x28c   : > { %3917 = vmatmul.bf16.gmra.mxu3 %v4954_v14 }
 0x28e   : > { %v3513_v37 = vpop.f32.mrf.mxu2  ;;  %v3337_v34 = vpop.f32.mrf.mxu0 }
 0x28f   : > { %v3602_v27 = vpop.f32.mrf.mxu3  ;;  %v3514_v30 = vadd.f32 %v3513_v37, %v3425_v3  ;;  %v3426_v62 = vpop.f32.mrf.mxu1  ;;  %v3338_v6 = vadd.f32 %v3337_v34, %v7135_v38  ;;  %v5069_v34 = vld [vmem:[#allocation2 + $0x320] sm:$0xf] }
 0x291   : > { %v7254_v32 = vadd.f32 %v3602_v27, %v3514_v30  ;;  %v3427_v0 = vadd.f32 %v3426_v62, %v3338_v6  ;;  %v6299_v62 = vld [vmem:[#allocation2 + $0x35c] sm:$0xf0]  ;;  %v5071_v6 = vld [vmem:[#allocation2 + $0x360] sm:$0xf0] }
 0x292   : > { %v5070_v24 = vor.u32 %v6299_v62, %v5069_v34  ;;  %v6307_v34 = vld [vmem:[#allocation2 + $0x3a4] sm:$0xf] }
 0x293   : > { %v5135_v62 = vld [vmem:[#allocation2 + $0x3e0] sm:$0xf0] }
 0x296   : > { %v3515_v20 = vpop.f32.mrf.mxu2  ;;  %v3340_v39 = vpop.f32.mrf.mxu0 }
 0x297   : > { %v3604_v63 = vpop.f32.mrf.mxu3  ;;  %v3516_v11 = vadd.f32 %v3515_v20, %v3427_v0  ;;  %v3429_v38 = vpop.f32.mrf.mxu1  ;;  %v3341_v10 = vadd.f32 %v3340_v39, %v7137_v47  ;;  %v6291_v47 = vld [vmem:[#allocation2 + $0x324] sm:$0xf]  ;;  %v6300_v0 = vld [vmem:[#allocation2 + $0x364] sm:$0xf0]  ;;  %v6562_v39 = vld [vmem:[%s6999_s6 + $0x398] sm:$0xff] }
 0x298   : > { %v5074_v49 = vor.u32 %v6291_v47, %v5071_v6  ;;  %v5078_v20 = vor.u32 %v6300_v0, %v5077_v2  ;;  %4160 = vmatpush.bf16.msrb.mxu2 %v6562_v39  ;;  %v5141_v47 = vld [vmem:[#allocation2 + $0x3a8] sm:$0xf]  ;;  %v6308_v2 = vld [vmem:[#allocation2 + $0x3ac] sm:$0xf] }
 0x299   : > { %v7258_v21 = vadd.f32 %v3604_v63, %v3516_v11  ;;  %v3430_v14 = vadd.f32 %v3429_v38, %v3341_v10  ;;  %3655 = vmatmul.bf16.gmra.mxu0 %v5006_v4  ;;  %v5082_v63 = vor.u32 %v6292_v25, %v5079_v48  ;;  %v6546_v38 = vld [vmem:[%s6999_s6 + $0x318] sm:$0xff]  ;;  %v6316_v6 = vld [vmem:[#allocation2 + $0x3e4] sm:$0xf0]  ;;  %v5143_v0 = vld [vmem:[#allocation2 + $0x3e8] sm:$0xf0] }
 0x29a   : > { %3744 = vmatmul.bf16.gmra.mxu1 %v5010_v7  ;;  %3982 = vmatpush.bf16.msrb.mxu0 %v6546_v38 }
 0x29b   : > { %3833 = vmatmul.bf16.gmra.mxu2 %v5014_v54  ;;  %v6570_v54 = vld [vmem:[%s6999_s6 + $0x3d8] sm:$0xff] }
 0x29c   : > { %3922 = vmatmul.bf16.gmra.mxu3 %v5018_v52 }
 0x29d   : > { %4249 = vmatpush.bf16.msrb.mxu3 %v6570_v54 }
 0x29e   : > { %v3518_v18 = vpop.f32.mrf.mxu2  ;;  %v3342_v15 = vpop.f32.mrf.mxu0 }
 0x29f   : > { %v3607_v3 = vpop.f32.mrf.mxu3  ;;  %v3519_v33 = vadd.f32 %v3518_v18, %v3430_v14  ;;  %v3431_v57 = vpop.f32.mrf.mxu1  ;;  %v3343_v37 = vadd.f32 %v3342_v15, %v7139_v16  ;;  %v6554_v15 = vld [vmem:[%s6999_s6 + $0x358] sm:$0xff] }
 0x2a0   : > { %4071 = vmatpush.bf16.msrb.mxu1 %v6554_v15  ;;  %v5205_v15 = vld [vmem:[#allocation2 + $0x428] sm:$0xf] }
 0x2a1   : > { %v7261_v27 = vadd.f32 %v3607_v3, %v3519_v33  ;;  %v3432_v30 = vadd.f32 %v3431_v57, %v3343_v37  ;;  %v5133_v37 = vld [vmem:[#allocation2 + $0x3a0] sm:$0xf] }
 0x2a6   : > { %v3520_v50 = vpop.f32.mrf.mxu2  ;;  %v3345_v16 = vpop.f32.mrf.mxu0 }
 0x2a7   : > { %v3609_v1 = vpop.f32.mrf.mxu3  ;;  %v3521_v56 = vadd.f32 %v3520_v50, %v3432_v30  ;;  %v3434_v58 = vpop.f32.mrf.mxu1  ;;  %v3346_v4 = vadd.f32 %v3345_v16, %v7144_v31  ;;  %v6315_v30 = vld [vmem:[#allocation2 + $0x3dc] sm:$0xf0]  ;;  %v5146_v16 = vor.u32 %v6308_v2, %v5143_v0 }
 0x2a8   : > { %v5134_v50 = vor.u32 %v6315_v30, %v5133_v37  ;;  %v6324_v37 = vld [vmem:[#allocation2 + $0x42c] sm:$0xf] }
 0x2a9   : > { %v7264_v7 = vadd.f32 %v3609_v1, %v3521_v56  ;;  %v3435_v11 = vadd.f32 %v3434_v58, %v3346_v4  ;;  %3660 = vmatmul.bf16.gmra.mxu0 %v5070_v24  ;;  %v5138_v1 = vor.u32 %v6307_v34, %v5135_v62  ;;  %v5142_v56 = vor.u32 %v6316_v6, %v5141_v47  ;;  %v5207_v30 = vld [vmem:[#allocation2 + $0x468] sm:$0xf0] }
 0x2aa   : > { %3749 = vmatmul.bf16.gmra.mxu1 %v5074_v49 }
 0x2ab   : > { %3838 = vmatmul.bf16.gmra.mxu2 %v5078_v20 }
 0x2ac   : > { %3927 = vmatmul.bf16.gmra.mxu3 %v5082_v63 }
 0x2ae   : > { %v3523_v52 = vpop.f32.mrf.mxu2  ;;  %v3347_v18 = vpop.f32.mrf.mxu0 }
 0x2af   : > { %v3612_v10 = vpop.f32.mrf.mxu3  ;;  %v3524_v14 = vadd.f32 %v3523_v52, %v3435_v11  ;;  %v3436_v3 = vpop.f32.mrf.mxu1  ;;  %v3348_v31 = vadd.f32 %v3347_v18, %v7147_v5  ;;  %v5197_v18 = vld [vmem:[#allocation2 + $0x420] sm:$0xf] }
 0x2b1   : > { %v7270_v33 = vadd.f32 %v3612_v10, %v3524_v14  ;;  %v3437_v57 = vadd.f32 %v3436_v3, %v3348_v31  ;;  %v6331_v3 = vld [vmem:[#allocation2 + $0x45c] sm:$0xf0]  ;;  %v5199_v31 = vld [vmem:[#allocation2 + $0x460] sm:$0xf0] }
 0x2b2   : > { %v5198_v47 = vor.u32 %v6331_v3, %v5197_v18  ;;  %v6339_v18 = vld [vmem:[#allocation2 + $0x4a4] sm:$0xf] }
 0x2b3   : > { %v5263_v3 = vld [vmem:[#allocation2 + $0x4e0] sm:$0xf0] }
 0x2b6   : > { %v3525_v25 = vpop.f32.mrf.mxu2  ;;  %v3350_v49 = vpop.f32.mrf.mxu0 }
 0x2b7   : > { %v3614_v48 = vpop.f32.mrf.mxu3  ;;  %v3526_v24 = vadd.f32 %v3525_v25, %v3437_v57  ;;  %v3439_v5 = vpop.f32.mrf.mxu1  ;;  %v3351_v58 = vadd.f32 %v3350_v49, %v7149_v17  ;;  %v6323_v17 = vld [vmem:[#allocation2 + $0x424] sm:$0xf]  ;;  %v6332_v57 = vld [vmem:[#allocation2 + $0x464] sm:$0xf0]  ;;  %v6561_v49 = vld [vmem:[%s6999_s6 + $0x390] sm:$0xff] }
 0x2b8   : > { %v5202_v6 = vor.u32 %v6323_v17, %v5199_v31  ;;  %v5206_v25 = vor.u32 %v6332_v57, %v5205_v15  ;;  %4161 = vmatpush.bf16.msrb.mxu2 %v6561_v49  ;;  %v5269_v17 = vld [vmem:[#allocation2 + $0x4a8] sm:$0xf]  ;;  %v6340_v15 = vld [vmem:[#allocation2 + $0x4ac] sm:$0xf] }
 0x2b9   : > { %v7274_v20 = vadd.f32 %v3614_v48, %v3526_v24  ;;  %v3440_v63 = vadd.f32 %v3439_v5, %v3351_v58  ;;  %3665 = vmatmul.bf16.gmra.mxu0 %v5134_v50  ;;  %v5210_v48 = vor.u32 %v6324_v37, %v5207_v30  ;;  %v6545_v5 = vld [vmem:[%s6999_s6 + $0x310] sm:$0xff]  ;;  %v6348_v31 = vld [vmem:[#allocation2 + $0x4e4] sm:$0xf0]  ;;  %v5271_v57 = vld [vmem:[#allocation2 + $0x4e8] sm:$0xf0] }
 0x2ba   : > { %3754 = vmatmul.bf16.gmra.mxu1 %v5138_v1  ;;  %3983 = vmatpush.bf16.msrb.mxu0 %v6545_v5 }
 0x2bb   : > { %3843 = vmatmul.bf16.gmra.mxu2 %v5142_v56  ;;  %v6569_v56 = vld [vmem:[%s6999_s6 + $0x3d0] sm:$0xff] }
 0x2bc   : > { %3932 = vmatmul.bf16.gmra.mxu3 %v5146_v16 }
 0x2bd   : > { %4250 = vmatpush.bf16.msrb.mxu3 %v6569_v56 }
 0x2be   : > { %v3528_v4 = vpop.f32.mrf.mxu2  ;;  %v3352_v38 = vpop.f32.mrf.mxu0 }
 0x2bf   : > { %v3617_v11 = vpop.f32.mrf.mxu3  ;;  %v3529_v39 = vadd.f32 %v3528_v4, %v3440_v63  ;;  %v3441_v54 = vpop.f32.mrf.mxu1  ;;  %v3353_v52 = vadd.f32 %v3352_v38, %v7152_v51  ;;  %v6553_v38 = vld [vmem:[%s6999_s6 + $0x350] sm:$0xff] }
 0x2c0   : > { %4072 = vmatpush.bf16.msrb.mxu1 %v6553_v38  ;;  %v5333_v38 = vld [vmem:[#allocation2 + $0x528] sm:$0xf] }
 0x2c1   : > { %v7277_v10 = vadd.f32 %v3617_v11, %v3529_v39  ;;  %v3442_v14 = vadd.f32 %v3441_v54, %v3353_v52  ;;  %v5261_v52 = vld [vmem:[#allocation2 + $0x4a0] sm:$0xf] }
 0x2c6   : > { %v3530_v34 = vpop.f32.mrf.mxu2  ;;  %v3631_v51 = vpop.f32.mrf.mxu0 }
 0x2c7   : > { %v3619_v62 = vpop.f32.mrf.mxu3  ;;  %v3531_v2 = vadd.f32 %v3530_v34, %v3442_v14  ;;  %v3720_v0 = vpop.f32.mrf.mxu1  ;;  %v3632_v50 = vadd.f32 %v3631_v51, %v7158_v9  ;;  %v6347_v14 = vld [vmem:[#allocation2 + $0x4dc] sm:$0xf0]  ;;  %v5274_v51 = vor.u32 %v6340_v15, %v5271_v57 }
 0x2c8   : > { %v5262_v34 = vor.u32 %v6347_v14, %v5261_v52  ;;  %v6356_v52 = vld [vmem:[#allocation2 + $0x52c] sm:$0xf] }
 0x2c9   : > { %v7280_v1 = vadd.f32 %v3619_v62, %v3531_v2  ;;  %v3721_v24 = vadd.f32 %v3720_v0, %v3632_v50  ;;  %3670 = vmatmul.bf16.gmra.mxu0 %v5198_v47  ;;  %v5266_v62 = vor.u32 %v6339_v18, %v5263_v3  ;;  %v5270_v2 = vor.u32 %v6348_v31, %v5269_v17  ;;  %v5335_v14 = vld [vmem:[#allocation2 + $0x568] sm:$0xf0] }
 0x2ca   : > { %3759 = vmatmul.bf16.gmra.mxu1 %v5202_v6 }
 0x2cb   : > { %3848 = vmatmul.bf16.gmra.mxu2 %v5206_v25 }
 0x2cc   : > { %3937 = vmatmul.bf16.gmra.mxu3 %v5210_v48 }
 0x2ce   : > { %v3809_v16 = vpop.f32.mrf.mxu2  ;;  %v3633_v4 = vpop.f32.mrf.mxu0 }
 0x2cf   : > { %v3898_v58 = vpop.f32.mrf.mxu3  ;;  %v3810_v63 = vadd.f32 %v3809_v16, %v3721_v24  ;;  %v3722_v11 = vpop.f32.mrf.mxu1  ;;  %v3634_v9 = vadd.f32 %v3633_v4, %v7162_v46  ;;  %v5325_v4 = vld [vmem:[#allocation2 + $0x520] sm:$0xf] }
 0x2d1   : > { %v7286_v39 = vadd.f32 %v3898_v58, %v3810_v63  ;;  %v3723_v54 = vadd.f32 %v3722_v11, %v3634_v9  ;;  %v6363_v11 = vld [vmem:[#allocation2 + $0x55c] sm:$0xf0]  ;;  %v5327_v9 = vld [vmem:[#allocation2 + $0x560] sm:$0xf0] }
 0x2d2   : > { %v5326_v17 = vor.u32 %v6363_v11, %v5325_v4  ;;  %v6371_v4 = vld [vmem:[#allocation2 + $0x5a4] sm:$0xf] }
 0x2d3   : > { %v5391_v11 = vld [vmem:[#allocation2 + $0x5e0] sm:$0xf0] }
 0x2d6   : > { %v3811_v37 = vpop.f32.mrf.mxu2  ;;  %v3636_v6 = vpop.f32.mrf.mxu0 }
 0x2d7   : > { %v3900_v30 = vpop.f32.mrf.mxu3  ;;  %v3812_v47 = vadd.f32 %v3811_v37, %v3723_v54  ;;  %v3725_v46 = vpop.f32.mrf.mxu1  ;;  %v3637_v0 = vadd.f32 %v3636_v6, %v7165_v61  ;;  %v6355_v61 = vld [vmem:[#allocation2 + $0x524] sm:$0xf]  ;;  %v6364_v54 = vld [vmem:[#allocation2 + $0x564] sm:$0xf0] }
 0x2d8   : > { %v5330_v31 = vor.u32 %v6355_v61, %v5327_v9  ;;  %v5334_v37 = vor.u32 %v6364_v54, %v5333_v38  ;;  %v6560_v6 = vld [vmem:[%s6999_s6 + $0x388] sm:$0xff] }
 0x2d9   : > { %v7290_v25 = vadd.f32 %v3900_v30, %v3812_v47  ;;  %v3726_v48 = vadd.f32 %v3725_v46, %v3637_v0  ;;  %3675 = vmatmul.bf16.gmra.mxu0 %v5262_v34  ;;  %v5338_v30 = vor.u32 %v6356_v52, %v5335_v14  ;;  %v6544_v46 = vld [vmem:[%s6999_s6 + $0x308] sm:$0xff]  ;;  %4162 = vmatpush.bf16.msrb.mxu2 %v6560_v6 }
 0x2da   : > { %3764 = vmatmul.bf16.gmra.mxu1 %v5266_v62  ;;  %3984 = vmatpush.bf16.msrb.mxu0 %v6544_v46  ;;  %v5397_v61 = vld [vmem:[#allocation2 + $0x5a8] sm:$0xf]  ;;  %v6372_v38 = vld [vmem:[#allocation2 + $0x5ac] sm:$0xf] }
 0x2db   : > { %3853 = vmatmul.bf16.gmra.mxu2 %v5270_v2  ;;  %v6568_v2 = vld [vmem:[%s6999_s6 + $0x3c8] sm:$0xff] }
 0x2dc   : > { %3942 = vmatmul.bf16.gmra.mxu3 %v5274_v51  ;;  %v6380_v9 = vld [vmem:[#allocation2 + $0x5e4] sm:$0xf0]  ;;  %v5399_v54 = vld [vmem:[#allocation2 + $0x5e8] sm:$0xf0] }
 0x2dd   : > { %4251 = vmatpush.bf16.msrb.mxu3 %v6568_v2 }
 0x2de   : > { %v3814_v50 = vpop.f32.mrf.mxu2  ;;  %v3638_v5 = vpop.f32.mrf.mxu0 }
 0x2df   : > { %v3903_v24 = vpop.f32.mrf.mxu3  ;;  %v3815_v49 = vadd.f32 %v3814_v50, %v3726_v48  ;;  %v3727_v56 = vpop.f32.mrf.mxu1  ;;  %v3639_v16 = vadd.f32 %v3638_v5, %v7168_v35  ;;  %v6552_v5 = vld [vmem:[%s6999_s6 + $0x348] sm:$0xff] }
 0x2e0   : > { %4073 = vmatpush.bf16.msrb.mxu1 %v6552_v5  ;;  %v5461_v5 = vld [vmem:[#allocation2 + $0x628] sm:$0xf] }
 0x2e1   : > { %v7293_v58 = vadd.f32 %v3903_v24, %v3815_v49  ;;  %v3728_v63 = vadd.f32 %v3727_v56, %v3639_v16  ;;  %v5389_v16 = vld [vmem:[#allocation2 + $0x5a0] sm:$0xf] }
 0x2e6   : > { %v3816_v18 = vpop.f32.mrf.mxu2  ;;  %v3641_v35 = vpop.f32.mrf.mxu0 }
 0x2e7   : > { %v3905_v3 = vpop.f32.mrf.mxu3  ;;  %v3817_v15 = vadd.f32 %v3816_v18, %v3728_v63  ;;  %v3730_v57 = vpop.f32.mrf.mxu1  ;;  %v3642_v34 = vadd.f32 %v3641_v35, %v7174_v55  ;;  %v6379_v63 = vld [vmem:[#allocation2 + $0x5dc] sm:$0xf0]  ;;  %v5402_v35 = vor.u32 %v6372_v38, %v5399_v54 }
 0x2e8   : > { %v5390_v18 = vor.u32 %v6379_v63, %v5389_v16  ;;  %v6388_v16 = vld [vmem:[#allocation2 + $0x62c] sm:$0xf] }
 0x2e9   : > { %v7296_v62 = vadd.f32 %v3905_v3, %v3817_v15  ;;  %v3731_v47 = vadd.f32 %v3730_v57, %v3642_v34  ;;  %3680 = vmatmul.bf16.gmra.mxu0 %v5326_v17  ;;  %v5394_v3 = vor.u32 %v6371_v4, %v5391_v11  ;;  %v5398_v15 = vor.u32 %v6380_v9, %v5397_v61  ;;  %v5463_v63 = vld [vmem:[#allocation2 + $0x668] sm:$0xf0] }
 0x2ea   : > { %3769 = vmatmul.bf16.gmra.mxu1 %v5330_v31 }
 0x2eb   : > { %3858 = vmatmul.bf16.gmra.mxu2 %v5334_v37 }
 0x2ec   : > { %3947 = vmatmul.bf16.gmra.mxu3 %v5338_v30 }
 0x2ee   : > { %v3819_v51 = vpop.f32.mrf.mxu2  ;;  %v3643_v50 = vpop.f32.mrf.mxu0 }
 0x2ef   : > { %v3908_v0 = vpop.f32.mrf.mxu3  ;;  %v3820_v48 = vadd.f32 %v3819_v51, %v3731_v47  ;;  %v3732_v24 = vpop.f32.mrf.mxu1  ;;  %v3644_v55 = vadd.f32 %v3643_v50, %v7178_v29  ;;  %v5453_v50 = vld [vmem:[#allocation2 + $0x620] sm:$0xf] }
 0x2f1   : > { %v7302_v49 = vadd.f32 %v3908_v0, %v3820_v48  ;;  %v3733_v56 = vadd.f32 %v3732_v24, %v3644_v55  ;;  %v6395_v24 = vld [vmem:[#allocation2 + $0x65c] sm:$0xf0]  ;;  %v5455_v55 = vld [vmem:[#allocation2 + $0x660] sm:$0xf0] }
 0x2f2   : > { %v5454_v61 = vor.u32 %v6395_v24, %v5453_v50  ;;  %v6403_v50 = vld [vmem:[#allocation2 + $0x6a4] sm:$0xf] }
 0x2f3   : > { %v5519_v24 = vld [vmem:[#allocation2 + $0x6e0] sm:$0xf0] }
 0x2f6   : > { %v3821_v52 = vpop.f32.mrf.mxu2  ;;  %v3646_v31 = vpop.f32.mrf.mxu0 }
 0x2f7   : > { %v3910_v14 = vpop.f32.mrf.mxu3  ;;  %v3822_v17 = vadd.f32 %v3821_v52, %v3733_v56  ;;  %v3735_v29 = vpop.f32.mrf.mxu1  ;;  %v3647_v57 = vadd.f32 %v3646_v31, %v7181_v45  ;;  %v6387_v45 = vld [vmem:[#allocation2 + $0x624] sm:$0xf]  ;;  %v6396_v56 = vld [vmem:[#allocation2 + $0x664] sm:$0xf0] }
 0x2f8   : > { %v5458_v9 = vor.u32 %v6387_v45, %v5455_v55  ;;  %v5462_v52 = vor.u32 %v6396_v56, %v5461_v5  ;;  %v6559_v31 = vld [vmem:[%s6999_s6 + $0x380] sm:$0xff]  ;;  %v5525_v45 = vld [vmem:[#allocation2 + $0x6a8] sm:$0xf]  ;;  %v6404_v5 = vld [vmem:[#allocation2 + $0x6ac] sm:$0xf] }
 0x2f9   : > { %v7306_v37 = vadd.f32 %v3910_v14, %v3822_v17  ;;  %v3736_v30 = vadd.f32 %v3735_v29, %v3647_v57  ;;  %3685 = vmatmul.bf16.gmra.mxu0 %v5390_v18  ;;  %v5466_v14 = vor.u32 %v6388_v16, %v5463_v63  ;;  %v6543_v29 = vld [vmem:[%s6999_s6 + $0x300] sm:$0xff]  ;;  %4163 = vmatpush.bf16.msrb.mxu2 %v6559_v31  ;;  %v6412_v55 = vld [vmem:[#allocation2 + $0x6e4] sm:$0xf0]  ;;  %v5527_v56 = vld [vmem:[#allocation2 + $0x6e8] sm:$0xf0] }
 0x2fa   : > { %3774 = vmatmul.bf16.gmra.mxu1 %v5394_v3  ;;  %3985 = vmatpush.bf16.msrb.mxu0 %v6543_v29 }
 0x2fb   : > { %3863 = vmatmul.bf16.gmra.mxu2 %v5398_v15  ;;  %v6567_v15 = vld [vmem:[%s6999_s6 + $0x3c0] sm:$0xff] }
 0x2fc   : > { %3952 = vmatmul.bf16.gmra.mxu3 %v5402_v35 }
 0x2fd   : > { %4252 = vmatpush.bf16.msrb.mxu3 %v6567_v15 }
 0x2fe   : > { %v3824_v34 = vpop.f32.mrf.mxu2  ;;  %v3648_v46 = vpop.f32.mrf.mxu0 }
 0x2ff   : > { %v3913_v47 = vpop.f32.mrf.mxu3  ;;  %v3825_v6 = vadd.f32 %v3824_v34, %v3736_v30  ;;  %v3737_v2 = vpop.f32.mrf.mxu1  ;;  %v3649_v51 = vadd.f32 %v3648_v46, %v7184_v19  ;;  %v6551_v46 = vld [vmem:[%s6999_s6 + $0x340] sm:$0xff] }
 0x300   : > { %4074 = vmatpush.bf16.msrb.mxu1 %v6551_v46  ;;  %v5589_v46 = vld [vmem:[#allocation2 + $0x728] sm:$0xf] }
 0x301   : > { %v7309_v0 = vadd.f32 %v3913_v47, %v3825_v6  ;;  %v3738_v48 = vadd.f32 %v3737_v2, %v3649_v51  ;;  %v5517_v51 = vld [vmem:[#allocation2 + $0x6a0] sm:$0xf] }
 0x306   : > { %v3826_v4 = vpop.f32.mrf.mxu2  ;;  %v3651_v19 = vpop.f32.mrf.mxu0 }
 0x307   : > { %v3915_v11 = vpop.f32.mrf.mxu3  ;;  %v3827_v38 = vadd.f32 %v3826_v4, %v3738_v48  ;;  %v3740_v54 = vpop.f32.mrf.mxu1  ;;  %v3652_v18 = vadd.f32 %v3651_v19, %v7190_v41  ;;  %v6411_v48 = vld [vmem:[#allocation2 + $0x6dc] sm:$0xf0]  ;;  %v5530_v19 = vor.u32 %v6404_v5, %v5527_v56 }
 0x308   : > { %v5518_v4 = vor.u32 %v6411_v48, %v5517_v51  ;;  %v6420_v51 = vld [vmem:[#allocation2 + $0x72c] sm:$0xf] }
 0x309   : > { %v7312_v3 = vadd.f32 %v3915_v11, %v3827_v38  ;;  %v3741_v17 = vadd.f32 %v3740_v54, %v3652_v18  ;;  %3690 = vmatmul.bf16.gmra.mxu0 %v5454_v61  ;;  %v5522_v11 = vor.u32 %v6403_v50, %v5519_v24  ;;  %v5526_v38 = vor.u32 %v6412_v55, %v5525_v45  ;;  %v5591_v48 = vld [vmem:[#allocation2 + $0x768] sm:$0xf0] }
 0x30a   : > { %3779 = vmatmul.bf16.gmra.mxu1 %v5458_v9 }
 0x30b   : > { %3868 = vmatmul.bf16.gmra.mxu2 %v5462_v52 }
 0x30c   : > { %3957 = vmatmul.bf16.gmra.mxu3 %v5466_v14 }
 0x30e   : > { %v3829_v35 = vpop.f32.mrf.mxu2  ;;  %v3653_v34 = vpop.f32.mrf.mxu0 }
 0x30f   : > { %v3918_v57 = vpop.f32.mrf.mxu3  ;;  %v3830_v30 = vadd.f32 %v3829_v35, %v3741_v17  ;;  %v3742_v47 = vpop.f32.mrf.mxu1  ;;  %v3654_v41 = vadd.f32 %v3653_v34, %v7194_v13  ;;  %v5581_v34 = vld [vmem:[#allocation2 + $0x720] sm:$0xf] }
 0x311   : > { %v7318_v6 = vadd.f32 %v3918_v57, %v3830_v30  ;;  %v3743_v2 = vadd.f32 %v3742_v47, %v3654_v41  ;;  %v6427_v47 = vld [vmem:[#allocation2 + $0x75c] sm:$0xf0]  ;;  %v5583_v41 = vld [vmem:[#allocation2 + $0x760] sm:$0xf0] }
 0x312   : > { %v5582_v45 = vor.u32 %v6427_v47, %v5581_v34  ;;  %v6436_v34 = vld [vmem:[#allocation2 + $0x7ac] sm:$0xf] }
 0x313   : > { %v5655_v47 = vld [vmem:[#allocation2 + $0x7e8] sm:$0xf0] }
 0x316   : > { %v3831_v16 = vpop.f32.mrf.mxu2  ;;  %v3656_v9 = vpop.f32.mrf.mxu0 }
 0x317   : > { %v3920_v63 = vpop.f32.mrf.mxu3  ;;  %v3832_v61 = vadd.f32 %v3831_v16, %v3743_v2  ;;  %v3745_v13 = vpop.f32.mrf.mxu1  ;;  %v3657_v54 = vadd.f32 %v3656_v9, %v7197_v28  ;;  %v6419_v28 = vld [vmem:[#allocation2 + $0x724] sm:$0xf]  ;;  %v6428_v2 = vld [vmem:[#allocation2 + $0x764] sm:$0xf0] }
 0x318   : > { %v5586_v55 = vor.u32 %v6419_v28, %v5583_v41 }
 0x319   : > { %v7322_v52 = vadd.f32 %v3920_v63, %v3832_v61  ;;  %v3746_v14 = vadd.f32 %v3745_v13, %v3657_v54  ;;  %3695 = vmatmul.bf16.gmra.mxu0 %v5518_v4  ;;  %v5590_v63 = vor.u32 %v6428_v2, %v5589_v46 }
 0x31a   : > { %3784 = vmatmul.bf16.gmra.mxu1 %v5522_v11 }
 0x31b   : > { %3873 = vmatmul.bf16.gmra.mxu2 %v5526_v38 }
 0x31c   : > { %3962 = vmatmul.bf16.gmra.mxu3 %v5530_v19 }
 0x31e   : > { %v3834_v18 = vpop.f32.mrf.mxu2  ;;  %v3658_v29 = vpop.f32.mrf.mxu0 }
 0x31f   : > { %v3923_v17 = vpop.f32.mrf.mxu3  ;;  %v3835_v31 = vadd.f32 %v3834_v18, %v3746_v14  ;;  %v3747_v15 = vpop.f32.mrf.mxu1  ;;  %v3659_v35 = vadd.f32 %v3658_v29, %v7200_v8  ;;  %v5594_v8 = vor.u32 %v6420_v51, %v5591_v48  ;;  %v6443_v29 = vld [vmem:[#allocation2 + $0x7dc] sm:$0xf0] }
 0x321   : > { %v7325_v57 = vadd.f32 %v3923_v17, %v3835_v31  ;;  %v3748_v30 = vadd.f32 %v3747_v15, %v3659_v35  ;;  %v5645_v31 = vld [vmem:[#allocation2 + $0x7a0] sm:$0xf]  ;;  %v5647_v15 = vld [vmem:[#allocation2 + $0x7e0] sm:$0xf0]  ;;  %v5653_v35 = vld [vmem:[#allocation2 + $0x7a8] sm:$0xf] }
 0x322   : > { %v5646_v46 = vor.u32 %v6443_v29, %v5645_v31  ;;  %v6198_v31 = vld [vmem:[#allocation2 + $0x3c] sm:$0xf] }
 0x323   : > { %v4711_v29 = vld [vmem:[#allocation2 + $0x78] sm:$0xf0] }
 0x326   : > { %v3836_v50 = vpop.f32.mrf.mxu2  ;;  %v3661_v56 = vpop.f32.mrf.mxu0 }
 0x327   : > { %v3925_v24 = vpop.f32.mrf.mxu3  ;;  %v3837_v5 = vadd.f32 %v3836_v50, %v3748_v30  ;;  %v3750_v16 = vpop.f32.mrf.mxu1  ;;  %v3662_v4 = vadd.f32 %v3661_v56, %v7206_v23  ;;  %v6435_v23 = vld [vmem:[#allocation2 + $0x7a4] sm:$0xf]  ;;  %v6444_v30 = vld [vmem:[#allocation2 + $0x7e4] sm:$0xf0] }
 0x328   : > { %v5650_v2 = vor.u32 %v6435_v23, %v5647_v15 }
 0x329   : > { %v7328_v11 = vadd.f32 %v3925_v24, %v3837_v5  ;;  %v3751_v61 = vadd.f32 %v3750_v16, %v3662_v4  ;;  %3700 = vmatmul.bf16.gmra.mxu0 %v5582_v45  ;;  %v5654_v24 = vor.u32 %v6444_v30, %v5653_v35 }
 0x32a   : > { %3789 = vmatmul.bf16.gmra.mxu1 %v5586_v55 }
 0x32b   : > { %3878 = vmatmul.bf16.gmra.mxu2 %v5590_v63 }
 0x32c   : > { %3967 = vmatmul.bf16.gmra.mxu3 %v5594_v8 }
 0x32e   : > { %v3839_v9 = vpop.f32.mrf.mxu2  ;;  %v3663_v19 = vpop.f32.mrf.mxu0 }
 0x32f   : > { %v3928_v13 = vpop.f32.mrf.mxu3  ;;  %v3840_v38 = vadd.f32 %v3839_v9, %v3751_v61  ;;  %v3752_v54 = vpop.f32.mrf.mxu1  ;;  %v3664_v14 = vadd.f32 %v3663_v19, %v7210_v60  ;;  %v5658_v60 = vor.u32 %v6436_v34, %v5655_v47  ;;  %v6205_v19 = vld [vmem:[#allocation2 + $0x6c] sm:$0xf0] }
 0x331   : > { %v7331_v18 = vadd.f32 %v3928_v13, %v3840_v38  ;;  %v3753_v17 = vadd.f32 %v3752_v54, %v3664_v14  ;;  %v4701_v38 = vld [vmem:[#allocation2 + $0x30] sm:$0xf]  ;;  %v4703_v54 = vld [vmem:[#allocation2 + $0x70] sm:$0xf0]  ;;  %v4709_v14 = vld [vmem:[#allocation2 + $0x38] sm:$0xf] }
 0x332   : > { %v4702_v35 = vor.u32 %v6205_v19, %v4701_v38  ;;  %v6214_v38 = vld [vmem:[#allocation2 + $0xbc] sm:$0xf] }
 0x333   : > { %v4775_v19 = vld [vmem:[#allocation2 + $0xf8] sm:$0xf0] }
 0x336   : > { %v3841_v28 = vpop.f32.mrf.mxu2  ;;  %v3666_v48 = vpop.f32.mrf.mxu0 }
 0x337   : > { %v3930_v41 = vpop.f32.mrf.mxu3  ;;  %v3842_v51 = vadd.f32 %v3841_v28, %v3753_v17  ;;  %v3755_v50 = vpop.f32.mrf.mxu1  ;;  %v3667_v45 = vadd.f32 %v3666_v48, %v7213_v12  ;;  %v6197_v12 = vld [vmem:[#allocation2 + $0x34] sm:$0xf]  ;;  %v6206_v17 = vld [vmem:[#allocation2 + $0x74] sm:$0xf0] }
 0x338   : > { %v4706_v30 = vor.u32 %v6197_v12, %v4703_v54 }
 0x339   : > { %v7334_v55 = vadd.f32 %v3930_v41, %v3842_v51  ;;  %v3756_v5 = vadd.f32 %v3755_v50, %v3667_v45  ;;  %3705 = vmatmul.bf16.gmra.mxu0 %v5646_v46  ;;  %v4714_v41 = vor.u32 %v6198_v31, %v4711_v29 }
 0x33a   : > { %3794 = vmatmul.bf16.gmra.mxu1 %v5650_v2 }
 0x33b   : > { %3883 = vmatmul.bf16.gmra.mxu2 %v5654_v24 }
 0x33c   : > { %3972 = vmatmul.bf16.gmra.mxu3 %v5658_v60 }
 0x33e   : > { %v3844_v56 = vpop.f32.mrf.mxu2  ;;  %v3668_v8 = vpop.f32.mrf.mxu0 }
 0x33f   : > { %v3933_v16 = vpop.f32.mrf.mxu3  ;;  %v3845_v63 = vadd.f32 %v3844_v56, %v3756_v5  ;;  %v3757_v4 = vpop.f32.mrf.mxu1  ;;  %v3669_v61 = vadd.f32 %v3668_v8, %v7216_v53  ;;  %v4710_v53 = vor.u32 %v6206_v17, %v4709_v14  ;;  %v6213_v8 = vld [vmem:[#allocation2 + $0xb4] sm:$0xf] }
 0x341   : > { %v7337_v9 = vadd.f32 %v3933_v16, %v3845_v63  ;;  %v3758_v13 = vadd.f32 %v3757_v4, %v3669_v61  ;;  %v4765_v63 = vld [vmem:[#allocation2 + $0xb0] sm:$0xf]  ;;  %v4767_v4 = vld [vmem:[#allocation2 + $0xf0] sm:$0xf0]  ;;  %v4773_v61 = vld [vmem:[#allocation2 + $0xb8] sm:$0xf] }
 0x342   : > { %v4770_v17 = vor.u32 %v6213_v8, %v4767_v4 }
 0x346   : > { %v3846_v23 = vpop.f32.mrf.mxu2  ;;  %v3671_v47 = vpop.f32.mrf.mxu0 }
 0x347   : > { %v3935_v15 = vpop.f32.mrf.mxu3  ;;  %v3847_v34 = vadd.f32 %v3846_v23, %v3758_v13  ;;  %v3760_v28 = vpop.f32.mrf.mxu1  ;;  %v3672_v46 = vadd.f32 %v3671_v47, %v7222_v44  ;;  %v6221_v44 = vld [vmem:[#allocation2 + $0xec] sm:$0xf0]  ;;  %v6222_v13 = vld [vmem:[#allocation2 + $0xf4] sm:$0xf0] }
 0x348   : > { %v4766_v14 = vor.u32 %v6221_v44, %v4765_v63  ;;  %v6230_v63 = vld [vmem:[#allocation2 + $0x13c] sm:$0xf] }
 0x349   : > { %v7340_v2 = vadd.f32 %v3935_v15, %v3847_v34  ;;  %v3761_v51 = vadd.f32 %v3760_v28, %v3672_v46  ;;  %3986 = vmatmul.bf16.vlgmr.msrb.gmra.mxu0 %v4702_v35  ;;  %v4778_v15 = vor.u32 %v6214_v38, %v4775_v19  ;;  %v4839_v44 = vld [vmem:[#allocation2 + $0x178] sm:$0xf0] }
 0x34a   : > { %4075 = vmatmul.bf16.vlgmr.msrb.gmra.mxu1 %v4706_v30 }
 0x34b   : > { %4164 = vmatmul.bf16.vlgmr.msrb.gmra.mxu2 %v4710_v53 }
 0x34c   : > { %4253 = vmatmul.bf16.vlgmr.msrb.gmra.mxu3 %v4714_v41 }
 0x34e   : > { %v3849_v48 = vpop.f32.mrf.mxu2  ;;  %v3673_v60 = vpop.f32.mrf.mxu0 }
 0x34f   : > { %v3938_v50 = vpop.f32.mrf.mxu3  ;;  %v3850_v24 = vadd.f32 %v3849_v48, %v3761_v51  ;;  %v3762_v45 = vpop.f32.mrf.mxu1  ;;  %v3674_v5 = vadd.f32 %v3673_v60, %v7226_v43  ;;  %v4774_v43 = vor.u32 %v6222_v13, %v4773_v61  ;;  %v6237_v60 = vld [vmem:[#allocation2 + $0x16c] sm:$0xf0] }
 0x351   : > { %v7344_v56 = vadd.f32 %v3938_v50, %v3850_v24  ;;  %v3763_v16 = vadd.f32 %v3762_v45, %v3674_v5  ;;  %v4829_v24 = vld [vmem:[#allocation2 + $0x130] sm:$0xf]  ;;  %v4831_v45 = vld [vmem:[#allocation2 + $0x170] sm:$0xf0]  ;;  %v4837_v5 = vld [vmem:[#allocation2 + $0x138] sm:$0xf] }
 0x352   : > { %v4830_v61 = vor.u32 %v6237_v60, %v4829_v24  ;;  %v6246_v24 = vld [vmem:[#allocation2 + $0x1bc] sm:$0xf] }
 0x353   : > { %v4903_v60 = vld [vmem:[#allocation2 + $0x1f8] sm:$0xf0] }
 0x356   : > { %v3851_v12 = vpop.f32.mrf.mxu2  ;;  %v3676_v29 = vpop.f32.mrf.mxu0 }
 0x357   : > { %v3940_v54 = vpop.f32.mrf.mxu3  ;;  %v3852_v31 = vadd.f32 %v3851_v12, %v3763_v16  ;;  %v3765_v23 = vpop.f32.mrf.mxu1  ;;  %v3677_v35 = vadd.f32 %v3676_v29, %v7229_v59  ;;  %v6229_v59 = vld [vmem:[#allocation2 + $0x134] sm:$0xf]  ;;  %v6238_v16 = vld [vmem:[#allocation2 + $0x174] sm:$0xf0] }
 0x358   : > { %v4834_v13 = vor.u32 %v6229_v59, %v4831_v45 }
 0x359   : > { %v7347_v30 = vadd.f32 %v3940_v54, %v3852_v31  ;;  %v3766_v34 = vadd.f32 %v3765_v23, %v3677_v35  ;;  %3991 = vmatmul.bf16.gmra.mxu0 %v4766_v14  ;;  %v4838_v54 = vor.u32 %v6238_v16, %v4837_v5 }
 0x35a   : > { %4080 = vmatmul.bf16.gmra.mxu1 %v4770_v17 }
 0x35b   : > { %4169 = vmatmul.bf16.gmra.mxu2 %v4774_v43 }
 0x35c   : > { %4258 = vmatmul.bf16.gmra.mxu3 %v4778_v15 }
 0x35e   : > { %v3854_v47 = vpop.f32.mrf.mxu2  ;;  %v3678_v41 = vpop.f32.mrf.mxu0 }
 0x35f   : > { %v3943_v28 = vpop.f32.mrf.mxu3  ;;  %v3855_v53 = vadd.f32 %v3854_v47, %v3766_v34  ;;  %v3767_v46 = vpop.f32.mrf.mxu1  ;;  %v3679_v51 = vadd.f32 %v3678_v41, %v7232_v40  ;;  %v4842_v40 = vor.u32 %v6230_v63, %v4839_v44  ;;  %v6253_v41 = vld [vmem:[#allocation2 + $0x1ec] sm:$0xf0] }
 0x361   : > { %v7350_v48 = vadd.f32 %v3943_v28, %v3855_v53  ;;  %v3768_v50 = vadd.f32 %v3767_v46, %v3679_v51  ;;  %v4893_v53 = vld [vmem:[#allocation2 + $0x1b0] sm:$0xf]  ;;  %v4895_v46 = vld [vmem:[#allocation2 + $0x1f0] sm:$0xf0]  ;;  %v4901_v51 = vld [vmem:[#allocation2 + $0x1b8] sm:$0xf] }
 0x362   : > { %v4894_v5 = vor.u32 %v6253_v41, %v4893_v53  ;;  %v6262_v53 = vld [vmem:[#allocation2 + $0x23c] sm:$0xf] }
 0x363   : > { %v4967_v41 = vld [vmem:[#allocation2 + $0x278] sm:$0xf0] }
 0x366   : > { %v3856_v8 = vpop.f32.mrf.mxu2  ;;  %v3681_v19 = vpop.f32.mrf.mxu0 }
 0x367   : > { %v3945_v4 = vpop.f32.mrf.mxu3  ;;  %v3857_v38 = vadd.f32 %v3856_v8, %v3768_v50  ;;  %v3770_v12 = vpop.f32.mrf.mxu1  ;;  %v3682_v14 = vadd.f32 %v3681_v19, %v7238_v36  ;;  %v6245_v36 = vld [vmem:[#allocation2 + $0x1b4] sm:$0xf]  ;;  %v6254_v50 = vld [vmem:[#allocation2 + $0x1f4] sm:$0xf0] }
 0x368   : > { %v4898_v16 = vor.u32 %v6245_v36, %v4895_v46 }
 0x369   : > { %v7353_v17 = vadd.f32 %v3945_v4, %v3857_v38  ;;  %v3771_v31 = vadd.f32 %v3770_v12, %v3682_v14  ;;  %3996 = vmatmul.bf16.gmra.mxu0 %v4830_v61  ;;  %v4902_v4 = vor.u32 %v6254_v50, %v4901_v51 }
 0x36a   : > { %4085 = vmatmul.bf16.gmra.mxu1 %v4834_v13 }
 0x36b   : > { %4174 = vmatmul.bf16.gmra.mxu2 %v4838_v54 }
 0x36c   : > { %4263 = vmatmul.bf16.gmra.mxu3 %v4842_v40 }
 0x36e   : > { %v3859_v29 = vpop.f32.mrf.mxu2  ;;  %v3683_v15 = vpop.f32.mrf.mxu0 }
 0x36f   : > { %v3948_v23 = vpop.f32.mrf.mxu3  ;;  %v3860_v43 = vadd.f32 %v3859_v29, %v3771_v31  ;;  %v3772_v35 = vpop.f32.mrf.mxu1  ;;  %v3684_v34 = vadd.f32 %v3683_v15, %v7242_v26  ;;  %v4906_v26 = vor.u32 %v6246_v24, %v4903_v60  ;;  %v6269_v15 = vld [vmem:[#allocation2 + $0x26c] sm:$0xf0] }
 0x371   : > { %v7356_v47 = vadd.f32 %v3948_v23, %v3860_v43  ;;  %v3773_v28 = vadd.f32 %v3772_v35, %v3684_v34  ;;  %v4957_v43 = vld [vmem:[#allocation2 + $0x230] sm:$0xf]  ;;  %v4959_v35 = vld [vmem:[#allocation2 + $0x270] sm:$0xf0]  ;;  %v4965_v34 = vld [vmem:[#allocation2 + $0x238] sm:$0xf] }
 0x372   : > { %v4958_v51 = vor.u32 %v6269_v15, %v4957_v43  ;;  %v6278_v43 = vld [vmem:[#allocation2 + $0x2bc] sm:$0xf] }
 0x373   : > { %v5031_v15 = vld [vmem:[#allocation2 + $0x2f8] sm:$0xf0] }
 0x376   : > { %v3861_v59 = vpop.f32.mrf.mxu2  ;;  %v3686_v44 = vpop.f32.mrf.mxu0 }
 0x377   : > { %v3950_v45 = vpop.f32.mrf.mxu3  ;;  %v3862_v63 = vadd.f32 %v3861_v59, %v3773_v28  ;;  %v3775_v8 = vpop.f32.mrf.mxu1  ;;  %v3687_v61 = vadd.f32 %v3686_v44, %v7245_v42  ;;  %v6261_v42 = vld [vmem:[#allocation2 + $0x234] sm:$0xf]  ;;  %v6270_v28 = vld [vmem:[#allocation2 + $0x274] sm:$0xf0] }
 0x378   : > { %v4962_v50 = vor.u32 %v6261_v42, %v4959_v35 }
 0x379   : > { %v7359_v13 = vadd.f32 %v3950_v45, %v3862_v63  ;;  %v3776_v38 = vadd.f32 %v3775_v8, %v3687_v61  ;;  %4001 = vmatmul.bf16.gmra.mxu0 %v4894_v5  ;;  %v4966_v45 = vor.u32 %v6270_v28, %v4965_v34 }
 0x37a   : > { %4090 = vmatmul.bf16.gmra.mxu1 %v4898_v16 }
 0x37b   : > { %4179 = vmatmul.bf16.gmra.mxu2 %v4902_v4 }
 0x37c   : > { %4268 = vmatmul.bf16.gmra.mxu3 %v4906_v26 }
 0x37e   : > { %v3864_v19 = vpop.f32.mrf.mxu2  ;;  %v3688_v40 = vpop.f32.mrf.mxu0 }
 0x37f   : > { %v3953_v12 = vpop.f32.mrf.mxu3  ;;  %v3865_v54 = vadd.f32 %v3864_v19, %v3776_v38  ;;  %v3777_v14 = vpop.f32.mrf.mxu1  ;;  %v3689_v31 = vadd.f32 %v3688_v40, %v7248_v22  ;;  %v4970_v22 = vor.u32 %v6262_v53, %v4967_v41  ;;  %v6285_v40 = vld [vmem:[#allocation2 + $0x2ec] sm:$0xf0] }
 0x381   : > { %v7362_v29 = vadd.f32 %v3953_v12, %v3865_v54  ;;  %v3778_v23 = vadd.f32 %v3777_v14, %v3689_v31  ;;  %v5021_v54 = vld [vmem:[#allocation2 + $0x2b0] sm:$0xf]  ;;  %v5023_v14 = vld [vmem:[#allocation2 + $0x2f0] sm:$0xf0]  ;;  %v5029_v31 = vld [vmem:[#allocation2 + $0x2b8] sm:$0xf] }
 0x382   : > { %v5022_v34 = vor.u32 %v6285_v40, %v5021_v54  ;;  %v6294_v54 = vld [vmem:[#allocation2 + $0x33c] sm:$0xf] }
 0x383   : > { %v5095_v40 = vld [vmem:[#allocation2 + $0x378] sm:$0xf0] }
 0x386   : > { %v3866_v36 = vpop.f32.mrf.mxu2  ;;  %v3691_v60 = vpop.f32.mrf.mxu0 }
 0x387   : > { %v3955_v46 = vpop.f32.mrf.mxu3  ;;  %v3867_v24 = vadd.f32 %v3866_v36, %v3778_v23  ;;  %v3780_v59 = vpop.f32.mrf.mxu1  ;;  %v3692_v5 = vadd.f32 %v3691_v60, %v7254_v32  ;;  %v6277_v32 = vld [vmem:[#allocation2 + $0x2b4] sm:$0xf]  ;;  %v6286_v23 = vld [vmem:[#allocation2 + $0x2f4] sm:$0xf0] }
 0x388   : > { %v5026_v28 = vor.u32 %v6277_v32, %v5023_v14 }
 0x389   : > { %v7365_v16 = vadd.f32 %v3955_v46, %v3867_v24  ;;  %v3781_v63 = vadd.f32 %v3780_v59, %v3692_v5  ;;  %4006 = vmatmul.bf16.gmra.mxu0 %v4958_v51  ;;  %v5030_v46 = vor.u32 %v6286_v23, %v5029_v31 }
 0x38a   : > { %4095 = vmatmul.bf16.gmra.mxu1 %v4962_v50 }
 0x38b   : > { %4184 = vmatmul.bf16.gmra.mxu2 %v4966_v45 }
 0x38c   : > { %4273 = vmatmul.bf16.gmra.mxu3 %v4970_v22 }
 0x38e   : > { %v3869_v44 = vpop.f32.mrf.mxu2  ;;  %v3693_v26 = vpop.f32.mrf.mxu0 }
 0x38f   : > { %v3958_v8 = vpop.f32.mrf.mxu3  ;;  %v3870_v4 = vadd.f32 %v3869_v44, %v3781_v63  ;;  %v3782_v61 = vpop.f32.mrf.mxu1  ;;  %v3694_v38 = vadd.f32 %v3693_v26, %v7258_v21  ;;  %v5034_v21 = vor.u32 %v6278_v43, %v5031_v15  ;;  %v6301_v26 = vld [vmem:[#allocation2 + $0x36c] sm:$0xf0] }
 0x391   : > { %v7368_v19 = vadd.f32 %v3958_v8, %v3870_v4  ;;  %v3783_v12 = vadd.f32 %v3782_v61, %v3694_v38  ;;  %v5085_v4 = vld [vmem:[#allocation2 + $0x330] sm:$0xf]  ;;  %v5087_v61 = vld [vmem:[#allocation2 + $0x370] sm:$0xf0]  ;;  %v5093_v38 = vld [vmem:[#allocation2 + $0x338] sm:$0xf] }
 0x392   : > { %v5086_v31 = vor.u32 %v6301_v26, %v5085_v4  ;;  %v6310_v4 = vld [vmem:[#allocation2 + $0x3bc] sm:$0xf] }
 0x393   : > { %v5159_v26 = vld [vmem:[#allocation2 + $0x3f8] sm:$0xf0] }
 0x396   : > { %v3871_v42 = vpop.f32.mrf.mxu2  ;;  %v3696_v41 = vpop.f32.mrf.mxu0 }
 0x397   : > { %v3960_v35 = vpop.f32.mrf.mxu3  ;;  %v3872_v53 = vadd.f32 %v3871_v42, %v3783_v12  ;;  %v3785_v36 = vpop.f32.mrf.mxu1  ;;  %v3697_v51 = vadd.f32 %v3696_v41, %v7261_v27  ;;  %v6293_v27 = vld [vmem:[#allocation2 + $0x334] sm:$0xf]  ;;  %v6302_v12 = vld [vmem:[#allocation2 + $0x374] sm:$0xf0] }
 0x398   : > { %v5090_v23 = vor.u32 %v6293_v27, %v5087_v61 }
 0x399   : > { %v7371_v50 = vadd.f32 %v3960_v35, %v3872_v53  ;;  %v3786_v24 = vadd.f32 %v3785_v36, %v3697_v51  ;;  %4011 = vmatmul.bf16.gmra.mxu0 %v5022_v34  ;;  %v5094_v35 = vor.u32 %v6302_v12, %v5093_v38 }
 0x39a   : > { %4100 = vmatmul.bf16.gmra.mxu1 %v5026_v28 }
 0x39b   : > { %4189 = vmatmul.bf16.gmra.mxu2 %v5030_v46 }
 0x39c   : > { %4278 = vmatmul.bf16.gmra.mxu3 %v5034_v21 }
 0x39e   : > { %v3874_v60 = vpop.f32.mrf.mxu2  ;;  %v3698_v22 = vpop.f32.mrf.mxu0 }
 0x39f   : > { %v3963_v59 = vpop.f32.mrf.mxu3  ;;  %v3875_v45 = vadd.f32 %v3874_v60, %v3786_v24  ;;  %v3787_v5 = vpop.f32.mrf.mxu1  ;;  %v3699_v63 = vadd.f32 %v3698_v22, %v7264_v7  ;;  %v5098_v7 = vor.u32 %v6294_v54, %v5095_v40  ;;  %v6317_v22 = vld [vmem:[#allocation2 + $0x3ec] sm:$0xf0] }
 0x3a1   : > { %v7374_v44 = vadd.f32 %v3963_v59, %v3875_v45  ;;  %v3788_v8 = vadd.f32 %v3787_v5, %v3699_v63  ;;  %v5149_v45 = vld [vmem:[#allocation2 + $0x3b0] sm:$0xf]  ;;  %v5151_v5 = vld [vmem:[#allocation2 + $0x3f0] sm:$0xf0]  ;;  %v5157_v63 = vld [vmem:[#allocation2 + $0x3b8] sm:$0xf] }
 0x3a2   : > { %v5150_v38 = vor.u32 %v6317_v22, %v5149_v45  ;;  %v6326_v45 = vld [vmem:[#allocation2 + $0x43c] sm:$0xf] }
 0x3a3   : > { %v5223_v22 = vld [vmem:[#allocation2 + $0x478] sm:$0xf0] }
 0x3a6   : > { %v3876_v32 = vpop.f32.mrf.mxu2  ;;  %v3701_v15 = vpop.f32.mrf.mxu0 }
 0x3a7   : > { %v3965_v14 = vpop.f32.mrf.mxu3  ;;  %v3877_v43 = vadd.f32 %v3876_v32, %v3788_v8  ;;  %v3790_v42 = vpop.f32.mrf.mxu1  ;;  %v3702_v34 = vadd.f32 %v3701_v15, %v7270_v33  ;;  %v6309_v33 = vld [vmem:[#allocation2 + $0x3b4] sm:$0xf]  ;;  %v6318_v8 = vld [vmem:[#allocation2 + $0x3f4] sm:$0xf0] }
 0x3a8   : > { %v5154_v12 = vor.u32 %v6309_v33, %v5151_v5 }
 0x3a9   : > { %v7377_v28 = vadd.f32 %v3965_v14, %v3877_v43  ;;  %v3791_v53 = vadd.f32 %v3790_v42, %v3702_v34  ;;  %4016 = vmatmul.bf16.gmra.mxu0 %v5086_v31  ;;  %v5158_v14 = vor.u32 %v6318_v8, %v5157_v63 }
 0x3aa   : > { %4105 = vmatmul.bf16.gmra.mxu1 %v5090_v23 }
 0x3ab   : > { %4194 = vmatmul.bf16.gmra.mxu2 %v5094_v35 }
 0x3ac   : > { %4283 = vmatmul.bf16.gmra.mxu3 %v5098_v7 }
 0x3ae   : > { %v3879_v41 = vpop.f32.mrf.mxu2  ;;  %v3703_v21 = vpop.f32.mrf.mxu0 }
 0x3af   : > { %v3968_v36 = vpop.f32.mrf.mxu3  ;;  %v3880_v46 = vadd.f32 %v3879_v41, %v3791_v53  ;;  %v3792_v51 = vpop.f32.mrf.mxu1  ;;  %v3704_v24 = vadd.f32 %v3703_v21, %v7274_v20  ;;  %v5162_v20 = vor.u32 %v6310_v4, %v5159_v26  ;;  %v6333_v21 = vld [vmem:[#allocation2 + $0x46c] sm:$0xf0] }
 0x3b1   : > { %v7380_v60 = vadd.f32 %v3968_v36, %v3880_v46  ;;  %v3793_v59 = vadd.f32 %v3792_v51, %v3704_v24  ;;  %v5213_v46 = vld [vmem:[#allocation2 + $0x430] sm:$0xf]  ;;  %v5215_v51 = vld [vmem:[#allocation2 + $0x470] sm:$0xf0]  ;;  %v5221_v24 = vld [vmem:[#allocation2 + $0x438] sm:$0xf] }
 0x3b2   : > { %v5214_v63 = vor.u32 %v6333_v21, %v5213_v46  ;;  %v6342_v46 = vld [vmem:[#allocation2 + $0x4bc] sm:$0xf] }
 0x3b3   : > { %v5287_v21 = vld [vmem:[#allocation2 + $0x4f8] sm:$0xf0] }
 0x3b6   : > { %v3881_v27 = vpop.f32.mrf.mxu2  ;;  %v3706_v40 = vpop.f32.mrf.mxu0 }
 0x3b7   : > { %v3970_v61 = vpop.f32.mrf.mxu3  ;;  %v3882_v54 = vadd.f32 %v3881_v27, %v3793_v59  ;;  %v3795_v32 = vpop.f32.mrf.mxu1  ;;  %v3707_v31 = vadd.f32 %v3706_v40, %v7277_v10  ;;  %v6325_v10 = vld [vmem:[#allocation2 + $0x434] sm:$0xf]  ;;  %v6334_v59 = vld [vmem:[#allocation2 + $0x474] sm:$0xf0] }
 0x3b8   : > { %v5218_v8 = vor.u32 %v6325_v10, %v5215_v51 }
 0x3b9   : > { %v7383_v23 = vadd.f32 %v3970_v61, %v3882_v54  ;;  %v3796_v43 = vadd.f32 %v3795_v32, %v3707_v31  ;;  %4021 = vmatmul.bf16.gmra.mxu0 %v5150_v38  ;;  %v5226_v61 = vor.u32 %v6326_v45, %v5223_v22 }
 0x3ba   : > { %4110 = vmatmul.bf16.gmra.mxu1 %v5154_v12 }
 0x3bb   : > { %4199 = vmatmul.bf16.gmra.mxu2 %v5158_v14 }
 0x3bc   : > { %4288 = vmatmul.bf16.gmra.mxu3 %v5162_v20 }
 0x3be   : > { %v3884_v15 = vpop.f32.mrf.mxu2  ;;  %v3708_v7 = vpop.f32.mrf.mxu0 }
 0x3bf   : > { %v3973_v42 = vpop.f32.mrf.mxu3  ;;  %v3885_v35 = vadd.f32 %v3884_v15, %v3796_v43  ;;  %v3797_v34 = vpop.f32.mrf.mxu1  ;;  %v3709_v53 = vadd.f32 %v3708_v7, %v7280_v1  ;;  %v5222_v1 = vor.u32 %v6334_v59, %v5221_v24  ;;  %v7394_v15 = vld [vmem:[%s250_s7] ss:$0 sm:$0xff]  ;;  %v6349_v7 = vld [vmem:[#allocation2 + $0x4ec] sm:$0xf0] }
 0x3c1   : > { %v7386_v41 = vadd.f32 %v3973_v42, %v3885_v35  ;;  %v3798_v36 = vadd.f32 %v3797_v34, %v3709_v53  ;;  %v5277_v35 = vld [vmem:[#allocation2 + $0x4b0] sm:$0xf]  ;;  %v5279_v34 = vld [vmem:[#allocation2 + $0x4f0] sm:$0xf0]  ;;  %v5285_v53 = vld [vmem:[#allocation2 + $0x4b8] sm:$0xf] }
 0x3c2   : > { %v5278_v45 = vor.u32 %v6349_v7, %v5277_v35  ;;  %v5349_v35 = vld [vmem:[#allocation2 + $0x538] sm:$0xf] }
 0x3c3   : > { %v6366_v7 = vld [vmem:[#allocation2 + $0x574] sm:$0xf0] }
 0x3c6   : > { %v3886_v33 = vpop.f32.mrf.mxu2  ;;  %v3987_v26 = vpop.f32.mrf.mxu0 }
 0x3c7   : > { %v3975_v5 = vpop.f32.mrf.mxu3  ;;  %v3887_v4 = vadd.f32 %v3886_v33, %v3798_v36  ;;  %v4076_v27 = vpop.f32.mrf.mxu1  ;;  %v3988_v12 = vadd.f32 %v3987_v26, %v7286_v39  ;;  %v6341_v39 = vld [vmem:[#allocation2 + $0x4b4] sm:$0xf]  ;;  %v6350_v36 = vld [vmem:[#allocation2 + $0x4f4] sm:$0xf0] }
 0x3c8   : > { %v5282_v22 = vor.u32 %v6341_v39, %v5279_v34  ;;  %v6358_v39 = vld [vmem:[#allocation2 + $0x53c] sm:$0xf] }
 0x3c9   : > { %v7388_v38 = vadd.f32 %v3975_v5, %v3887_v4  ;;  %4026 = vmatmul.bf16.gmra.mxu0 %v5214_v63  ;;  %v4077_v54 = vadd.f32 %v4076_v27, %v3988_v12  ;;  %v5286_v63 = vor.u32 %v6350_v36, %v5285_v53  ;;  %v5351_v34 = vld [vmem:[#allocation2 + $0x578] sm:$0xf0] }
 0x3ca   : > { %4115 = vmatmul.bf16.gmra.mxu1 %v5218_v8  ;;  %v5290_v8 = vor.u32 %v6342_v46, %v5287_v21 }
 0x3cb   : > { %4204 = vmatmul.bf16.gmra.mxu2 %v5222_v1 }
 0x3cc   : > { %4293 = vmatmul.bf16.gmra.mxu3 %v5226_v61 }
 0x3ce   : > { %v4165_v40 = vpop.f32.mrf.mxu2  ;;  %v3989_v20 = vpop.f32.mrf.mxu0 }
 0x3cf   : > { %v4254_v32 = vpop.f32.mrf.mxu3  ;;  %v4166_v14 = vadd.f32 %v4165_v40, %v4077_v54  ;;  %v4078_v31 = vpop.f32.mrf.mxu1  ;;  %v3990_v42 = vadd.f32 %v3989_v20, %v7290_v25 }
 0x3d1   : > { %v4255_v43 = vadd.f32 %v4254_v32, %v4166_v14  ;;  %v4079_v51 = vadd.f32 %v4078_v31, %v3990_v42  ;;  %v5341_v31 = vld [vmem:[#allocation2 + $0x530] sm:$0xf]  ;;  %v5343_v42 = vld [vmem:[#allocation2 + $0x570] sm:$0xf0] }
 0x3d3   : > { %v4437_v10 = vadd.f32 %v7394_v15, %v4255_v43  ;;  %v6365_v43 = vld [vmem:[#allocation2 + $0x56c] sm:$0xf0] }
 0x3d5   : > { %4469 = vst [vmem:[%s7398_s20] sm:$0xff] %v4437_v10  ;;  %v5342_v10 = vor.u32 %v6365_v43, %v5341_v31  ;;  %v6374_v31 = vld [vmem:[#allocation2 + $0x5bc] sm:$0xf] }
 0x3d6   : > { %v4167_v24 = vpop.f32.mrf.mxu2  ;;  %v3992_v33 = vpop.f32.mrf.mxu0  ;;  %v5415_v43 = vld [vmem:[#allocation2 + $0x5f8] sm:$0xf0] }
 0x3d7   : > { %v4256_v59 = vpop.f32.mrf.mxu3  ;;  %v4168_v25 = vadd.f32 %v4167_v24, %v4079_v51  ;;  %v4081_v5 = vpop.f32.mrf.mxu1  ;;  %v3993_v26 = vadd.f32 %v3992_v33, %v7293_v58  ;;  %v6357_v58 = vld [vmem:[#allocation2 + $0x534] sm:$0xf] }
 0x3d8   : > { %v5346_v51 = vor.u32 %v6357_v58, %v5343_v42 }
 0x3d9   : > { %v4257_v4 = vadd.f32 %v4256_v59, %v4168_v25  ;;  %4031 = vmatmul.bf16.gmra.mxu0 %v5278_v45  ;;  %v4082_v1 = vadd.f32 %v4081_v5, %v3993_v26  ;;  %v5350_v45 = vor.u32 %v6366_v7, %v5349_v35 }
 0x3da   : > { %4120 = vmatmul.bf16.gmra.mxu1 %v5282_v22  ;;  %v5354_v22 = vor.u32 %v6358_v39, %v5351_v34 }
 0x3db   : > { %4209 = vmatmul.bf16.gmra.mxu2 %v5286_v63  ;;  %v4438_v27 = vadd.f32 %v7394_v15, %v4257_v4 }
 0x3dc   : > { %4298 = vmatmul.bf16.gmra.mxu3 %v5290_v8 }
 0x3dd   : > { %4470 = vst [vmem:[%s7398_s20 + $0x8] sm:$0xff] %v4438_v27 }
 0x3de   : > { %v4170_v61 = vpop.f32.mrf.mxu2  ;;  %v3994_v40 = vpop.f32.mrf.mxu0 }
 0x3df   : > { %v4259_v12 = vpop.f32.mrf.mxu3  ;;  %v4171_v54 = vadd.f32 %v4170_v61, %v4082_v1  ;;  %v4083_v32 = vpop.f32.mrf.mxu1  ;;  %v3995_v20 = vadd.f32 %v3994_v40, %v7296_v62  ;;  %v6381_v40 = vld [vmem:[#allocation2 + $0x5ec] sm:$0xf0] }
 0x3e1   : > { %v4260_v14 = vadd.f32 %v4259_v12, %v4171_v54  ;;  %v4084_v36 = vadd.f32 %v4083_v32, %v3995_v20  ;;  %v5405_v54 = vld [vmem:[#allocation2 + $0x5b0] sm:$0xf]  ;;  %v5407_v32 = vld [vmem:[#allocation2 + $0x5f0] sm:$0xf0]  ;;  %v6382_v20 = vld [vmem:[#allocation2 + $0x5f4] sm:$0xf0] }
 0x3e2   : > { %v5406_v39 = vor.u32 %v6381_v40, %v5405_v54 }
 0x3e3   : > { %v4439_v53 = vadd.f32 %v7394_v15, %v4260_v14  ;;  %v5413_v14 = vld [vmem:[#allocation2 + $0x5b8] sm:$0xf] }
 0x3e5   : > { %4471 = vst [vmem:[%s7398_s20 + $0x10] sm:$0xff] %v4439_v53 }
 0x3e6   : > { %v4172_v46 = vpop.f32.mrf.mxu2  ;;  %v3997_v59 = vpop.f32.mrf.mxu0 }
 0x3e7   : > { %v4261_v21 = vpop.f32.mrf.mxu3  ;;  %v4173_v24 = vadd.f32 %v4172_v46, %v4084_v36  ;;  %v4086_v62 = vpop.f32.mrf.mxu1  ;;  %v3998_v33 = vadd.f32 %v3997_v59, %v7302_v49  ;;  %v6373_v49 = vld [vmem:[#allocation2 + $0x5b4] sm:$0xf]  ;;  %v5414_v46 = vor.u32 %v6382_v20, %v5413_v14 }
 0x3e8   : > { %v5410_v34 = vor.u32 %v6373_v49, %v5407_v32 }
 0x3e9   : > { %v4262_v25 = vadd.f32 %v4261_v21, %v4173_v24  ;;  %4036 = vmatmul.bf16.gmra.mxu0 %v5342_v10  ;;  %v4087_v63 = vadd.f32 %v4086_v62, %v3998_v33  ;;  %v5418_v21 = vor.u32 %v6374_v31, %v5415_v43 }
 0x3ea   : > { %4125 = vmatmul.bf16.gmra.mxu1 %v5346_v51 }
 0x3eb   : > { %4214 = vmatmul.bf16.gmra.mxu2 %v5350_v45  ;;  %v4440_v5 = vadd.f32 %v7394_v15, %v4262_v25 }
 0x3ec   : > { %4303 = vmatmul.bf16.gmra.mxu3 %v5354_v22 }
 0x3ed   : > { %4472 = vst [vmem:[%s7398_s20 + $0x18] sm:$0xff] %v4440_v5 }
 0x3ee   : > { %v4175_v8 = vpop.f32.mrf.mxu2  ;;  %v3999_v27 = vpop.f32.mrf.mxu0 }
 0x3ef   : > { %v4264_v4 = vpop.f32.mrf.mxu3  ;;  %v4176_v26 = vadd.f32 %v4175_v8, %v4087_v63  ;;  %v4088_v1 = vpop.f32.mrf.mxu1  ;;  %v4000_v12 = vadd.f32 %v3999_v27, %v7306_v37  ;;  %v5469_v8 = vld [vmem:[#allocation2 + $0x630] sm:$0xf]  ;;  %v5477_v27 = vld [vmem:[#allocation2 + $0x638] sm:$0xf] }
 0x3f1   : > { %v4265_v61 = vadd.f32 %v4264_v4, %v4176_v26  ;;  %v4089_v42 = vadd.f32 %v4088_v1, %v4000_v12  ;;  %v6397_v4 = vld [vmem:[#allocation2 + $0x66c] sm:$0xf0]  ;;  %v5471_v26 = vld [vmem:[#allocation2 + $0x670] sm:$0xf0]  ;;  %v6398_v1 = vld [vmem:[#allocation2 + $0x674] sm:$0xf0] }
 0x3f2   : > { %v5479_v12 = vld [vmem:[#allocation2 + $0x678] sm:$0xf0]  ;;  %v5470_v14 = vor.u32 %v6397_v4, %v5469_v8 }
 0x3f3   : > { %v4441_v58 = vadd.f32 %v7394_v15, %v4265_v61  ;;  %v6390_v61 = vld [vmem:[#allocation2 + $0x63c] sm:$0xf] }
 0x3f5   : > { %4473 = vst [vmem:[%s7398_s20 + $0x20] sm:$0xff] %v4441_v58  ;;  %v5478_v58 = vor.u32 %v6398_v1, %v5477_v27 }
 0x3f6   : > { %v4177_v35 = vpop.f32.mrf.mxu2  ;;  %v4002_v36 = vpop.f32.mrf.mxu0 }
 0x3f7   : > { %v4266_v7 = vpop.f32.mrf.mxu3  ;;  %v4178_v53 = vadd.f32 %v4177_v35, %v4089_v42  ;;  %v4091_v37 = vpop.f32.mrf.mxu1  ;;  %v4003_v51 = vadd.f32 %v4002_v36, %v7309_v0  ;;  %v6389_v0 = vld [vmem:[#allocation2 + $0x634] sm:$0xf]  ;;  %v5482_v42 = vor.u32 %v6390_v61, %v5479_v12 }
 0x3f8   : > { %v5474_v20 = vor.u32 %v6389_v0, %v5471_v26 }
 0x3f9   : > { %v4267_v10 = vadd.f32 %v4266_v7, %v4178_v53  ;;  %4041 = vmatmul.bf16.gmra.mxu0 %v5406_v39  ;;  %v4092_v59 = vadd.f32 %v4091_v37, %v4003_v51 }
 0x3fa   : > { %4130 = vmatmul.bf16.gmra.mxu1 %v5410_v34 }
 0x3fb   : > { %4219 = vmatmul.bf16.gmra.mxu2 %v5414_v46  ;;  %v4442_v24 = vadd.f32 %v7394_v15, %v4267_v10 }
 0x3fc   : > { %4308 = vmatmul.bf16.gmra.mxu3 %v5418_v21 }
 0x3fd   : > { %4474 = vst [vmem:[%s7398_s20 + $0x28] sm:$0xff] %v4442_v24  ;;  %v5533_v24 = vld [vmem:[#allocation2 + $0x6b0] sm:$0xf] }
 0x3fe   : > { %v4180_v62 = vpop.f32.mrf.mxu2  ;;  %v4004_v25 = vpop.f32.mrf.mxu0 }
 0x3ff   : > { %v4269_v45 = vpop.f32.mrf.mxu3  ;;  %v4181_v22 = vadd.f32 %v4180_v62, %v4092_v59  ;;  %v4093_v33 = vpop.f32.mrf.mxu1  ;;  %v4005_v63 = vadd.f32 %v4004_v25, %v7312_v3  ;;  %v6413_v59 = vld [vmem:[#allocation2 + $0x6ec] sm:$0xf0]  ;;  %v5535_v62 = vld [vmem:[#allocation2 + $0x6f0] sm:$0xf0]  ;;  %v6406_v25 = vld [vmem:[#allocation2 + $0x6bc] sm:$0xf] }
 0x400   : > { %v5534_v0 = vor.u32 %v6413_v59, %v5533_v24 }
 0x401   : > { %v4270_v5 = vadd.f32 %v4269_v45, %v4181_v22  ;;  %v4094_v40 = vadd.f32 %v4093_v33, %v4005_v63  ;;  %v5541_v45 = vld [vmem:[#allocation2 + $0x6b8] sm:$0xf]  ;;  %v5543_v33 = vld [vmem:[#allocation2 + $0x6f8] sm:$0xf0] }
 0x402   : > { %v6414_v22 = vld [vmem:[#allocation2 + $0x6f4] sm:$0xf0]  ;;  %v5546_v12 = vor.u32 %v6406_v25, %v5543_v33 }
 0x403   : > { %v4443_v54 = vadd.f32 %v7394_v15, %v4270_v5  ;;  %v5542_v61 = vor.u32 %v6414_v22, %v5541_v45 }
 0x405   : > { %4475 = vst [vmem:[%s7398_s20 + $0x30] sm:$0xff] %v4443_v54 }
 0x406   : > { %v4182_v49 = vpop.f32.mrf.mxu2  ;;  %v4007_v43 = vpop.f32.mrf.mxu0 }
 0x407   : > { %v4271_v32 = vpop.f32.mrf.mxu3  ;;  %v4183_v31 = vadd.f32 %v4182_v49, %v4094_v40  ;;  %v4096_v3 = vpop.f32.mrf.mxu1  ;;  %v4008_v7 = vadd.f32 %v4007_v43, %v7318_v6  ;;  %v6405_v6 = vld [vmem:[#allocation2 + $0x6b4] sm:$0xf] }
 0x408   : > { %v5538_v26 = vor.u32 %v6405_v6, %v5535_v62 }
 0x409   : > { %v4272_v35 = vadd.f32 %v4271_v32, %v4183_v31  ;;  %4046 = vmatmul.bf16.gmra.mxu0 %v5470_v14  ;;  %v4097_v34 = vadd.f32 %v4096_v3, %v4008_v7  ;;  %v6429_v7 = vld [vmem:[#allocation2 + $0x76c] sm:$0xf0] }
 0x40a   : > { %4135 = vmatmul.bf16.gmra.mxu1 %v5474_v20 }
 0x40b   : > { %4224 = vmatmul.bf16.gmra.mxu2 %v5478_v58  ;;  %v4444_v39 = vadd.f32 %v7394_v15, %v4272_v35  ;;  %v5597_v35 = vld [vmem:[#allocation2 + $0x730] sm:$0xf] }
 0x40c   : > { %4313 = vmatmul.bf16.gmra.mxu3 %v5482_v42  ;;  %v5598_v24 = vor.u32 %v6429_v7, %v5597_v35 }
 0x40d   : > { %4476 = vst [vmem:[%s7398_s20 + $0x38] sm:$0xff] %v4444_v39  ;;  %v5599_v39 = vld [vmem:[#allocation2 + $0x770] sm:$0xf0] }
 0x40e   : > { %v4185_v53 = vpop.f32.mrf.mxu2  ;;  %v4009_v46 = vpop.f32.mrf.mxu0 }
 0x40f   : > { %v4274_v36 = vpop.f32.mrf.mxu3  ;;  %v4186_v37 = vadd.f32 %v4185_v53, %v4097_v34  ;;  %v4098_v21 = vpop.f32.mrf.mxu1  ;;  %v4010_v51 = vadd.f32 %v4009_v46, %v7322_v52  ;;  %v5605_v34 = vld [vmem:[#allocation2 + $0x738] sm:$0xf] }
 0x410   : > { %v6430_v53 = vld [vmem:[#allocation2 + $0x774] sm:$0xf0] }
 0x411   : > { %v4275_v10 = vadd.f32 %v4274_v36, %v4186_v37  ;;  %v4099_v63 = vadd.f32 %v4098_v21, %v4010_v51  ;;  %v6422_v36 = vld [vmem:[#allocation2 + $0x73c] sm:$0xf]  ;;  %v5606_v45 = vor.u32 %v6430_v53, %v5605_v34 }
 0x412   : > { %v5607_v37 = vld [vmem:[#allocation2 + $0x778] sm:$0xf0] }
 0x413   : > { %v4445_v5 = vadd.f32 %v7394_v15, %v4275_v10  ;;  %v5610_v22 = vor.u32 %v6422_v36, %v5607_v37 }
 0x415   : > { %4477 = vst [vmem:[%s7398_s20 + $0x40] sm:$0xff] %v4445_v5 }
 0x416   : > { %v4187_v8 = vpop.f32.mrf.mxu2  ;;  %v4012_v1 = vpop.f32.mrf.mxu0 }
 0x417   : > { %v4276_v4 = vpop.f32.mrf.mxu3  ;;  %v4188_v27 = vadd.f32 %v4187_v8, %v4099_v63  ;;  %v4101_v52 = vpop.f32.mrf.mxu1  ;;  %v4013_v40 = vadd.f32 %v4012_v1, %v7325_v57  ;;  %v6421_v57 = vld [vmem:[#allocation2 + $0x734] sm:$0xf] }
 0x418   : > { %v5602_v59 = vor.u32 %v6421_v57, %v5599_v39 }
 0x419   : > { %v4277_v54 = vadd.f32 %v4276_v4, %v4188_v27  ;;  %4051 = vmatmul.bf16.gmra.mxu0 %v5534_v0  ;;  %v4102_v32 = vadd.f32 %v4101_v52, %v4013_v40  ;;  %v5669_v40 = vld [vmem:[#allocation2 + $0x7b8] sm:$0xf] }
 0x41a   : > { %4140 = vmatmul.bf16.gmra.mxu1 %v5538_v26 }
 0x41b   : > { %4229 = vmatmul.bf16.gmra.mxu2 %v5542_v61  ;;  %v4446_v49 = vadd.f32 %v7394_v15, %v4277_v54  ;;  %v5661_v61 = vld [vmem:[#allocation2 + $0x7b0] sm:$0xf]  ;;  %v5663_v54 = vld [vmem:[#allocation2 + $0x7f0] sm:$0xf0] }
 0x41c   : > { %4318 = vmatmul.bf16.gmra.mxu3 %v5546_v12  ;;  %v6445_v12 = vld [vmem:[#allocation2 + $0x7ec] sm:$0xf0] }
 0x41d   : > { %4478 = vst [vmem:[%s7398_s20 + $0x48] sm:$0xff] %v4446_v49  ;;  %v6446_v49 = vld [vmem:[#allocation2 + $0x7f4] sm:$0xf0] }
 0x41e   : > { %v4190_v14 = vpop.f32.mrf.mxu2  ;;  %v4014_v43 = vpop.f32.mrf.mxu0  ;;  %v5670_v57 = vor.u32 %v6446_v49, %v5669_v40 }
 0x41f   : > { %v4279_v20 = vpop.f32.mrf.mxu3  ;;  %v4191_v31 = vadd.f32 %v4190_v14, %v4102_v32  ;;  %v4103_v3 = vpop.f32.mrf.mxu1  ;;  %v4015_v42 = vadd.f32 %v4014_v43, %v7328_v11  ;;  %v6438_v32 = vld [vmem:[#allocation2 + $0x7bc] sm:$0xf] }
 0x420   : > { %v5671_v14 = vld [vmem:[#allocation2 + $0x7f8] sm:$0xf0] }
 0x421   : > { %v4280_v58 = vadd.f32 %v4279_v20, %v4191_v31  ;;  %v4104_v21 = vadd.f32 %v4103_v3, %v4015_v42  ;;  %v5674_v39 = vor.u32 %v6438_v32, %v5671_v14 }
 0x423   : > { %v4447_v46 = vadd.f32 %v7394_v15, %v4280_v58  ;;  %v5662_v58 = vor.u32 %v6445_v12, %v5661_v61 }
 0x425   : > { %4479 = vst [vmem:[%s7398_s20 + $0x50] sm:$0xff] %v4447_v46 }
 0x426   : > { %v4192_v10 = vpop.f32.mrf.mxu2  ;;  %v4017_v62 = vpop.f32.mrf.mxu0 }
 0x427   : > { %v4281_v51 = vpop.f32.mrf.mxu3  ;;  %v4193_v6 = vadd.f32 %v4192_v10, %v4104_v21  ;;  %v4106_v11 = vpop.f32.mrf.mxu1  ;;  %v4018_v33 = vadd.f32 %v4017_v62, %v7331_v18  ;;  %v6437_v18 = vld [vmem:[#allocation2 + $0x7b4] sm:$0xf] }
 0x428   : > { %v5666_v42 = vor.u32 %v6437_v18, %v5663_v54 }
 0x429   : > { %v4282_v25 = vadd.f32 %v4281_v51, %v4193_v6  ;;  %4056 = vmatmul.bf16.gmra.mxu0 %v5598_v24  ;;  %v4107_v63 = vadd.f32 %v4106_v11, %v4018_v33 }
 0x42a   : > { %4145 = vmatmul.bf16.gmra.mxu1 %v5602_v59 }
 0x42b   : > { %4234 = vmatmul.bf16.gmra.mxu2 %v5606_v45  ;;  %v4448_v5 = vadd.f32 %v7394_v15, %v4282_v25 }
 0x42c   : > { %4323 = vmatmul.bf16.gmra.mxu3 %v5610_v22 }
 0x42d   : > { %4480 = vst [vmem:[%s7398_s20 + $0x58] sm:$0xff] %v4448_v5 }
 0x42e   : > { %v4195_v8 = vpop.f32.mrf.mxu2  ;;  %v4019_v26 = vpop.f32.mrf.mxu0 }
 0x42f   : > { %v4284_v4 = vpop.f32.mrf.mxu3  ;;  %v4196_v0 = vadd.f32 %v4195_v8, %v4107_v63  ;;  %v4108_v27 = vpop.f32.mrf.mxu1  ;;  %v4020_v52 = vadd.f32 %v4019_v26, %v7334_v55 }
 0x431   : > { %v4285_v1 = vadd.f32 %v4284_v4, %v4196_v0  ;;  %v4109_v31 = vadd.f32 %v4108_v27, %v4020_v52 }
 0x433   : > { %v4449_v20 = vadd.f32 %v7394_v15, %v4285_v1 }
 0x435   : > { %4481 = vst [vmem:[%s7398_s20 + $0x60] sm:$0xff] %v4449_v20 }
 0x436   : > { %v4197_v43 = vpop.f32.mrf.mxu2  ;;  %v4022_v7 = vpop.f32.mrf.mxu0 }
 0x437   : > { %v4286_v3 = vpop.f32.mrf.mxu3  ;;  %v4198_v35 = vadd.f32 %v4197_v43, %v4109_v31  ;;  %v4111_v55 = vpop.f32.mrf.mxu1  ;;  %v4023_v53 = vadd.f32 %v4022_v7, %v7337_v9 }
 0x439   : > { %v4287_v34 = vadd.f32 %v4286_v3, %v4198_v35  ;;  %4061 = vmatmul.bf16.gmra.mxu0 %v5662_v58  ;;  %v4112_v37 = vadd.f32 %v4111_v55, %v4023_v53 }
 0x43a   : > { %4150 = vmatmul.bf16.gmra.mxu1 %v5666_v42 }
 0x43b   : > { %4239 = vmatmul.bf16.gmra.mxu2 %v5670_v57  ;;  %v4450_v36 = vadd.f32 %v7394_v15, %v4287_v34 }
 0x43c   : > { %4328 = vmatmul.bf16.gmra.mxu3 %v5674_v39 }
 0x43d   : > { %4482 = vst [vmem:[%s7398_s20 + $0x68] sm:$0xff] %v4450_v36 }
 0x43e   : > { %v4200_v46 = vpop.f32.mrf.mxu2  ;;  %v4024_v51 = vpop.f32.mrf.mxu0 }
 0x43f   : > { %v4289_v21 = vpop.f32.mrf.mxu3  ;;  %v4201_v10 = vadd.f32 %v4200_v46, %v4112_v37  ;;  %v4113_v24 = vpop.f32.mrf.mxu1  ;;  %v4025_v6 = vadd.f32 %v4024_v51, %v7340_v2 }
 0x441   : > { %v4290_v59 = vadd.f32 %v4289_v21, %v4201_v10  ;;  %v4114_v62 = vadd.f32 %v4113_v24, %v4025_v6 }
 0x443   : > { %v4451_v9 = vadd.f32 %v7394_v15, %v4290_v59 }
 0x445   : > { %4483 = vst [vmem:[%s7398_s20 + $0x70] sm:$0xff] %v4451_v9 }
 0x446   : > { %v4202_v11 = vpop.f32.mrf.mxu2  ;;  %v4027_v25 = vpop.f32.mrf.mxu0 }
 0x447   : > { %v4291_v45 = vpop.f32.mrf.mxu3  ;;  %v4203_v22 = vadd.f32 %v4202_v11, %v4114_v62  ;;  %v4116_v33 = vpop.f32.mrf.mxu1  ;;  %v4028_v63 = vadd.f32 %v4027_v25, %v7344_v56 }
 0x449   : > { %v4292_v5 = vadd.f32 %v4291_v45, %v4203_v22  ;;  %v4117_v4 = vadd.f32 %v4116_v33, %v4028_v63 }
 0x44b   : > { %v4452_v8 = vadd.f32 %v7394_v15, %v4292_v5 }
 0x44d   : > { %4484 = vst [vmem:[%s7398_s20 + $0x78] sm:$0xff] %v4452_v8 }
 0x44e   : > { %v4205_v0 = vpop.f32.mrf.mxu2  ;;  %v4029_v27 = vpop.f32.mrf.mxu0 }
 0x44f   : > { %v4294_v26 = vpop.f32.mrf.mxu3  ;;  %v4206_v2 = vadd.f32 %v4205_v0, %v4117_v4  ;;  %v4118_v1 = vpop.f32.mrf.mxu1  ;;  %v4030_v61 = vadd.f32 %v4029_v27, %v7347_v30 }
 0x451   : > { %v4295_v52 = vadd.f32 %v4294_v26, %v4206_v2  ;;  %v4119_v18 = vadd.f32 %v4118_v1, %v4030_v61 }
 0x453   : > { %v4453_v12 = vadd.f32 %v7394_v15, %v4295_v52 }
 0x455   : > { %4485 = vst [vmem:[%s7398_s20 + $0x80] sm:$0xff] %v4453_v12 }
 0x456   : > { %v4207_v54 = vpop.f32.mrf.mxu2  ;;  %v4032_v49 = vpop.f32.mrf.mxu0 }
 0x457   : > { %v4296_v40 = vpop.f32.mrf.mxu3  ;;  %v4208_v56 = vadd.f32 %v4207_v54, %v4119_v18  ;;  %v4121_v32 = vpop.f32.mrf.mxu1  ;;  %v4033_v20 = vadd.f32 %v4032_v49, %v7350_v48 }
 0x459   : > { %v4297_v14 = vadd.f32 %v4296_v40, %v4208_v56  ;;  %v4122_v43 = vadd.f32 %v4121_v32, %v4033_v20 }
 0x45b   : > { %v4454_v31 = vadd.f32 %v7394_v15, %v4297_v14 }
 0x45d   : > { %4486 = vst [vmem:[%s7398_s20 + $0x88] sm:$0xff] %v4454_v31 }
 0x45e   : > { %v4210_v3 = vpop.f32.mrf.mxu2  ;;  %v4034_v42 = vpop.f32.mrf.mxu0 }
 0x45f   : > { %v4299_v58 = vpop.f32.mrf.mxu3  ;;  %v4211_v30 = vadd.f32 %v4210_v3, %v4122_v43  ;;  %v4123_v35 = vpop.f32.mrf.mxu1  ;;  %v4035_v55 = vadd.f32 %v4034_v42, %v7353_v17 }
 0x461   : > { %v4300_v7 = vadd.f32 %v4299_v58, %v4211_v30  ;;  %v4124_v39 = vadd.f32 %v4123_v35, %v4035_v55 }
 0x463   : > { %v4455_v57 = vadd.f32 %v7394_v15, %v4300_v7 }
 0x465   : > { %4487 = vst [vmem:[%s7398_s20 + $0x90] sm:$0xff] %v4455_v57 }
 0x466   : > { %v4212_v34 = vpop.f32.mrf.mxu2  ;;  %v4037_v36 = vpop.f32.mrf.mxu0 }
 0x467   : > { %v4301_v53 = vpop.f32.mrf.mxu3  ;;  %v4213_v48 = vadd.f32 %v4212_v34, %v4124_v39  ;;  %v4126_v37 = vpop.f32.mrf.mxu1  ;;  %v4038_v21 = vadd.f32 %v4037_v36, %v7356_v47 }
 0x469   : > { %v4302_v46 = vadd.f32 %v4301_v53, %v4213_v48  ;;  %v4127_v51 = vadd.f32 %v4126_v37, %v4038_v21 }
 0x46b   : > { %v4456_v10 = vadd.f32 %v7394_v15, %v4302_v46 }
 0x46d   : > { %4488 = vst [vmem:[%s7398_s20 + $0x98] sm:$0xff] %v4456_v10 }
 0x46e   : > { %v4215_v24 = vpop.f32.mrf.mxu2  ;;  %v4039_v6 = vpop.f32.mrf.mxu0 }
 0x46f   : > { %v4304_v59 = vpop.f32.mrf.mxu3  ;;  %v4216_v17 = vadd.f32 %v4215_v24, %v4127_v51  ;;  %v4128_v9 = vpop.f32.mrf.mxu1  ;;  %v4040_v11 = vadd.f32 %v4039_v6, %v7359_v13 }
 0x471   : > { %v4305_v62 = vadd.f32 %v4304_v59, %v4216_v17  ;;  %v4129_v22 = vadd.f32 %v4128_v9, %v4040_v11 }
 0x473   : > { %v4457_v45 = vadd.f32 %v7394_v15, %v4305_v62 }
 0x475   : > { %4489 = vst [vmem:[%s7398_s20 + $0xa0] sm:$0xff] %v4457_v45 }
 0x476   : > { %v4217_v25 = vpop.f32.mrf.mxu2  ;;  %v4042_v5 = vpop.f32.mrf.mxu0 }
 0x477   : > { %v4306_v33 = vpop.f32.mrf.mxu3  ;;  %v4218_v47 = vadd.f32 %v4217_v25, %v4129_v22  ;;  %v4131_v63 = vpop.f32.mrf.mxu1  ;;  %v4043_v4 = vadd.f32 %v4042_v5, %v7362_v29 }
 0x479   : > { %v4307_v8 = vadd.f32 %v4306_v33, %v4218_v47  ;;  %v4132_v26 = vadd.f32 %v4131_v63, %v4043_v4 }
 0x47b   : > { %v4458_v0 = vadd.f32 %v7394_v15, %v4307_v8 }
 0x47d   : > { %4490 = vst [vmem:[%s7398_s20 + $0xa8] sm:$0xff] %v4458_v0 }
 0x47e   : > { %v4220_v2 = vpop.f32.mrf.mxu2  ;;  %v4044_v1 = vpop.f32.mrf.mxu0 }
 0x47f   : > { %v4309_v27 = vpop.f32.mrf.mxu3  ;;  %v4221_v13 = vadd.f32 %v4220_v2, %v4132_v26  ;;  %v4133_v52 = vpop.f32.mrf.mxu1  ;;  %v4045_v12 = vadd.f32 %v4044_v1, %v7365_v16 }
 0x481   : > { %v4310_v61 = vadd.f32 %v4309_v27, %v4221_v13  ;;  %v4134_v54 = vadd.f32 %v4133_v52, %v4045_v12 }
 0x483   : > { %v4459_v18 = vadd.f32 %v7394_v15, %v4310_v61 }
 0x485   : > { %4491 = vst [vmem:[%s7398_s20 + $0xb0] sm:$0xff] %v4459_v18 }
 0x486   : > { %v4222_v40 = vpop.f32.mrf.mxu2  ;;  %v4047_v49 = vpop.f32.mrf.mxu0 }
 0x487   : > { %v4311_v56 = vpop.f32.mrf.mxu3  ;;  %v4223_v29 = vadd.f32 %v4222_v40, %v4134_v54  ;;  %v4136_v32 = vpop.f32.mrf.mxu1  ;;  %v4048_v20 = vadd.f32 %v4047_v49, %v7368_v19 }
 0x489   : > { %v4312_v14 = vadd.f32 %v4311_v56, %v4223_v29  ;;  %v4137_v43 = vadd.f32 %v4136_v32, %v4048_v20 }
 0x48b   : > { %v4460_v31 = vadd.f32 %v7394_v15, %v4312_v14 }
 0x48d   : > { %4492 = vst [vmem:[%s7398_s20 + $0xb8] sm:$0xff] %v4460_v31 }
 0x48e   : > { %v4225_v3 = vpop.f32.mrf.mxu2  ;;  %v4049_v30 = vpop.f32.mrf.mxu0 }
 0x48f   : > { %v4314_v58 = vpop.f32.mrf.mxu3  ;;  %v4226_v16 = vadd.f32 %v4225_v3, %v4137_v43  ;;  %v4138_v42 = vpop.f32.mrf.mxu1  ;;  %v4050_v7 = vadd.f32 %v4049_v30, %v7371_v50 }
 0x491   : > { %v4315_v35 = vadd.f32 %v4314_v58, %v4226_v16  ;;  %v4139_v57 = vadd.f32 %v4138_v42, %v4050_v7 }
 0x493   : > { %v4461_v55 = vadd.f32 %v7394_v15, %v4315_v35 }
 0x495   : > { %4493 = vst [vmem:[%s7398_s20 + $0xc0] sm:$0xff] %v4461_v55 }
 0x496   : > { %v4227_v39 = vpop.f32.mrf.mxu2  ;;  %v4052_v53 = vpop.f32.mrf.mxu0 }
 0x497   : > { %v4316_v34 = vpop.f32.mrf.mxu3  ;;  %v4228_v19 = vadd.f32 %v4227_v39, %v4139_v57  ;;  %v4141_v48 = vpop.f32.mrf.mxu1  ;;  %v4053_v37 = vadd.f32 %v4052_v53, %v7374_v44 }
 0x499   : > { %v4317_v36 = vadd.f32 %v4316_v34, %v4228_v19  ;;  %v4142_v21 = vadd.f32 %v4141_v48, %v4053_v37 }
 0x49b   : > { %v4462_v46 = vadd.f32 %v7394_v15, %v4317_v36 }
 0x49d   : > { %4494 = vst [vmem:[%s7398_s20 + $0xc8] sm:$0xff] %v4462_v46 }
 0x49e   : > { %v4230_v10 = vpop.f32.mrf.mxu2  ;;  %v4054_v24 = vpop.f32.mrf.mxu0 }
 0x49f   : > { %v4319_v51 = vpop.f32.mrf.mxu3  ;;  %v4231_v50 = vadd.f32 %v4230_v10, %v4142_v21  ;;  %v4143_v59 = vpop.f32.mrf.mxu1  ;;  %v4055_v6 = vadd.f32 %v4054_v24, %v7377_v28 }
 0x4a1   : > { %v4320_v17 = vadd.f32 %v4319_v51, %v4231_v50  ;;  %v4144_v62 = vadd.f32 %v4143_v59, %v4055_v6 }
 0x4a3   : > { %v4463_v9 = vadd.f32 %v7394_v15, %v4320_v17 }
 0x4a5   : > { %4495 = vst [vmem:[%s7398_s20 + $0xd0] sm:$0xff] %v4463_v9 }
 0x4a6   : > { %v4232_v11 = vpop.f32.mrf.mxu2  ;;  %v4057_v22 = vpop.f32.mrf.mxu0 }
 0x4a7   : > { %v4321_v45 = vpop.f32.mrf.mxu3  ;;  %v4233_v44 = vadd.f32 %v4232_v11, %v4144_v62  ;;  %v4146_v25 = vpop.f32.mrf.mxu1  ;;  %v4058_v47 = vadd.f32 %v4057_v22, %v7380_v60 }
 0x4a9   : > { %v4322_v33 = vadd.f32 %v4321_v45, %v4233_v44  ;;  %v4147_v63 = vadd.f32 %v4146_v25, %v4058_v47 }
 0x4ab   : > { %v4464_v5 = vadd.f32 %v7394_v15, %v4322_v33 }
 0x4ad   : > { %4496 = vst [vmem:[%s7398_s20 + $0xd8] sm:$0xff] %v4464_v5 }
 0x4ae   : > { %v4235_v8 = vpop.f32.mrf.mxu2  ;;  %v4059_v0 = vpop.f32.mrf.mxu0 }
 0x4af   : > { %v4324_v4 = vpop.f32.mrf.mxu3  ;;  %v4236_v28 = vadd.f32 %v4235_v8, %v4147_v63  ;;  %v4148_v26 = vpop.f32.mrf.mxu1  ;;  %v4060_v27 = vadd.f32 %v4059_v0, %v7383_v23 }
 0x4b1   : > { %v4325_v2 = vadd.f32 %v4324_v4, %v4236_v28  ;;  %v4149_v1 = vadd.f32 %v4148_v26, %v4060_v27 }
 0x4b3   : > { %v4465_v13 = vadd.f32 %v7394_v15, %v4325_v2 }
 0x4b5   : > { %4497 = vst [vmem:[%s7398_s20 + $0xe0] sm:$0xff] %v4465_v13 }
 0x4b6   : > { %v4237_v52 = vpop.f32.mrf.mxu2  ;;  %v4062_v12 = vpop.f32.mrf.mxu0 }
 0x4b7   : > { %v4326_v61 = vpop.f32.mrf.mxu3  ;;  %v4238_v60 = vadd.f32 %v4237_v52, %v4149_v1  ;;  %v4063_v54 = vadd.f32 %v4062_v12, %v7386_v41  ;;  %v4151_v40 = vpop.f32.mrf.mxu1 }
 0x4b9   : > { %v4327_v18 = vadd.f32 %v4326_v61, %v4238_v60  ;;  %v4152_v29 = vadd.f32 %v4151_v40, %v4063_v54 }
 0x4bb   : > { %v4466_v56 = vadd.f32 %v7394_v15, %v4327_v18 }
 0x4bd   : > { %4498 = vst [vmem:[%s7398_s20 + $0xe8] sm:$0xff] %v4466_v56 }
 0x4be   : > { %v4240_v49 = vpop.f32.mrf.mxu2  ;;  %v4064_v14 = vpop.f32.mrf.mxu0 }
 0x4bf   : > { %v4329_v23 = vpop.f32.mrf.mxu3  ;;  %v4241_v32 = vadd.f32 %v4240_v49, %v4152_v29  ;;  %v4065_v31 = vadd.f32 %v4064_v14, %v7388_v38  ;;  %v4153_v43 = vpop.f32.mrf.mxu1 }
 0x4c1   : > { %v4330_v20 = vadd.f32 %v4329_v23, %v4241_v32  ;;  %v4154_v3 = vadd.f32 %v4153_v43, %v4065_v31 }
 0x4c3   : > { %v4467_v41 = vadd.f32 %v7394_v15, %v4330_v20 }
 0x4c5   : > { %4499 = vst [vmem:[%s7398_s20 + $0xf0] sm:$0xff] %v4467_v41 }
 0x4c6   : > { %v4242_v58 = vpop.f32.mrf.mxu2 }
 0x4c7   : > { %v4243_v16 = vadd.f32 %v4242_v58, %v4154_v3  ;;  %v4331_v30 = vpop.f32.mrf.mxu3 }
 0x4c9   : > { %v4332_v42 = vadd.f32 %v4331_v30, %v4243_v16 }
 0x4cb   : > { %v4468_v38 = vadd.f32 %v7394_v15, %v4332_v42 }
 0x4cd   : > { %4500 = vst [vmem:[%s7398_s20 + $0xf8] sm:$0xff] %v4468_v38 }
 0x4ce   : > { %6779 = shalt.err (!%p6776_p11)
}
 0x4cf   : > { %s6845_s29 = smov 128   ;;  %s6846_s7 = smov 2176  }
 0x4d0   : > { %s6847_s11 = smov 8  }
 0x4d1   : > { %6583 = dma.vmem_to_hbm [thread:$0]  (%p6958_p13), %s4517_s8, 4096, %s4519_s10, %s4502_s15, %s6845_s29, %s6846_s7, %s6847_s11  }
 0x4d2 PF: > { %p6603_p12 = scmp.ge.s32.totalorder %s6838_s17, 2  ;;  %s4533_s20 = sand.u32 1, %s6818_s12  }
 0x4d3   : > { %s4534_s27 = scalar_lea.sflag [#allocation4], %s4533_s20 }
 0x4d4   : > { %p6597_p2 = pnand %p6603_p12, %p6962_p0 }
 0x4d6   : > { %p6598_p3 = pneg %p6597_p2 }
 0x4d8   : > { %6813 = dma.done.wait (%p6598_p3), %s4534_s27, 4096  }
 0x4d9   : > { %6815 = vsyncadd (%p6598_p3), %s4534_s27, 4294963200  ;;  %s20_s17 = sadd.s32 1, %s6838_s17   ;;  %s7541_s12 = smov %s6822_s13 }
 0x4da   : > { %p17_p1 = scmp.ge.s32.totalorder %s20_s17, 19   ;;  %s7542_s13 = smov %s6826_s14 }
 0x4db   : > { %s7543_s14 = smov %s6918_s24  ;;  %s7544_s15 = smov %s6834_s16 }
 0x4dc   : > { %s7545_s16 = smov %s7547_s18  ;;  %19 = sbr.rel (!%p17_p1) target bundleno = 7 (0x7), region = 102 }
 0x4e1   :  { %4540 = vsyncpa [#allocation3], 1 }
 0x4e2   :  { %4542 = vsyncpa [#allocation3 + $0x1], 1 }
 0x4e3   :  { %4543 = vsyncpa [#allocation6], 1 }
 0x4e4   :  { %4545 = vsyncpa [#allocation6 + $0x1], 1 }
 0x4e5   :  { %4546 = vsyncpa [#allocation4], 1 }
 0x4e6   :  { %4548 = vsyncpa [#allocation4 + $0x1], 1 }

</bundles_post_ra>
